<compile_context>
chip_gen: v7x
topology: tpu7x:2x2x1
jax: 0.10.0
libtpu: 0.0.40
codegen_flags: <defaults>
</compile_context>

<pallas_src>
import functools
import math

import jax
import jax.numpy as jnp
from jax.experimental import pallas as pl
from jax.experimental.pallas import tpu as pltpu


# --------------------------- generation-aware compiler params ---------------------------

def _default_vmem_limit():
    # ~3/4 of physical VMEM, capped at 100 MiB (v5e/v6e: 128 MiB, v7x: 64 MiB physical).
    try:
        info = pltpu.get_tpu_info()
        cap = getattr(info, "vmem_capacity_bytes", None)
        if cap:
            return int(min(cap * 3 // 4, 100 * 1024 * 1024))
    except Exception:
        pass
    return 48 * 1024 * 1024  # safe fallback on every generation


_VMEM_LIMIT = _default_vmem_limit()


def _cparams(*sem):
    return pltpu.CompilerParams(dimension_semantics=sem, vmem_limit_bytes=_VMEM_LIMIT)


def _row_tile(M, tile_m):
    """Row-tile size: large (HBM roofline), multiple of 8, and >= 2 tiles whenever
    possible so both v7x TensorCores get work on 'parallel' grid axes."""
    tm = min(tile_m, M)
    if M > 8 and tm >= M:
        half = -(-M // 2)
        tm = min(M, max(8, -(-half // 8) * 8))
    return tm


# ----------------------------- matmul-family kernels -----------------------------

def _linear_kernel(x_ref, w_ref, b_ref, o_ref):
    # x: (tm, K) bf16, w: (K, tn) bf16, b: (1, tn) f32
    acc = jnp.dot(x_ref[...], w_ref[...], preferred_element_type=jnp.float32) + b_ref[...]
    o_ref[...] = acc.astype(o_ref.dtype)


def linear(x2d, w, b, *, out_dtype=jnp.bfloat16, tile_m=512, tile_n=1024, n_major=False):
    """x2d: (M, K) bf16; w: (K, N) bf16 pre-transposed; b: (N,) f32.
    n_major=True puts the N axis outermost so a huge weight (vocab projection)
    is streamed from HBM exactly once instead of once per M tile."""
    M, K = x2d.shape
    N = w.shape[1]
    tm = _row_tile(M, tile_m)
    tn = min(tile_n, N)
    nm, nn = pl.cdiv(M, tm), pl.cdiv(N, tn)
    if n_major:
        grid = (nn, nm)
        x_spec = pl.BlockSpec((tm, K), lambda n, m: (m, 0))
        w_spec = pl.BlockSpec((K, tn), lambda n, m: (0, n))
        b_spec = pl.BlockSpec((1, tn), lambda n, m: (0, n))
        o_spec = pl.BlockSpec((tm, tn), lambda n, m: (m, n))
    else:
        grid = (nm, nn)
        x_spec = pl.BlockSpec((tm, K), lambda m, n: (m, 0))
        w_spec = pl.BlockSpec((K, tn), lambda m, n: (0, n))
        b_spec = pl.BlockSpec((1, tn), lambda m, n: (0, n))
        o_spec = pl.BlockSpec((tm, tn), lambda m, n: (m, n))
    return pl.pallas_call(
        _linear_kernel,
        out_shape=jax.ShapeDtypeStruct((M, N), out_dtype),
        grid=grid,
        in_specs=[x_spec, w_spec, b_spec],
        out_specs=o_spec,
        compiler_params=_cparams("parallel", "parallel"),
    )(x2d, w, b[None, :])


def _proj_add_ln_kernel(a_ref, r_ref, w_ref, b_ref, g_ref, bb_ref, o_ref):
    # LN(residual + a @ w + b), LN math in f32 over the full feature dim.
    y = (r_ref[...].astype(jnp.float32)
         + jnp.dot(a_ref[...], w_ref[...], preferred_element_type=jnp.float32)
         + b_ref[...])
    mean = jnp.mean(y, axis=-1, keepdims=True)
    var = jnp.mean(jnp.square(y - mean), axis=-1, keepdims=True)
    o_ref[...] = ((y - mean) * jax.lax.rsqrt(var + 1e-5) * g_ref[...]
                  + bb_ref[...]).astype(o_ref.dtype)


def proj_add_ln(a2d, r2d, w, b, gamma, beta, *, tile_m=512):
    """Fused attention output projection + residual add + LayerNorm."""
    M, K = a2d.shape
    N = w.shape[1]
    tm = _row_tile(M, tile_m)
    return pl.pallas_call(
        _proj_add_ln_kernel,
        out_shape=jax.ShapeDtypeStruct((M, N), jnp.bfloat16),
        grid=(pl.cdiv(M, tm),),
        in_specs=[pl.BlockSpec((tm, K), lambda i: (i, 0)),
                  pl.BlockSpec((tm, N), lambda i: (i, 0)),
                  pl.BlockSpec((K, N), lambda i: (0, 0)),
                  pl.BlockSpec((1, N), lambda i: (0, 0)),
                  pl.BlockSpec((1, N), lambda i: (0, 0)),
                  pl.BlockSpec((1, N), lambda i: (0, 0))],
        out_specs=pl.BlockSpec((tm, N), lambda i: (i, 0)),
        compiler_params=_cparams("parallel"),
    )(a2d, r2d, w, b[None, :], gamma[None, :], beta[None, :])


def _ffn_add_ln_kernel(x_ref, w1_ref, b1_ref, w2_ref, b2_ref, g_ref, bb_ref,
                       o_ref, acc_ref):
    # LN(x + linear2(relu(linear1(x)))) tiled over d_ff (grid axis 1, 'arbitrary'):
    # the (D,F)/(F,D) weights are streamed F-block by F-block, never fully resident.
    f = pl.program_id(1)

    @pl.when(f == 0)
    def _():
        acc_ref[...] = jnp.zeros_like(acc_ref)

    h = (jnp.dot(x_ref[...], w1_ref[...], preferred_element_type=jnp.float32)
         + b1_ref[...])
    h = jnp.maximum(h, 0.0)
    acc_ref[...] += jnp.dot(h.astype(w2_ref.dtype), w2_ref[...],
                            preferred_element_type=jnp.float32)

    @pl.when(f == pl.num_programs(1) - 1)
    def _():
        y = x_ref[...].astype(jnp.float32) + acc_ref[...] + b2_ref[...]
        mean = jnp.mean(y, axis=-1, keepdims=True)
        var = jnp.mean(jnp.square(y - mean), axis=-1, keepdims=True)
        o_ref[...] = ((y - mean) * jax.lax.rsqrt(var + 1e-5) * g_ref[...]
                      + bb_ref[...]).astype(o_ref.dtype)


def ffn_add_ln(x2d, w1, b1, w2, b2, gamma, beta, *, tile_m=256, tile_f=2048):
    """Fused FFN (linear1 -> ReLU -> linear2) + residual + LayerNorm, d_ff-tiled."""
    M, D = x2d.shape
    F_ = w1.shape[1]
    tm = _row_tile(M, tile_m)
    tf = min(tile_f, F_)
    grid = (pl.cdiv(M, tm), pl.cdiv(F_, tf))
    return pl.pallas_call(
        _ffn_add_ln_kernel,
        out_shape=jax.ShapeDtypeStruct((M, D), jnp.bfloat16),
        grid=grid,
        in_specs=[pl.BlockSpec((tm, D), lambda i, f: (i, 0)),
                  pl.BlockSpec((D, tf), lambda i, f: (0, f)),
                  pl.BlockSpec((1, tf), lambda i, f: (0, f)),
                  pl.BlockSpec((tf, D), lambda i, f: (f, 0)),
                  pl.BlockSpec((1, D), lambda i, f: (0, 0)),
                  pl.BlockSpec((1, D), lambda i, f: (0, 0)),
                  pl.BlockSpec((1, D), lambda i, f: (0, 0))],
        out_specs=pl.BlockSpec((tm, D), lambda i, f: (i, 0)),
        scratch_shapes=[pltpu.VMEM((tm, D), jnp.float32)],
        compiler_params=_cparams("parallel", "arbitrary"),
    )(x2d, w1, b1[None, :], w2, b2[None, :], gamma[None, :], beta[None, :])


def _ln_kernel(x_ref, g_ref, b_ref, o_ref):
    x = x_ref[...].astype(jnp.float32)
    mean = jnp.mean(x, axis=-1, keepdims=True)
    var = jnp.mean(jnp.square(x - mean), axis=-1, keepdims=True)
    o_ref[...] = ((x - mean) * jax.lax.rsqrt(var + 1e-5) * g_ref[...]
                  + b_ref[...]).astype(o_ref.dtype)


def layer_norm(x2d, gamma, beta, *, tile_m=1024):
    """Residual-free LayerNorm (final encoder / decoder norm)."""
    M, D = x2d.shape
    tm = _row_tile(M, tile_m)
    return pl.pallas_call(
        _ln_kernel,
        out_shape=jax.ShapeDtypeStruct((M, D), jnp.bfloat16),
        grid=(pl.cdiv(M, tm),),
        in_specs=[pl.BlockSpec((tm, D), lambda i: (i, 0)),
                  pl.BlockSpec((1, D), lambda i: (0, 0)),
                  pl.BlockSpec((1, D), lambda i: (0, 0))],
        out_specs=pl.BlockSpec((tm, D), lambda i: (i, 0)),
        compiler_params=_cparams("parallel"),
    )(x2d, gamma[None, :], beta[None, :])


# ----------------------------- attention kernels -----------------------------

def _mha_heads(q_ref, kv_ref, keep, o_ref, *, num_heads, head_dim, q_off, k_off, v_off):
    """All heads of one batch element, unrolled. q_ref/kv_ref/o_ref are (1, S, width)
    VMEM refs; heads are contiguous hd-wide column slices, so no HBM head
    split/merge transposes exist anywhere in the model."""
    # TODO(synk): flash-style Sk tiling with online-softmax scratch for long sequences
    #             (full (Sq, Sk) f32 scores are held here); fine at these sizes.
    # TODO(synk): per-head (Sq,hd)x(hd,Sk) matmuls underfill the 256x256 MXU; batch
    #             heads into a single contraction when head_dim is 128-aligned.
    hd = head_dim
    for h in range(num_heads):
        q = q_ref[0, :, q_off + h * hd: q_off + (h + 1) * hd]    # (Sq, hd), Q pre-scaled
        k = kv_ref[0, :, k_off + h * hd: k_off + (h + 1) * hd]   # (Sk, hd)
        v = kv_ref[0, :, v_off + h * hd: v_off + (h + 1) * hd]   # (Sk, hd)
        s = jax.lax.dot_general(q, k, (((1,), (1,)), ((), ())),
                                preferred_element_type=jnp.float32)  # (Sq, Sk)
        s = jnp.where(keep, s, jnp.float32(-1e30))                   # masked_fill(~mask)
        s = s - jnp.max(s, axis=-1, keepdims=True)
        p = jnp.exp(s)
        denom = jnp.sum(p, axis=-1, keepdims=True)
        o_h = jnp.dot(p.astype(v.dtype), v, preferred_element_type=jnp.float32)
        o_h = o_h * pl.reciprocal(denom, approx=True)   # normalize (Sq,hd), not (Sq,Sk)
        o_ref[0, :, h * hd:(h + 1) * hd] = o_h.astype(o_ref.dtype)


def _self_attn_kernel(qkv_ref, pad_ref, o_ref, *, num_heads, head_dim):
    D = num_heads * head_dim
    keep = pad_ref[0] != 0                                   # (1, Sk): key padding
    _mha_heads(qkv_ref, qkv_ref, keep, o_ref, num_heads=num_heads, head_dim=head_dim,
               q_off=0, k_off=D, v_off=2 * D)


def _self_attn_causal_kernel(qkv_ref, pad_ref, fut_ref, o_ref, *, num_heads, head_dim):
    D = num_heads * head_dim
    # Matches Decoder._combine_mask exactly: padding on the query axis AND ~future.
    keep = (pad_ref[0] != 0) & (fut_ref[0] == 0)             # (Sq,1)&(Sq,Sk) -> (Sq,Sk)
    _mha_heads(qkv_ref, qkv_ref, keep, o_ref, num_heads=num_heads, head_dim=head_dim,
               q_off=0, k_off=D, v_off=2 * D)


def _cross_attn_kernel(q_ref, kv_ref, pad_ref, o_ref, *, num_heads, head_dim):
    D = num_heads * head_dim
    keep = pad_ref[0] != 0                                   # (1, Sk): memory padding
    _mha_heads(q_ref, kv_ref, keep, o_ref, num_heads=num_heads, head_dim=head_dim,
               q_off=0, k_off=0, v_off=D)


def self_attention(qkv3, pad_mask, *, num_heads, head_dim, future_mask=None):
    """qkv3: (B, S, 3D) fused projection output (bf16); pad_mask: (B,1,S) int32 [key
    axis] or (B,S,1) int32 [query axis, causal case]; future_mask: optional (1,S,S)."""
    B, S, threeD = qkv3.shape
    D = num_heads * head_dim
    if future_mask is None:
        kern = functools.partial(_self_attn_kernel, num_heads=num_heads, head_dim=head_dim)
        in_specs = [pl.BlockSpec((1, S, threeD), lambda b: (b, 0, 0)),
                    pl.BlockSpec((1,) + pad_mask.shape[1:], lambda b: (b, 0, 0))]
        args = (qkv3, pad_mask)
    else:
        kern = functools.partial(_self_attn_causal_kernel, num_heads=num_heads,
                                 head_dim=head_dim)
        in_specs = [pl.BlockSpec((1, S, threeD), lambda b: (b, 0, 0)),
                    pl.BlockSpec((1,) + pad_mask.shape[1:], lambda b: (b, 0, 0)),
                    pl.BlockSpec((1, S, S), lambda b: (0, 0, 0))]
        args = (qkv3, pad_mask, future_mask)
    return pl.pallas_call(
        kern,
        out_shape=jax.ShapeDtypeStruct((B, S, D), jnp.bfloat16),
        grid=(B,),
        in_specs=in_specs,
        out_specs=pl.BlockSpec((1, S, D), lambda b: (b, 0, 0)),
        compiler_params=_cparams("parallel"),
    )(*args)


def cross_attention(q3, kv3, pad_mask, *, num_heads, head_dim):
    """q3: (B, Sq, D); kv3: (B, Skv, 2D) fused K/V projection; pad_mask: (B,1,Skv)."""
    B, Sq, D = q3.shape
    Skv = kv3.shape[1]
    kern = functools.partial(_cross_attn_kernel, num_heads=num_heads, head_dim=head_dim)
    return pl.pallas_call(
        kern,
        out_shape=jax.ShapeDtypeStruct((B, Sq, D), jnp.bfloat16),
        grid=(B,),
        in_specs=[pl.BlockSpec((1, Sq, D), lambda b: (b, 0, 0)),
                  pl.BlockSpec((1, Skv, 2 * D), lambda b: (b, 0, 0)),
                  pl.BlockSpec((1, 1, Skv), lambda b: (b, 0, 0))],
        out_specs=pl.BlockSpec((1, Sq, D), lambda b: (b, 0, 0)),
        compiler_params=_cparams("parallel"),
    )(q3, kv3, pad_mask)


# ----------------------------- model glue (plain JAX) -----------------------------

def self_attention_block(x, p, pad_mask, fut, num_heads, ln_g, ln_b):
    """x -> LN(x + MHA_self(x)); fused QKV matmul; heads handled in-kernel."""
    B, S, D = x.shape
    hd = D // num_heads
    x2d = x.reshape(B * S, D)
    qkv = linear(x2d, p['w_qkv'], p['b_qkv'])                       # (B*S, 3D) bf16
    a3 = self_attention(qkv.reshape(B, S, 3 * D), pad_mask,
                        num_heads=num_heads, head_dim=hd, future_mask=fut)
    y2d = proj_add_ln(a3.reshape(B * S, D), x2d, p['wo'], p['bo'], ln_g, ln_b)
    return y2d.reshape(B, S, D)


def cross_attention_block(x, memory, p, pad_mask, num_heads, ln_g, ln_b):
    """x -> LN(x + MHA_cross(x, memory)); K/V fused into one matmul."""
    B, Sq, D = x.shape
    Skv = memory.shape[1]
    hd = D // num_heads
    x2d = x.reshape(B * Sq, D)
    q = linear(x2d, p['wq'], p['bq'])                               # (B*Sq, D)
    kv = linear(memory.reshape(B * Skv, D), p['w_kv'], p['b_kv'])   # (B*Skv, 2D)
    a3 = cross_attention(q.reshape(B, Sq, D), kv.reshape(B, Skv, 2 * D), pad_mask,
                         num_heads=num_heads, head_dim=hd)
    y2d = proj_add_ln(a3.reshape(B * Sq, D), x2d, p['wo'], p['bo'], ln_g, ln_b)
    return y2d.reshape(B, Sq, D)


def encoder_layer(x, p, src_key_mask, num_heads):
    B, S, D = x.shape
    x = self_attention_block(x, p['self_attn'], src_key_mask, None, num_heads,
                             p['ln1_g'], p['ln1_b'])
    x2d = ffn_add_ln(x.reshape(B * S, D), p['ff_w1'], p['ff_b1'],
                     p['ff_w2'], p['ff_b2'], p['ln2_g'], p['ln2_b'])
    return x2d.reshape(B, S, D)


def decoder_layer(x, memory, p, tgt_mask, fut, mem_key_mask, num_heads):
    B, S, D = x.shape
    x = self_attention_block(x, p['self_attn'], tgt_mask, fut, num_heads,
                             p['ln1_g'], p['ln1_b'])
    x = cross_attention_block(x, memory, p['cross_attn'], mem_key_mask, num_heads,
                              p['ln2_g'], p['ln2_b'])
    x2d = ffn_add_ln(x.reshape(B * S, D), p['ff_w1'], p['ff_b1'],
                     p['ff_w2'], p['ff_b2'], p['ln3_g'], p['ln3_b'])
    return x2d.reshape(B, S, D)


def make_positional_encoding(max_len, d_model):
    position = jnp.arange(max_len, dtype=jnp.float32)[:, None]
    div_term = jnp.exp(jnp.arange(0, d_model, 2, dtype=jnp.float32)
                       * (-math.log(10000.0) / d_model))
    pe = jnp.zeros((max_len, d_model), jnp.float32)
    pe = pe.at[:, 0::2].set(jnp.sin(position * div_term))
    pe = pe.at[:, 1::2].set(jnp.cos(position * div_term))
    return pe


def embed(ids, table, d_model, pe):
    # Embedding gather left to XLA (no rectangular-tile Pallas equivalent needed).
    S = ids.shape[1]
    x = jnp.take(table, ids, axis=0).astype(jnp.float32) * math.sqrt(d_model)
    return (x + pe[None, :S, :]).astype(jnp.bfloat16)


def transformer_forward(params, cfg, src, tgt, future_mask=None):
    d_model = cfg['d_model']
    num_heads = cfg['num_heads']
    pad_id = cfg['pad_token_id']

    B, Ss = src.shape
    St = tgt.shape[1]

    src_key_mask = (src != pad_id).astype(jnp.int32)[:, None, :]     # (B, 1, Ss)
    if future_mask is not None:
        # pad mask on the QUERY axis (matches Decoder._combine_mask), future mask raw
        tgt_mask = (tgt != pad_id).astype(jnp.int32)[:, :, None]     # (B, St, 1)
        fut = future_mask.astype(jnp.int32)[None, :, :]              # (1, St, St)
    else:
        tgt_mask = (tgt != pad_id).astype(jnp.int32)[:, None, :]     # (B, 1, St)
        fut = None

    pe = params['pe']

    # ----- encoder -----
    x = embed(src, params['enc']['embedding'], d_model, pe)
    for lp in params['enc']['layers']:
        x = encoder_layer(x, lp, src_key_mask, num_heads)
    memory = layer_norm(x.reshape(B * Ss, d_model),
                        params['enc']['ln_g'], params['enc']['ln_b']).reshape(B, Ss, d_model)

    # ----- decoder -----
    y = embed(tgt, params['dec']['embedding'], d_model, pe)
    for lp in params['dec']['layers']:
        y = decoder_layer(y, memory, lp, tgt_mask, fut, src_key_mask, num_heads)
    y2d = layer_norm(y.reshape(B * St, d_model),
                     params['dec']['ln_g'], params['dec']['ln_b'])

    # ----- output projection: N-major grid -> vocab weight streamed exactly once -----
    V = params['out_w'].shape[1]
    logits = linear(y2d, params['out_w'], params['out_b'],
                    out_dtype=jnp.float32, n_major=True)
    return logits.reshape(B, St, V)


# ----------------------------- deterministic parameter init -----------------------------

def _xavier(key, shape):
    fan_out, fan_in = shape
    bound = math.sqrt(6.0 / (fan_in + fan_out))
    return jax.random.uniform(key, shape, jnp.float32, -bound, bound)


def _init_linear(key, d_in, d_out):
    """Weight pre-transposed to (d_in, d_out) f32 and bias (d_out,) f32."""
    kw, kb = jax.random.split(key)
    bound = math.sqrt(6.0 / (d_in + d_out))
    w = jax.random.uniform(kw, (d_in, d_out), jnp.float32, -bound, bound)
    bb = 1.0 / math.sqrt(d_in)
    b = jax.random.uniform(kb, (d_out,), jnp.float32, -bb, bb)
    return w, b


def _init_mha(key, d_model, num_heads, cross=False):
    hd = d_model // num_heads
    scale = 1.0 / math.sqrt(hd)
    kq, kk, kv, ko = jax.random.split(key, 4)
    wq, bq = _init_linear(kq, d_model, d_model)
    wk, bk = _init_linear(kk, d_model, d_model)
    wv, bv = _init_linear(kv, d_model, d_model)
    wo, bo = _init_linear(ko, d_model, d_model)
    wq = wq * scale   # fold 1/sqrt(head_dim) into the Q projection (free at runtime)
    bq = bq * scale
    if cross:
        return {'wq': wq.astype(jnp.bfloat16), 'bq': bq,
                'w_kv': jnp.concatenate([wk, wv], axis=1).astype(jnp.bfloat16),
                'b_kv': jnp.concatenate([bk, bv]),
                'wo': wo.astype(jnp.bfloat16), 'bo': bo}
    return {'w_qkv': jnp.concatenate([wq, wk, wv], axis=1).astype(jnp.bfloat16),
            'b_qkv': jnp.concatenate([bq, bk, bv]),
            'wo': wo.astype(jnp.bfloat16), 'bo': bo}


def _ln_pair(d_model):
    return jnp.ones((d_model,), jnp.float32), jnp.zeros((d_model,), jnp.float32)


def _init_enc_layer(key, d_model, d_ff, num_heads):
    k1, k2, k3 = jax.random.split(key, 3)
    w1, b1 = _init_linear(k2, d_model, d_ff)
    w2, b2 = _init_linear(k3, d_ff, d_model)
    g1, bb1 = _ln_pair(d_model)
    g2, bb2 = _ln_pair(d_model)
    return {'self_attn': _init_mha(k1, d_model, num_heads),
            'ff_w1': w1.astype(jnp.bfloat16), 'ff_b1': b1,
            'ff_w2': w2.astype(jnp.bfloat16), 'ff_b2': b2,
            'ln1_g': g1, 'ln1_b': bb1, 'ln2_g': g2, 'ln2_b': bb2}


def _init_dec_layer(key, d_model, d_ff, num_heads):
    k1, k2, k3, k4 = jax.random.split(key, 4)
    w1, b1 = _init_linear(k3, d_model, d_ff)
    w2, b2 = _init_linear(k4, d_ff, d_model)
    g1, bb1 = _ln_pair(d_model)
    g2, bb2 = _ln_pair(d_model)
    g3, bb3 = _ln_pair(d_model)
    return {'self_attn': _init_mha(k1, d_model, num_heads),
            'cross_attn': _init_mha(k2, d_model, num_heads, cross=True),
            'ff_w1': w1.astype(jnp.bfloat16), 'ff_b1': b1,
            'ff_w2': w2.astype(jnp.bfloat16), 'ff_b2': b2,
            'ln1_g': g1, 'ln1_b': bb1, 'ln2_g': g2, 'ln2_b': bb2,
            'ln3_g': g3, 'ln3_b': bb3}


def _init_embedding(key, vocab, d_model, pad_id):
    emb = _xavier(key, (vocab, d_model))
    emb = emb.at[pad_id].set(0.0)   # nn.Embedding(padding_idx=pad_id) semantics
    return emb.astype(jnp.bfloat16)


def init_params(key, cfg):
    d, dff, H = cfg['d_model'], cfg['d_ff'], cfg['num_heads']
    pad_id = cfg['pad_token_id']
    k_enc_emb, k_dec_emb, k_enc, k_dec, k_out = jax.random.split(key, 5)
    enc_layers = [_init_enc_layer(k, d, dff, H)
                  for k in jax.random.split(k_enc, cfg['num_encoder_layers'])]
    dec_layers = [_init_dec_layer(k, d, dff, H)
                  for k in jax.random.split(k_dec, cfg['num_decoder_layers'])]
    out_w, out_b = _init_linear(k_out, d, cfg['tgt_vocab_size'])
    g_e, b_e = _ln_pair(d)
    g_d, b_d = _ln_pair(d)
    return {
        'pe': make_positional_encoding(cfg['max_seq_length'], d),
        'enc': {'embedding': _init_embedding(k_enc_emb, cfg['src_vocab_size'], d, pad_id),
                'layers': enc_layers, 'ln_g': g_e, 'ln_b': b_e},
        'dec': {'embedding': _init_embedding(k_dec_emb, cfg['tgt_vocab_size'], d, pad_id),
                'layers': dec_layers, 'ln_g': g_d, 'ln_b': b_d},
        'out_w': out_w.astype(jnp.bfloat16), 'out_b': out_b,
    }


# ----------------------------- demo -----------------------------

if __name__ == "__main__":
    cfg = dict(src_vocab_size=64, tgt_vocab_size=64, d_model=32, num_heads=4,
               num_encoder_layers=2, num_decoder_layers=2, d_ff=64,
               max_seq_length=16, pad_token_id=0)

    key = jax.random.PRNGKey(0)
    k_params, k_src, k_tgt = jax.random.split(key, 3)
    params = init_params(k_params, cfg)

    B, S = 2, 8
    src = jax.random.randint(k_src, (B, S), 1, cfg['src_vocab_size'], dtype=jnp.int32)
    tgt = jax.random.randint(k_tgt, (B, S), 1, cfg['tgt_vocab_size'], dtype=jnp.int32)
    # introduce some padding at the tail of sequence 0
    src = src.at[0, 6:].set(cfg['pad_token_id'])
    tgt = tgt.at[0, 7:].set(cfg['pad_token_id'])

    # causal future mask: True above the diagonal (positions to be masked out)
    future_mask = jnp.triu(jnp.ones((S, S), dtype=bool), k=1)

    fwd = jax.jit(lambda p, s, t, fm: transformer_forward(p, cfg, s, t, fm))
    logits = fwd(params, src, tgt, future_mask)
    jax.block_until_ready(logits)
    assert logits.shape == (B, S, cfg['tgt_vocab_size'])
    assert bool(jnp.all(jnp.isfinite(logits)))
    print("KERNEL_OK")
</pallas_src>

<mosaic_0001>
module attributes {stable_mosaic.version = 11 : i64} {
  func.func @_proj_add_ln_kernel(%arg0: i32, %arg1: memref<8x32xbf16, #tpu.memory_space<vmem>>, %arg2: memref<8x32xbf16, #tpu.memory_space<vmem>>, %arg3: memref<32x32xbf16, #tpu.memory_space<vmem>>, %arg4: memref<1x32xf32, #tpu.memory_space<vmem>>, %arg5: memref<1x32xf32, #tpu.memory_space<vmem>>, %arg6: memref<1x32xf32, #tpu.memory_space<vmem>>, %arg7: memref<8x32xbf16, #tpu.memory_space<vmem>>) attributes {dimension_semantics = [#tpu.dimension_semantics<parallel>], iteration_bounds = array<i64: 2>, scalar_prefetch = 0 : i64, scratch_operands = 0 : i64, tpu.core_type = #tpu.core_type<tc>, window_params = [{transform_indices = @transform_0, window_bounds = array<i64: 8, 32>}, {transform_indices = @transform_1, window_bounds = array<i64: 8, 32>}, {pipeline_mode = #tpu.pipeline_mode<synchronous>, transform_indices = @transform_2, window_bounds = array<i64: 32, 32>}, {pipeline_mode = #tpu.pipeline_mode<synchronous>, transform_indices = @transform_3, window_bounds = array<i64: 1, 32>}, {pipeline_mode = #tpu.pipeline_mode<synchronous>, transform_indices = @transform_4, window_bounds = array<i64: 1, 32>}, {pipeline_mode = #tpu.pipeline_mode<synchronous>, transform_indices = @transform_5, window_bounds = array<i64: 1, 32>}, {transform_indices = @transform_6, window_bounds = array<i64: 8, 32>}]} {
    %c0 = arith.constant 0 : index
    %c0_0 = arith.constant 0 : index
    %0 = vector.load %arg2[%c0, %c0_0] : memref<8x32xbf16, #tpu.memory_space<vmem>>, vector<8x32xbf16>
    %1 = arith.extf %0 : vector<8x32xbf16> to vector<8x32xf32>
    %c0_1 = arith.constant 0 : index
    %c0_2 = arith.constant 0 : index
    %2 = vector.load %arg1[%c0_1, %c0_2] : memref<8x32xbf16, #tpu.memory_space<vmem>>, vector<8x32xbf16>
    %c0_3 = arith.constant 0 : index
    %c0_4 = arith.constant 0 : index
    %3 = vector.load %arg3[%c0_3, %c0_4] : memref<32x32xbf16, #tpu.memory_space<vmem>>, vector<32x32xbf16>
    %cst = arith.constant dense<0.000000e+00> : vector<8x32xf32>
    %4 = tpu.matmul %2, %3, %cst {dimension_numbers = #tpu.dot_dimension_numbers<[1], [0], [0], [1], [0, 0, 1, 1], [], []>} : vector<8x32xbf16>, vector<32x32xbf16>, vector<8x32xf32> -> vector<8x32xf32>
    %5 = arith.addf %1, %4 : vector<8x32xf32>
    %c0_5 = arith.constant 0 : index
    %c0_6 = arith.constant 0 : index
    %6 = vector.load %arg4[%c0_5, %c0_6] : memref<1x32xf32, #tpu.memory_space<vmem>>, vector<1x32xf32>
    %7 = vector.broadcast %6 : vector<1x32xf32> to vector<8x32xf32>
    %8 = arith.addf %5, %7 : vector<8x32xf32>
    %cst_7 = arith.constant dense<0.000000e+00> : vector<8xf32>
    %9 = vector.multi_reduction <add>, %8, %cst_7 [1] : vector<8x32xf32> to vector<8xf32>
    %10 = vector.shape_cast %9 : vector<8xf32> to vector<8x1xf32>
    %cst_8 = arith.constant 3.200000e+01 : f32
    %11 = vector.broadcast %cst_8 : f32 to vector<8x1xf32>
    %12 = arith.divf %10, %11 : vector<8x1xf32>
    %13 = vector.broadcast %12 : vector<8x1xf32> to vector<8x32xf32>
    %14 = arith.subf %8, %13 : vector<8x32xf32>
    %15 = arith.mulf %14, %14 : vector<8x32xf32>
    %cst_9 = arith.constant dense<0.000000e+00> : vector<8xf32>
    %16 = vector.multi_reduction <add>, %15, %cst_9 [1] : vector<8x32xf32> to vector<8xf32>
    %17 = vector.shape_cast %16 : vector<8xf32> to vector<8x1xf32>
    %cst_10 = arith.constant 3.200000e+01 : f32
    %18 = vector.broadcast %cst_10 : f32 to vector<8x1xf32>
    %19 = arith.divf %17, %18 : vector<8x1xf32>
    %20 = vector.broadcast %12 : vector<8x1xf32> to vector<8x32xf32>
    %21 = arith.subf %8, %20 : vector<8x32xf32>
    %cst_11 = arith.constant 9.99999974E-6 : f32
    %22 = vector.broadcast %cst_11 : f32 to vector<8x1xf32>
    %23 = arith.addf %19, %22 : vector<8x1xf32>
    %24 = math.rsqrt %23 : vector<8x1xf32>
    %25 = vector.broadcast %24 : vector<8x1xf32> to vector<8x32xf32>
    %26 = arith.mulf %21, %25 : vector<8x32xf32>
    %c0_12 = arith.constant 0 : index
    %c0_13 = arith.constant 0 : index
    %27 = vector.load %arg5[%c0_12, %c0_13] : memref<1x32xf32, #tpu.memory_space<vmem>>, vector<1x32xf32>
    %28 = vector.broadcast %27 : vector<1x32xf32> to vector<8x32xf32>
    %29 = arith.mulf %26, %28 : vector<8x32xf32>
    %c0_14 = arith.constant 0 : index
    %c0_15 = arith.constant 0 : index
    %30 = vector.load %arg6[%c0_14, %c0_15] : memref<1x32xf32, #tpu.memory_space<vmem>>, vector<1x32xf32>
    %31 = vector.broadcast %30 : vector<1x32xf32> to vector<8x32xf32>
    %32 = arith.addf %29, %31 : vector<8x32xf32>
    %33 = arith.truncf %32 : vector<8x32xf32> to vector<8x32xbf16>
    %c0_16 = arith.constant 0 : index
    %c0_17 = arith.constant 0 : index
    %34 = vector.load %arg7[%c0_16, %c0_17] : memref<8x32xbf16, #tpu.memory_space<vmem>>, vector<8x32xbf16>
    tpu.vector_store %arg7[%c0_16, %c0_17], %33 {strides = array<i32>} : memref<8x32xbf16, #tpu.memory_space<vmem>>, vector<8x32xbf16>,
    return
  }
  func.func @transform_0(%arg0: i32) -> (i32, i32) {
    %c0_i32 = arith.constant 0 : i32
    %c0_i32_0 = arith.constant 0 : i32
    return %arg0, %c0_i32 : i32, i32
  }
  func.func @transform_1(%arg0: i32) -> (i32, i32) {
    %c0_i32 = arith.constant 0 : i32
    %c0_i32_0 = arith.constant 0 : i32
    return %arg0, %c0_i32 : i32, i32
  }
  func.func @transform_2(%arg0: i32) -> (i32, i32) {
    %c0_i32 = arith.constant 0 : i32
    %c0_i32_0 = arith.constant 0 : i32
    %c0_i32_1 = arith.constant 0 : i32
    return %c0_i32, %c0_i32_0 : i32, i32
  }
  func.func @transform_3(%arg0: i32) -> (i32, i32) {
    %c0_i32 = arith.constant 0 : i32
    %c0_i32_0 = arith.constant 0 : i32
    %c0_i32_1 = arith.constant 0 : i32
    return %c0_i32, %c0_i32_0 : i32, i32
  }
  func.func @transform_4(%arg0: i32) -> (i32, i32) {
    %c0_i32 = arith.constant 0 : i32
    %c0_i32_0 = arith.constant 0 : i32
    %c0_i32_1 = arith.constant 0 : i32
    return %c0_i32, %c0_i32_0 : i32, i32
  }
  func.func @transform_5(%arg0: i32) -> (i32, i32) {
    %c0_i32 = arith.constant 0 : i32
    %c0_i32_0 = arith.constant 0 : i32
    %c0_i32_1 = arith.constant 0 : i32
    return %c0_i32, %c0_i32_0 : i32, i32
  }
  func.func @transform_6(%arg0: i32) -> (i32, i32) {
    %c0_i32 = arith.constant 0 : i32
    %c0_i32_0 = arith.constant 0 : i32
    return %arg0, %c0_i32 : i32, i32
  }
}

module attributes {stable_mosaic.version = 11 : i64} {
  func.func @_self_attn_kernel(%arg0: i32, %arg1: memref<1x8x96xbf16, #tpu.memory_space<vmem>>, %arg2: memref<1x1x8xi32, #tpu.memory_space<vmem>>, %arg3: memref<1x8x32xbf16, #tpu.memory_space<vmem>>) attributes {dimension_semantics = [#tpu.dimension_semantics<parallel>], iteration_bounds = array<i64: 2>, scalar_prefetch = 0 : i64, scratch_operands = 0 : i64, tpu.core_type = #tpu.core_type<tc>, window_params = [{transform_indices = @transform_0, window_bounds = array<i64: 1, 8, 96>}, {transform_indices = @transform_1, window_bounds = array<i64: 1, 1, 8>}, {transform_indices = @transform_2, window_bounds = array<i64: 1, 8, 32>}]} {
    %c0 = arith.constant 0 : index
    %c0_0 = arith.constant 0 : index
    %c0_1 = arith.constant 0 : index
    %0 = vector.load %arg2[%c0, %c0_0, %c0_1] : memref<1x1x8xi32, #tpu.memory_space<vmem>>, vector<1x1x8xi32>
    %1 = vector.shape_cast %0 : vector<1x1x8xi32> to vector<1x8xi32>
    %c0_i32 = arith.constant 0 : i32
    %2 = vector.broadcast %c0_i32 : i32 to vector<1x8xi32>
    %3 = arith.cmpi ne, %1, %2 : vector<1x8xi32>
    %c0_2 = arith.constant 0 : index
    %c0_3 = arith.constant 0 : index
    %c0_4 = arith.constant 0 : index
    %4 = vector.load %arg1[%c0_2, %c0_3, %c0_4] : memref<1x8x96xbf16, #tpu.memory_space<vmem>>, vector<1x8x8xbf16>
    %5 = vector.shape_cast %4 : vector<1x8x8xbf16> to vector<8x8xbf16>
    %c0_5 = arith.constant 0 : index
    %c0_6 = arith.constant 0 : index
    %c32 = arith.constant 32 : index
    %6 = vector.load %arg1[%c0_5, %c0_6, %c32] : memref<1x8x96xbf16, #tpu.memory_space<vmem>>, vector<1x8x8xbf16>
    %7 = vector.shape_cast %6 : vector<1x8x8xbf16> to vector<8x8xbf16>
    %c0_7 = arith.constant 0 : index
    %c0_8 = arith.constant 0 : index
    %c64 = arith.constant 64 : index
    %8 = vector.load %arg1[%c0_7, %c0_8, %c64] : memref<1x8x96xbf16, #tpu.memory_space<vmem>>, vector<1x8x8xbf16>
    %9 = vector.shape_cast %8 : vector<1x8x8xbf16> to vector<8x8xbf16>
    %cst = arith.constant dense<0.000000e+00> : vector<8x8xf32>
    %10 = tpu.matmul %5, %7, %cst {dimension_numbers = #tpu.dot_dimension_numbers<[1], [1], [0], [0], [0, 0, 1, 0], [], []>} : vector<8x8xbf16>, vector<8x8xbf16>, vector<8x8xf32> -> vector<8x8xf32>
    %cst_9 = arith.constant -1.000000e+30 : f32
    %11 = vector.shape_cast %3 : vector<1x8xi1> to vector<1x8xi1>
    %12 = vector.broadcast %11 : vector<1x8xi1> to vector<8x8xi1>
    %13 = vector.broadcast %cst_9 : f32 to vector<8x8xf32>
    %14 = arith.select %12, %10, %13 : vector<8x8xi1>, vector<8x8xf32>
    %cst_10 = arith.constant dense<0xFF800000> : vector<8xf32>
    %15 = vector.multi_reduction <maximumf>, %14, %cst_10 [1] : vector<8x8xf32> to vector<8xf32>
    %16 = vector.shape_cast %15 : vector<8xf32> to vector<8x1xf32>
    %17 = vector.broadcast %16 : vector<8x1xf32> to vector<8x8xf32>
    %18 = arith.subf %14, %17 : vector<8x8xf32>
    %19 = math.exp %18 : vector<8x8xf32>
    %cst_11 = arith.constant dense<0.000000e+00> : vector<8xf32>
    %20 = vector.multi_reduction <add>, %19, %cst_11 [1] : vector<8x8xf32> to vector<8xf32>
    %21 = vector.shape_cast %20 : vector<8xf32> to vector<8x1xf32>
    %22 = arith.truncf %19 : vector<8x8xf32> to vector<8x8xbf16>
    %cst_12 = arith.constant dense<0.000000e+00> : vector<8x8xf32>
    %23 = tpu.matmul %22, %9, %cst_12 {dimension_numbers = #tpu.dot_dimension_numbers<[1], [0], [0], [1], [0, 0, 1, 1], [], []>} : vector<8x8xbf16>, vector<8x8xbf16>, vector<8x8xf32> -> vector<8x8xf32>
    %24 = tpu.reciprocal %21 {approx = true} : vector<8x1xf32> -> vector<8x1xf32>
    %25 = vector.broadcast %24 : vector<8x1xf32> to vector<8x8xf32>
    %26 = arith.mulf %23, %25 : vector<8x8xf32>
    %27 = arith.truncf %26 : vector<8x8xf32> to vector<8x8xbf16>
    %c0_13 = arith.constant 0 : index
    %c0_14 = arith.constant 0 : index
    %c0_15 = arith.constant 0 : index
    %28 = vector.load %arg3[%c0_13, %c0_14, %c0_15] : memref<1x8x32xbf16, #tpu.memory_space<vmem>>, vector<1x8x8xbf16>
    %29 = vector.shape_cast %28 : vector<1x8x8xbf16> to vector<8x8xbf16>
    %30 = vector.shape_cast %27 : vector<8x8xbf16> to vector<1x8x8xbf16>
    tpu.vector_store %arg3[%c0_13, %c0_14, %c0_15], %30 {strides = array<i32>} : memref<1x8x32xbf16, #tpu.memory_space<vmem>>, vector<1x8x8xbf16>,
    %c0_16 = arith.constant 0 : index
    %c0_17 = arith.constant 0 : index
    %c8 = arith.constant 8 : index
    %31 = vector.load %arg1[%c0_16, %c0_17, %c8] : memref<1x8x96xbf16, #tpu.memory_space<vmem>>, vector<1x8x8xbf16>
    %32 = vector.shape_cast %31 : vector<1x8x8xbf16> to vector<8x8xbf16>
    %c0_18 = arith.constant 0 : index
    %c0_19 = arith.constant 0 : index
    %c40 = arith.constant 40 : index
    %33 = vector.load %arg1[%c0_18, %c0_19, %c40] : memref<1x8x96xbf16, #tpu.memory_space<vmem>>, vector<1x8x8xbf16>
    %34 = vector.shape_cast %33 : vector<1x8x8xbf16> to vector<8x8xbf16>
    %c0_20 = arith.constant 0 : index
    %c0_21 = arith.constant 0 : index
    %c72 = arith.constant 72 : index
    %35 = vector.load %arg1[%c0_20, %c0_21, %c72] : memref<1x8x96xbf16, #tpu.memory_space<vmem>>, vector<1x8x8xbf16>
    %36 = vector.shape_cast %35 : vector<1x8x8xbf16> to vector<8x8xbf16>
    %cst_22 = arith.constant dense<0.000000e+00> : vector<8x8xf32>
    %37 = tpu.matmul %32, %34, %cst_22 {dimension_numbers = #tpu.dot_dimension_numbers<[1], [1], [0], [0], [0, 0, 1, 0], [], []>} : vector<8x8xbf16>, vector<8x8xbf16>, vector<8x8xf32> -> vector<8x8xf32>
    %cst_23 = arith.constant -1.000000e+30 : f32
    %38 = vector.shape_cast %3 : vector<1x8xi1> to vector<1x8xi1>
    %39 = vector.broadcast %38 : vector<1x8xi1> to vector<8x8xi1>
    %40 = vector.broadcast %cst_23 : f32 to vector<8x8xf32>
    %41 = arith.select %39, %37, %40 : vector<8x8xi1>, vector<8x8xf32>
    %cst_24 = arith.constant dense<0xFF800000> : vector<8xf32>
    %42 = vector.multi_reduction <maximumf>, %41, %cst_24 [1] : vector<8x8xf32> to vector<8xf32>
    %43 = vector.shape_cast %42 : vector<8xf32> to vector<8x1xf32>
    %44 = vector.broadcast %43 : vector<8x1xf32> to vector<8x8xf32>
    %45 = arith.subf %41, %44 : vector<8x8xf32>
    %46 = math.exp %45 : vector<8x8xf32>
    %cst_25 = arith.constant dense<0.000000e+00> : vector<8xf32>
    %47 = vector.multi_reduction <add>, %46, %cst_25 [1] : vector<8x8xf32> to vector<8xf32>
    %48 = vector.shape_cast %47 : vector<8xf32> to vector<8x1xf32>
    %49 = arith.truncf %46 : vector<8x8xf32> to vector<8x8xbf16>
    %cst_26 = arith.constant dense<0.000000e+00> : vector<8x8xf32>
    %50 = tpu.matmul %49, %36, %cst_26 {dimension_numbers = #tpu.dot_dimension_numbers<[1], [0], [0], [1], [0, 0, 1, 1], [], []>} : vector<8x8xbf16>, vector<8x8xbf16>, vector<8x8xf32> -> vector<8x8xf32>
    %51 = tpu.reciprocal %48 {approx = true} : vector<8x1xf32> -> vector<8x1xf32>
    %52 = vector.broadcast %51 : vector<8x1xf32> to vector<8x8xf32>
    %53 = arith.mulf %50, %52 : vector<8x8xf32>
    %54 = arith.truncf %53 : vector<8x8xf32> to vector<8x8xbf16>
    %c0_27 = arith.constant 0 : index
    %c0_28 = arith.constant 0 : index
    %c8_29 = arith.constant 8 : index
    %55 = vector.load %arg3[%c0_27, %c0_28, %c8_29] : memref<1x8x32xbf16, #tpu.memory_space<vmem>>, vector<1x8x8xbf16>
    %56 = vector.shape_cast %55 : vector<1x8x8xbf16> to vector<8x8xbf16>
    %57 = vector.shape_cast %54 : vector<8x8xbf16> to vector<1x8x8xbf16>
    tpu.vector_store %arg3[%c0_27, %c0_28, %c8_29], %57 {strides = array<i32>} : memref<1x8x32xbf16, #tpu.memory_space<vmem>>, vector<1x8x8xbf16>,
    %c0_30 = arith.constant 0 : index
    %c0_31 = arith.constant 0 : index
    %c16 = arith.constant 16 : index
    %58 = vector.load %arg1[%c0_30, %c0_31, %c16] : memref<1x8x96xbf16, #tpu.memory_space<vmem>>, vector<1x8x8xbf16>
    %59 = vector.shape_cast %58 : vector<1x8x8xbf16> to vector<8x8xbf16>
    %c0_32 = arith.constant 0 : index
    %c0_33 = arith.constant 0 : index
    %c48 = arith.constant 48 : index
    %60 = vector.load %arg1[%c0_32, %c0_33, %c48] : memref<1x8x96xbf16, #tpu.memory_space<vmem>>, vector<1x8x8xbf16>
    %61 = vector.shape_cast %60 : vector<1x8x8xbf16> to vector<8x8xbf16>
    %c0_34 = arith.constant 0 : index
    %c0_35 = arith.constant 0 : index
    %c80 = arith.constant 80 : index
    %62 = vector.load %arg1[%c0_34, %c0_35, %c80] : memref<1x8x96xbf16, #tpu.memory_space<vmem>>, vector<1x8x8xbf16>
    %63 = vector.shape_cast %62 : vector<1x8x8xbf16> to vector<8x8xbf16>
    %cst_36 = arith.constant dense<0.000000e+00> : vector<8x8xf32>
    %64 = tpu.matmul %59, %61, %cst_36 {dimension_numbers = #tpu.dot_dimension_numbers<[1], [1], [0], [0], [0, 0, 1, 0], [], []>} : vector<8x8xbf16>, vector<8x8xbf16>, vector<8x8xf32> -> vector<8x8xf32>
    %cst_37 = arith.constant -1.000000e+30 : f32
    %65 = vector.shape_cast %3 : vector<1x8xi1> to vector<1x8xi1>
    %66 = vector.broadcast %65 : vector<1x8xi1> to vector<8x8xi1>
    %67 = vector.broadcast %cst_37 : f32 to vector<8x8xf32>
    %68 = arith.select %66, %64, %67 : vector<8x8xi1>, vector<8x8xf32>
    %cst_38 = arith.constant dense<0xFF800000> : vector<8xf32>
    %69 = vector.multi_reduction <maximumf>, %68, %cst_38 [1] : vector<8x8xf32> to vector<8xf32>
    %70 = vector.shape_cast %69 : vector<8xf32> to vector<8x1xf32>
    %71 = vector.broadcast %70 : vector<8x1xf32> to vector<8x8xf32>
    %72 = arith.subf %68, %71 : vector<8x8xf32>
    %73 = math.exp %72 : vector<8x8xf32>
    %cst_39 = arith.constant dense<0.000000e+00> : vector<8xf32>
    %74 = vector.multi_reduction <add>, %73, %cst_39 [1] : vector<8x8xf32> to vector<8xf32>
    %75 = vector.shape_cast %74 : vector<8xf32> to vector<8x1xf32>
    %76 = arith.truncf %73 : vector<8x8xf32> to vector<8x8xbf16>
    %cst_40 = arith.constant dense<0.000000e+00> : vector<8x8xf32>
    %77 = tpu.matmul %76, %63, %cst_40 {dimension_numbers = #tpu.dot_dimension_numbers<[1], [0], [0], [1], [0, 0, 1, 1], [], []>} : vector<8x8xbf16>, vector<8x8xbf16>, vector<8x8xf32> -> vector<8x8xf32>
    %78 = tpu.reciprocal %75 {approx = true} : vector<8x1xf32> -> vector<8x1xf32>
    %79 = vector.broadcast %78 : vector<8x1xf32> to vector<8x8xf32>
    %80 = arith.mulf %77, %79 : vector<8x8xf32>
    %81 = arith.truncf %80 : vector<8x8xf32> to vector<8x8xbf16>
    %c0_41 = arith.constant 0 : index
    %c0_42 = arith.constant 0 : index
    %c16_43 = arith.constant 16 : index
    %82 = vector.load %arg3[%c0_41, %c0_42, %c16_43] : memref<1x8x32xbf16, #tpu.memory_space<vmem>>, vector<1x8x8xbf16>
    %83 = vector.shape_cast %82 : vector<1x8x8xbf16> to vector<8x8xbf16>
    %84 = vector.shape_cast %81 : vector<8x8xbf16> to vector<1x8x8xbf16>
    tpu.vector_store %arg3[%c0_41, %c0_42, %c16_43], %84 {strides = array<i32>} : memref<1x8x32xbf16, #tpu.memory_space<vmem>>, vector<1x8x8xbf16>,
    %c0_44 = arith.constant 0 : index
    %c0_45 = arith.constant 0 : index
    %c24 = arith.constant 24 : index
    %85 = vector.load %arg1[%c0_44, %c0_45, %c24] : memref<1x8x96xbf16, #tpu.memory_space<vmem>>, vector<1x8x8xbf16>
    %86 = vector.shape_cast %85 : vector<1x8x8xbf16> to vector<8x8xbf16>
    %c0_46 = arith.constant 0 : index
    %c0_47 = arith.constant 0 : index
    %c56 = arith.constant 56 : index
    %87 = vector.load %arg1[%c0_46, %c0_47, %c56] : memref<1x8x96xbf16, #tpu.memory_space<vmem>>, vector<1x8x8xbf16>
    %88 = vector.shape_cast %87 : vector<1x8x8xbf16> to vector<8x8xbf16>
    %c0_48 = arith.constant 0 : index
    %c0_49 = arith.constant 0 : index
    %c88 = arith.constant 88 : index
    %89 = vector.load %arg1[%c0_48, %c0_49, %c88] : memref<1x8x96xbf16, #tpu.memory_space<vmem>>, vector<1x8x8xbf16>
    %90 = vector.shape_cast %89 : vector<1x8x8xbf16> to vector<8x8xbf16>
    %cst_50 = arith.constant dense<0.000000e+00> : vector<8x8xf32>
    %91 = tpu.matmul %86, %88, %cst_50 {dimension_numbers = #tpu.dot_dimension_numbers<[1], [1], [0], [0], [0, 0, 1, 0], [], []>} : vector<8x8xbf16>, vector<8x8xbf16>, vector<8x8xf32> -> vector<8x8xf32>
    %cst_51 = arith.constant -1.000000e+30 : f32
    %92 = vector.shape_cast %3 : vector<1x8xi1> to vector<1x8xi1>
    %93 = vector.broadcast %92 : vector<1x8xi1> to vector<8x8xi1>
    %94 = vector.broadcast %cst_51 : f32 to vector<8x8xf32>
    %95 = arith.select %93, %91, %94 : vector<8x8xi1>, vector<8x8xf32>
    %cst_52 = arith.constant dense<0xFF800000> : vector<8xf32>
    %96 = vector.multi_reduction <maximumf>, %95, %cst_52 [1] : vector<8x8xf32> to vector<8xf32>
    %97 = vector.shape_cast %96 : vector<8xf32> to vector<8x1xf32>
    %98 = vector.broadcast %97 : vector<8x1xf32> to vector<8x8xf32>
    %99 = arith.subf %95, %98 : vector<8x8xf32>
    %100 = math.exp %99 : vector<8x8xf32>
    %cst_53 = arith.constant dense<0.000000e+00> : vector<8xf32>
    %101 = vector.multi_reduction <add>, %100, %cst_53 [1] : vector<8x8xf32> to vector<8xf32>
    %102 = vector.shape_cast %101 : vector<8xf32> to vector<8x1xf32>
    %103 = arith.truncf %100 : vector<8x8xf32> to vector<8x8xbf16>
    %cst_54 = arith.constant dense<0.000000e+00> : vector<8x8xf32>
    %104 = tpu.matmul %103, %90, %cst_54 {dimension_numbers = #tpu.dot_dimension_numbers<[1], [0], [0], [1], [0, 0, 1, 1], [], []>} : vector<8x8xbf16>, vector<8x8xbf16>, vector<8x8xf32> -> vector<8x8xf32>
    %105 = tpu.reciprocal %102 {approx = true} : vector<8x1xf32> -> vector<8x1xf32>
    %106 = vector.broadcast %105 : vector<8x1xf32> to vector<8x8xf32>
    %107 = arith.mulf %104, %106 : vector<8x8xf32>
    %108 = arith.truncf %107 : vector<8x8xf32> to vector<8x8xbf16>
    %c0_55 = arith.constant 0 : index
    %c0_56 = arith.constant 0 : index
    %c24_57 = arith.constant 24 : index
    %109 = vector.load %arg3[%c0_55, %c0_56, %c24_57] : memref<1x8x32xbf16, #tpu.memory_space<vmem>>, vector<1x8x8xbf16>
    %110 = vector.shape_cast %109 : vector<1x8x8xbf16> to vector<8x8xbf16>
    %111 = vector.shape_cast %108 : vector<8x8xbf16> to vector<1x8x8xbf16>
    tpu.vector_store %arg3[%c0_55, %c0_56, %c24_57], %111 {strides = array<i32>} : memref<1x8x32xbf16, #tpu.memory_space<vmem>>, vector<1x8x8xbf16>,
    return
  }
  func.func @transform_0(%arg0: i32) -> (i32, i32, i32) {
    %c0_i32 = arith.constant 0 : i32
    %c0_i32_0 = arith.constant 0 : i32
    %c0_i32_1 = arith.constant 0 : i32
    return %arg0, %c0_i32, %c0_i32_0 : i32, i32, i32
  }
  func.func @transform_1(%arg0: i32) -> (i32, i32, i32) {
    %c0_i32 = arith.constant 0 : i32
    %c0_i32_0 = arith.constant 0 : i32
    %c0_i32_1 = arith.constant 0 : i32
    return %arg0, %c0_i32, %c0_i32_0 : i32, i32, i32
  }
  func.func @transform_2(%arg0: i32) -> (i32, i32, i32) {
    %c0_i32 = arith.constant 0 : i32
    %c0_i32_0 = arith.constant 0 : i32
    %c0_i32_1 = arith.constant 0 : i32
    return %arg0, %c0_i32, %c0_i32_0 : i32, i32, i32
  }
}

module attributes {stable_mosaic.version = 11 : i64} {
  func.func @_linear_kernel(%arg0: i32, %arg1: i32, %arg2: memref<8x32xbf16, #tpu.memory_space<vmem>>, %arg3: memref<32x96xbf16, #tpu.memory_space<vmem>>, %arg4: memref<1x96xf32, #tpu.memory_space<vmem>>, %arg5: memref<8x96xbf16, #tpu.memory_space<vmem>>) attributes {dimension_semantics = [#tpu.dimension_semantics<parallel>, #tpu.dimension_semantics<parallel>], iteration_bounds = array<i64: 2, 1>, scalar_prefetch = 0 : i64, scratch_operands = 0 : i64, tpu.core_type = #tpu.core_type<tc>, window_params = [{transform_indices = @transform_0, window_bounds = array<i64: 8, 32>}, {transform_indices = @transform_1, window_bounds = array<i64: 32, 96>}, {transform_indices = @transform_2, window_bounds = array<i64: 1, 96>}, {transform_indices = @transform_3, window_bounds = array<i64: 8, 96>}]} {
    %c0 = arith.constant 0 : index
    %c0_0 = arith.constant 0 : index
    %0 = vector.load %arg2[%c0, %c0_0] : memref<8x32xbf16, #tpu.memory_space<vmem>>, vector<8x32xbf16>
    %c0_1 = arith.constant 0 : index
    %c0_2 = arith.constant 0 : index
    %1 = vector.load %arg3[%c0_1, %c0_2] : memref<32x96xbf16, #tpu.memory_space<vmem>>, vector<32x96xbf16>
    %cst = arith.constant dense<0.000000e+00> : vector<8x96xf32>
    %2 = tpu.matmul %0, %1, %cst {dimension_numbers = #tpu.dot_dimension_numbers<[1], [0], [0], [1], [0, 0, 1, 1], [], []>} : vector<8x32xbf16>, vector<32x96xbf16>, vector<8x96xf32> -> vector<8x96xf32>
    %c0_3 = arith.constant 0 : index
    %c0_4 = arith.constant 0 : index
    %3 = vector.load %arg4[%c0_3, %c0_4] : memref<1x96xf32, #tpu.memory_space<vmem>>, vector<1x96xf32>
    %4 = vector.broadcast %3 : vector<1x96xf32> to vector<8x96xf32>
    %5 = arith.addf %2, %4 : vector<8x96xf32>
    %6 = arith.truncf %5 : vector<8x96xf32> to vector<8x96xbf16>
    %c0_5 = arith.constant 0 : index
    %c0_6 = arith.constant 0 : index
    %7 = vector.load %arg5[%c0_5, %c0_6] : memref<8x96xbf16, #tpu.memory_space<vmem>>, vector<8x96xbf16>
    tpu.vector_store %arg5[%c0_5, %c0_6], %6 {strides = array<i32>} : memref<8x96xbf16, #tpu.memory_space<vmem>>, vector<8x96xbf16>,
    return
  }
  func.func @transform_0(%arg0: i32, %arg1: i32) -> (i32, i32) {
    %c0_i32 = arith.constant 0 : i32
    %c0_i32_0 = arith.constant 0 : i32
    return %arg0, %c0_i32 : i32, i32
  }
  func.func @transform_1(%arg0: i32, %arg1: i32) -> (i32, i32) {
    %c0_i32 = arith.constant 0 : i32
    %c0_i32_0 = arith.constant 0 : i32
    return %c0_i32, %arg1 : i32, i32
  }
  func.func @transform_2(%arg0: i32, %arg1: i32) -> (i32, i32) {
    %c0_i32 = arith.constant 0 : i32
    %c0_i32_0 = arith.constant 0 : i32
    return %c0_i32, %arg1 : i32, i32
  }
  func.func @transform_3(%arg0: i32, %arg1: i32) -> (i32, i32) {
    %c0_i32 = arith.constant 0 : i32
    return %arg0, %arg1 : i32, i32
  }
}

module attributes {stable_mosaic.version = 11 : i64} {
  func.func @_ffn_add_ln_kernel(%arg0: i32, %arg1: i32, %arg2: memref<8x32xbf16, #tpu.memory_space<vmem>>, %arg3: memref<32x64xbf16, #tpu.memory_space<vmem>>, %arg4: memref<1x64xf32, #tpu.memory_space<vmem>>, %arg5: memref<64x32xbf16, #tpu.memory_space<vmem>>, %arg6: memref<1x32xf32, #tpu.memory_space<vmem>>, %arg7: memref<1x32xf32, #tpu.memory_space<vmem>>, %arg8: memref<1x32xf32, #tpu.memory_space<vmem>>, %arg9: memref<8x32xbf16, #tpu.memory_space<vmem>>, %arg10: memref<8x32xf32, #tpu.memory_space<vmem>>) attributes {dimension_semantics = [#tpu.dimension_semantics<parallel>, #tpu.dimension_semantics<arbitrary>], iteration_bounds = array<i64: 2, 1>, scalar_prefetch = 0 : i64, scratch_operands = 1 : i64, tpu.core_type = #tpu.core_type<tc>, window_params = [{transform_indices = @transform_0, window_bounds = array<i64: 8, 32>}, {transform_indices = @transform_1, window_bounds = array<i64: 32, 64>}, {transform_indices = @transform_2, window_bounds = array<i64: 1, 64>}, {transform_indices = @transform_3, window_bounds = array<i64: 64, 32>}, {pipeline_mode = #tpu.pipeline_mode<synchronous>, transform_indices = @transform_4, window_bounds = array<i64: 1, 32>}, {pipeline_mode = #tpu.pipeline_mode<synchronous>, transform_indices = @transform_5, window_bounds = array<i64: 1, 32>}, {pipeline_mode = #tpu.pipeline_mode<synchronous>, transform_indices = @transform_6, window_bounds = array<i64: 1, 32>}, {transform_indices = @transform_7, window_bounds = array<i64: 8, 32>}]} {
    %c0_i32 = arith.constant 0 : i32
    %0 = arith.cmpi eq, %arg1, %c0_i32 : i32
    %1 = arith.extui %0 : i1 to i32
    %c0_i32_0 = arith.constant 0 : i32
    %2 = arith.cmpi ne, %1, %c0_i32_0 : i32
    scf.if %2 {
      %cst_16 = arith.constant 0.000000e+00 : f32
      %20 = vector.broadcast %cst_16 : f32 to vector<8x32xf32>
      %c0_17 = arith.constant 0 : index
      %c0_18 = arith.constant 0 : index
      %21 = vector.load %arg10[%c0_17, %c0_18] : memref<8x32xf32, #tpu.memory_space<vmem>>, vector<8x32xf32>
      tpu.vector_store %arg10[%c0_17, %c0_18], %20 {strides = array<i32>} : memref<8x32xf32, #tpu.memory_space<vmem>>, vector<8x32xf32>,
    } else {
    }
    %c0 = arith.constant 0 : index
    %c0_1 = arith.constant 0 : index
    %3 = vector.load %arg2[%c0, %c0_1] : memref<8x32xbf16, #tpu.memory_space<vmem>>, vector<8x32xbf16>
    %c0_2 = arith.constant 0 : index
    %c0_3 = arith.constant 0 : index
    %4 = vector.load %arg3[%c0_2, %c0_3] : memref<32x64xbf16, #tpu.memory_space<vmem>>, vector<32x64xbf16>
    %cst = arith.constant dense<0.000000e+00> : vector<8x64xf32>
    %5 = tpu.matmul %3, %4, %cst {dimension_numbers = #tpu.dot_dimension_numbers<[1], [0], [0], [1], [0, 0, 1, 1], [], []>} : vector<8x32xbf16>, vector<32x64xbf16>, vector<8x64xf32> -> vector<8x64xf32>
    %c0_4 = arith.constant 0 : index
    %c0_5 = arith.constant 0 : index
    %6 = vector.load %arg4[%c0_4, %c0_5] : memref<1x64xf32, #tpu.memory_space<vmem>>, vector<1x64xf32>
    %7 = vector.broadcast %6 : vector<1x64xf32> to vector<8x64xf32>
    %8 = arith.addf %5, %7 : vector<8x64xf32>
    %cst_6 = arith.constant 0.000000e+00 : f32
    %9 = vector.broadcast %cst_6 : f32 to vector<8x64xf32>
    %10 = arith.maximumf %8, %9 : vector<8x64xf32>
    %c0_7 = arith.constant 0 : index
    %c0_8 = arith.constant 0 : index
    %11 = vector.load %arg10[%c0_7, %c0_8] : memref<8x32xf32, #tpu.memory_space<vmem>>, vector<8x32xf32>
    %12 = arith.truncf %10 : vector<8x64xf32> to vector<8x64xbf16>
    %c0_9 = arith.constant 0 : index
    %c0_10 = arith.constant 0 : index
    %13 = vector.load %arg5[%c0_9, %c0_10] : memref<64x32xbf16, #tpu.memory_space<vmem>>, vector<64x32xbf16>
    %cst_11 = arith.constant dense<0.000000e+00> : vector<8x32xf32>
    %14 = tpu.matmul %12, %13, %cst_11 {dimension_numbers = #tpu.dot_dimension_numbers<[1], [0], [0], [1], [0, 0, 1, 1], [], []>} : vector<8x64xbf16>, vector<64x32xbf16>, vector<8x32xf32> -> vector<8x32xf32>
    %15 = arith.addf %11, %14 : vector<8x32xf32>
    %c0_12 = arith.constant 0 : index
    %c0_13 = arith.constant 0 : index
    %16 = vector.load %arg10[%c0_12, %c0_13] : memref<8x32xf32, #tpu.memory_space<vmem>>, vector<8x32xf32>
    tpu.vector_store %arg10[%c0_12, %c0_13], %15 {strides = array<i32>} : memref<8x32xf32, #tpu.memory_space<vmem>>, vector<8x32xf32>,
    %c0_i32_14 = arith.constant 0 : i32
    %17 = arith.cmpi eq, %arg1, %c0_i32_14 : i32
    %18 = arith.extui %17 : i1 to i32
    %c0_i32_15 = arith.constant 0 : i32
    %19 = arith.cmpi ne, %18, %c0_i32_15 : i32
    scf.if %19 {
      %c0_16 = arith.constant 0 : index
      %c0_17 = arith.constant 0 : index
      %20 = vector.load %arg2[%c0_16, %c0_17] : memref<8x32xbf16, #tpu.memory_space<vmem>>, vector<8x32xbf16>
      %21 = arith.extf %20 : vector<8x32xbf16> to vector<8x32xf32>
      %c0_18 = arith.constant 0 : index
      %c0_19 = arith.constant 0 : index
      %22 = vector.load %arg10[%c0_18, %c0_19] : memref<8x32xf32, #tpu.memory_space<vmem>>, vector<8x32xf32>
      %23 = arith.addf %21, %22 : vector<8x32xf32>
      %c0_20 = arith.constant 0 : index
      %c0_21 = arith.constant 0 : index
      %24 = vector.load %arg6[%c0_20, %c0_21] : memref<1x32xf32, #tpu.memory_space<vmem>>, vector<1x32xf32>
      %25 = vector.broadcast %24 : vector<1x32xf32> to vector<8x32xf32>
      %26 = arith.addf %23, %25 : vector<8x32xf32>
      %cst_22 = arith.constant dense<0.000000e+00> : vector<8xf32>
      %27 = vector.multi_reduction <add>, %26, %cst_22 [1] : vector<8x32xf32> to vector<8xf32>
      %28 = vector.shape_cast %27 : vector<8xf32> to vector<8x1xf32>
      %cst_23 = arith.constant 3.200000e+01 : f32
      %29 = vector.broadcast %cst_23 : f32 to vector<8x1xf32>
      %30 = arith.divf %28, %29 : vector<8x1xf32>
      %31 = vector.broadcast %30 : vector<8x1xf32> to vector<8x32xf32>
      %32 = arith.subf %26, %31 : vector<8x32xf32>
      %33 = arith.mulf %32, %32 : vector<8x32xf32>
      %cst_24 = arith.constant dense<0.000000e+00> : vector<8xf32>
      %34 = vector.multi_reduction <add>, %33, %cst_24 [1] : vector<8x32xf32> to vector<8xf32>
      %35 = vector.shape_cast %34 : vector<8xf32> to vector<8x1xf32>
      %cst_25 = arith.constant 3.200000e+01 : f32
      %36 = vector.broadcast %cst_25 : f32 to vector<8x1xf32>
      %37 = arith.divf %35, %36 : vector<8x1xf32>
      %38 = vector.broadcast %30 : vector<8x1xf32> to vector<8x32xf32>
      %39 = arith.subf %26, %38 : vector<8x32xf32>
      %cst_26 = arith.constant 9.99999974E-6 : f32
      %40 = vector.broadcast %cst_26 : f32 to vector<8x1xf32>
      %41 = arith.addf %37, %40 : vector<8x1xf32>
      %42 = math.rsqrt %41 : vector<8x1xf32>
      %43 = vector.broadcast %42 : vector<8x1xf32> to vector<8x32xf32>
      %44 = arith.mulf %39, %43 : vector<8x32xf32>
      %c0_27 = arith.constant 0 : index
      %c0_28 = arith.constant 0 : index
      %45 = vector.load %arg7[%c0_27, %c0_28] : memref<1x32xf32, #tpu.memory_space<vmem>>, vector<1x32xf32>
      %46 = vector.broadcast %45 : vector<1x32xf32> to vector<8x32xf32>
      %47 = arith.mulf %44, %46 : vector<8x32xf32>
      %c0_29 = arith.constant 0 : index
      %c0_30 = arith.constant 0 : index
      %48 = vector.load %arg8[%c0_29, %c0_30] : memref<1x32xf32, #tpu.memory_space<vmem>>, vector<1x32xf32>
      %49 = vector.broadcast %48 : vector<1x32xf32> to vector<8x32xf32>
      %50 = arith.addf %47, %49 : vector<8x32xf32>
      %51 = arith.truncf %50 : vector<8x32xf32> to vector<8x32xbf16>
      %c0_31 = arith.constant 0 : index
      %c0_32 = arith.constant 0 : index
      %52 = vector.load %arg9[%c0_31, %c0_32] : memref<8x32xbf16, #tpu.memory_space<vmem>>, vector<8x32xbf16>
      tpu.vector_store %arg9[%c0_31, %c0_32], %51 {strides = array<i32>} : memref<8x32xbf16, #tpu.memory_space<vmem>>, vector<8x32xbf16>,
    } else {
    }
    return
  }
  func.func @transform_0(%arg0: i32, %arg1: i32) -> (i32, i32) {
    %c0_i32 = arith.constant 0 : i32
    %c0_i32_0 = arith.constant 0 : i32
    return %arg0, %c0_i32 : i32, i32
  }
  func.func @transform_1(%arg0: i32, %arg1: i32) -> (i32, i32) {
    %c0_i32 = arith.constant 0 : i32
    %c0_i32_0 = arith.constant 0 : i32
    return %c0_i32, %arg1 : i32, i32
  }
  func.func @transform_2(%arg0: i32, %arg1: i32) -> (i32, i32) {
    %c0_i32 = arith.constant 0 : i32
    %c0_i32_0 = arith.constant 0 : i32
    return %c0_i32, %arg1 : i32, i32
  }
  func.func @transform_3(%arg0: i32, %arg1: i32) -> (i32, i32) {
    %c0_i32 = arith.constant 0 : i32
    %c0_i32_0 = arith.constant 0 : i32
    return %arg1, %c0_i32 : i32, i32
  }
  func.func @transform_4(%arg0: i32, %arg1: i32) -> (i32, i32) {
    %c0_i32 = arith.constant 0 : i32
    %c0_i32_0 = arith.constant 0 : i32
    %c0_i32_1 = arith.constant 0 : i32
    return %c0_i32, %c0_i32_0 : i32, i32
  }
  func.func @transform_5(%arg0: i32, %arg1: i32) -> (i32, i32) {
    %c0_i32 = arith.constant 0 : i32
    %c0_i32_0 = arith.constant 0 : i32
    %c0_i32_1 = arith.constant 0 : i32
    return %c0_i32, %c0_i32_0 : i32, i32
  }
  func.func @transform_6(%arg0: i32, %arg1: i32) -> (i32, i32) {
    %c0_i32 = arith.constant 0 : i32
    %c0_i32_0 = arith.constant 0 : i32
    %c0_i32_1 = arith.constant 0 : i32
    return %c0_i32, %c0_i32_0 : i32, i32
  }
  func.func @transform_7(%arg0: i32, %arg1: i32) -> (i32, i32) {
    %c0_i32 = arith.constant 0 : i32
    %c0_i32_0 = arith.constant 0 : i32
    return %arg0, %c0_i32 : i32, i32
  }
}

module attributes {stable_mosaic.version = 11 : i64} {
  func.func @_linear_kernel(%arg0: i32, %arg1: i32, %arg2: memref<8x32xbf16, #tpu.memory_space<vmem>>, %arg3: memref<32x64xbf16, #tpu.memory_space<vmem>>, %arg4: memref<1x64xf32, #tpu.memory_space<vmem>>, %arg5: memref<8x64xbf16, #tpu.memory_space<vmem>>) attributes {dimension_semantics = [#tpu.dimension_semantics<parallel>, #tpu.dimension_semantics<parallel>], iteration_bounds = array<i64: 2, 1>, scalar_prefetch = 0 : i64, scratch_operands = 0 : i64, tpu.core_type = #tpu.core_type<tc>, window_params = [{transform_indices = @transform_0, window_bounds = array<i64: 8, 32>}, {transform_indices = @transform_1, window_bounds = array<i64: 32, 64>}, {transform_indices = @transform_2, window_bounds = array<i64: 1, 64>}, {transform_indices = @transform_3, window_bounds = array<i64: 8, 64>}]} {
    %c0 = arith.constant 0 : index
    %c0_0 = arith.constant 0 : index
    %0 = vector.load %arg2[%c0, %c0_0] : memref<8x32xbf16, #tpu.memory_space<vmem>>, vector<8x32xbf16>
    %c0_1 = arith.constant 0 : index
    %c0_2 = arith.constant 0 : index
    %1 = vector.load %arg3[%c0_1, %c0_2] : memref<32x64xbf16, #tpu.memory_space<vmem>>, vector<32x64xbf16>
    %cst = arith.constant dense<0.000000e+00> : vector<8x64xf32>
    %2 = tpu.matmul %0, %1, %cst {dimension_numbers = #tpu.dot_dimension_numbers<[1], [0], [0], [1], [0, 0, 1, 1], [], []>} : vector<8x32xbf16>, vector<32x64xbf16>, vector<8x64xf32> -> vector<8x64xf32>
    %c0_3 = arith.constant 0 : index
    %c0_4 = arith.constant 0 : index
    %3 = vector.load %arg4[%c0_3, %c0_4] : memref<1x64xf32, #tpu.memory_space<vmem>>, vector<1x64xf32>
    %4 = vector.broadcast %3 : vector<1x64xf32> to vector<8x64xf32>
    %5 = arith.addf %2, %4 : vector<8x64xf32>
    %6 = arith.truncf %5 : vector<8x64xf32> to vector<8x64xbf16>
    %c0_5 = arith.constant 0 : index
    %c0_6 = arith.constant 0 : index
    %7 = vector.load %arg5[%c0_5, %c0_6] : memref<8x64xbf16, #tpu.memory_space<vmem>>, vector<8x64xbf16>
    tpu.vector_store %arg5[%c0_5, %c0_6], %6 {strides = array<i32>} : memref<8x64xbf16, #tpu.memory_space<vmem>>, vector<8x64xbf16>,
    return
  }
  func.func @transform_0(%arg0: i32, %arg1: i32) -> (i32, i32) {
    %c0_i32 = arith.constant 0 : i32
    %c0_i32_0 = arith.constant 0 : i32
    return %arg0, %c0_i32 : i32, i32
  }
  func.func @transform_1(%arg0: i32, %arg1: i32) -> (i32, i32) {
    %c0_i32 = arith.constant 0 : i32
    %c0_i32_0 = arith.constant 0 : i32
    return %c0_i32, %arg1 : i32, i32
  }
  func.func @transform_2(%arg0: i32, %arg1: i32) -> (i32, i32) {
    %c0_i32 = arith.constant 0 : i32
    %c0_i32_0 = arith.constant 0 : i32
    return %c0_i32, %arg1 : i32, i32
  }
  func.func @transform_3(%arg0: i32, %arg1: i32) -> (i32, i32) {
    %c0_i32 = arith.constant 0 : i32
    return %arg0, %arg1 : i32, i32
  }
}

module attributes {stable_mosaic.version = 11 : i64} {
  func.func @_ln_kernel(%arg0: i32, %arg1: memref<8x32xbf16, #tpu.memory_space<vmem>>, %arg2: memref<1x32xf32, #tpu.memory_space<vmem>>, %arg3: memref<1x32xf32, #tpu.memory_space<vmem>>, %arg4: memref<8x32xbf16, #tpu.memory_space<vmem>>) attributes {dimension_semantics = [#tpu.dimension_semantics<parallel>], iteration_bounds = array<i64: 2>, scalar_prefetch = 0 : i64, scratch_operands = 0 : i64, tpu.core_type = #tpu.core_type<tc>, window_params = [{transform_indices = @transform_0, window_bounds = array<i64: 8, 32>}, {pipeline_mode = #tpu.pipeline_mode<synchronous>, transform_indices = @transform_1, window_bounds = array<i64: 1, 32>}, {pipeline_mode = #tpu.pipeline_mode<synchronous>, transform_indices = @transform_2, window_bounds = array<i64: 1, 32>}, {transform_indices = @transform_3, window_bounds = array<i64: 8, 32>}]} {
    %c0 = arith.constant 0 : index
    %c0_0 = arith.constant 0 : index
    %0 = vector.load %arg1[%c0, %c0_0] : memref<8x32xbf16, #tpu.memory_space<vmem>>, vector<8x32xbf16>
    %1 = arith.extf %0 : vector<8x32xbf16> to vector<8x32xf32>
    %cst = arith.constant dense<0.000000e+00> : vector<8xf32>
    %2 = vector.multi_reduction <add>, %1, %cst [1] : vector<8x32xf32> to vector<8xf32>
    %3 = vector.shape_cast %2 : vector<8xf32> to vector<8x1xf32>
    %cst_1 = arith.constant 3.200000e+01 : f32
    %4 = vector.broadcast %cst_1 : f32 to vector<8x1xf32>
    %5 = arith.divf %3, %4 : vector<8x1xf32>
    %6 = vector.broadcast %5 : vector<8x1xf32> to vector<8x32xf32>
    %7 = arith.subf %1, %6 : vector<8x32xf32>
    %8 = arith.mulf %7, %7 : vector<8x32xf32>
    %cst_2 = arith.constant dense<0.000000e+00> : vector<8xf32>
    %9 = vector.multi_reduction <add>, %8, %cst_2 [1] : vector<8x32xf32> to vector<8xf32>
    %10 = vector.shape_cast %9 : vector<8xf32> to vector<8x1xf32>
    %cst_3 = arith.constant 3.200000e+01 : f32
    %11 = vector.broadcast %cst_3 : f32 to vector<8x1xf32>
    %12 = arith.divf %10, %11 : vector<8x1xf32>
    %13 = vector.broadcast %5 : vector<8x1xf32> to vector<8x32xf32>
    %14 = arith.subf %1, %13 : vector<8x32xf32>
    %cst_4 = arith.constant 9.99999974E-6 : f32
    %15 = vector.broadcast %cst_4 : f32 to vector<8x1xf32>
    %16 = arith.addf %12, %15 : vector<8x1xf32>
    %17 = math.rsqrt %16 : vector<8x1xf32>
    %18 = vector.broadcast %17 : vector<8x1xf32> to vector<8x32xf32>
    %19 = arith.mulf %14, %18 : vector<8x32xf32>
    %c0_5 = arith.constant 0 : index
    %c0_6 = arith.constant 0 : index
    %20 = vector.load %arg2[%c0_5, %c0_6] : memref<1x32xf32, #tpu.memory_space<vmem>>, vector<1x32xf32>
    %21 = vector.broadcast %20 : vector<1x32xf32> to vector<8x32xf32>
    %22 = arith.mulf %19, %21 : vector<8x32xf32>
    %c0_7 = arith.constant 0 : index
    %c0_8 = arith.constant 0 : index
    %23 = vector.load %arg3[%c0_7, %c0_8] : memref<1x32xf32, #tpu.memory_space<vmem>>, vector<1x32xf32>
    %24 = vector.broadcast %23 : vector<1x32xf32> to vector<8x32xf32>
    %25 = arith.addf %22, %24 : vector<8x32xf32>
    %26 = arith.truncf %25 : vector<8x32xf32> to vector<8x32xbf16>
    %c0_9 = arith.constant 0 : index
    %c0_10 = arith.constant 0 : index
    %27 = vector.load %arg4[%c0_9, %c0_10] : memref<8x32xbf16, #tpu.memory_space<vmem>>, vector<8x32xbf16>
    tpu.vector_store %arg4[%c0_9, %c0_10], %26 {strides = array<i32>} : memref<8x32xbf16, #tpu.memory_space<vmem>>, vector<8x32xbf16>,
    return
  }
  func.func @transform_0(%arg0: i32) -> (i32, i32) {
    %c0_i32 = arith.constant 0 : i32
    %c0_i32_0 = arith.constant 0 : i32
    return %arg0, %c0_i32 : i32, i32
  }
  func.func @transform_1(%arg0: i32) -> (i32, i32) {
    %c0_i32 = arith.constant 0 : i32
    %c0_i32_0 = arith.constant 0 : i32
    %c0_i32_1 = arith.constant 0 : i32
    return %c0_i32, %c0_i32_0 : i32, i32
  }
  func.func @transform_2(%arg0: i32) -> (i32, i32) {
    %c0_i32 = arith.constant 0 : i32
    %c0_i32_0 = arith.constant 0 : i32
    %c0_i32_1 = arith.constant 0 : i32
    return %c0_i32, %c0_i32_0 : i32, i32
  }
  func.func @transform_3(%arg0: i32) -> (i32, i32) {
    %c0_i32 = arith.constant 0 : i32
    %c0_i32_0 = arith.constant 0 : i32
    return %arg0, %c0_i32 : i32, i32
  }
}

module attributes {stable_mosaic.version = 11 : i64} {
  func.func @_linear_kernel(%arg0: i32, %arg1: i32, %arg2: memref<8x32xbf16, #tpu.memory_space<vmem>>, %arg3: memref<32x32xbf16, #tpu.memory_space<vmem>>, %arg4: memref<1x32xf32, #tpu.memory_space<vmem>>, %arg5: memref<8x32xbf16, #tpu.memory_space<vmem>>) attributes {dimension_semantics = [#tpu.dimension_semantics<parallel>, #tpu.dimension_semantics<parallel>], iteration_bounds = array<i64: 2, 1>, scalar_prefetch = 0 : i64, scratch_operands = 0 : i64, tpu.core_type = #tpu.core_type<tc>, window_params = [{transform_indices = @transform_0, window_bounds = array<i64: 8, 32>}, {transform_indices = @transform_1, window_bounds = array<i64: 32, 32>}, {transform_indices = @transform_2, window_bounds = array<i64: 1, 32>}, {transform_indices = @transform_3, window_bounds = array<i64: 8, 32>}]} {
    %c0 = arith.constant 0 : index
    %c0_0 = arith.constant 0 : index
    %0 = vector.load %arg2[%c0, %c0_0] : memref<8x32xbf16, #tpu.memory_space<vmem>>, vector<8x32xbf16>
    %c0_1 = arith.constant 0 : index
    %c0_2 = arith.constant 0 : index
    %1 = vector.load %arg3[%c0_1, %c0_2] : memref<32x32xbf16, #tpu.memory_space<vmem>>, vector<32x32xbf16>
    %cst = arith.constant dense<0.000000e+00> : vector<8x32xf32>
    %2 = tpu.matmul %0, %1, %cst {dimension_numbers = #tpu.dot_dimension_numbers<[1], [0], [0], [1], [0, 0, 1, 1], [], []>} : vector<8x32xbf16>, vector<32x32xbf16>, vector<8x32xf32> -> vector<8x32xf32>
    %c0_3 = arith.constant 0 : index
    %c0_4 = arith.constant 0 : index
    %3 = vector.load %arg4[%c0_3, %c0_4] : memref<1x32xf32, #tpu.memory_space<vmem>>, vector<1x32xf32>
    %4 = vector.broadcast %3 : vector<1x32xf32> to vector<8x32xf32>
    %5 = arith.addf %2, %4 : vector<8x32xf32>
    %6 = arith.truncf %5 : vector<8x32xf32> to vector<8x32xbf16>
    %c0_5 = arith.constant 0 : index
    %c0_6 = arith.constant 0 : index
    %7 = vector.load %arg5[%c0_5, %c0_6] : memref<8x32xbf16, #tpu.memory_space<vmem>>, vector<8x32xbf16>
    tpu.vector_store %arg5[%c0_5, %c0_6], %6 {strides = array<i32>} : memref<8x32xbf16, #tpu.memory_space<vmem>>, vector<8x32xbf16>,
    return
  }
  func.func @transform_0(%arg0: i32, %arg1: i32) -> (i32, i32) {
    %c0_i32 = arith.constant 0 : i32
    %c0_i32_0 = arith.constant 0 : i32
    return %arg0, %c0_i32 : i32, i32
  }
  func.func @transform_1(%arg0: i32, %arg1: i32) -> (i32, i32) {
    %c0_i32 = arith.constant 0 : i32
    %c0_i32_0 = arith.constant 0 : i32
    return %c0_i32, %arg1 : i32, i32
  }
  func.func @transform_2(%arg0: i32, %arg1: i32) -> (i32, i32) {
    %c0_i32 = arith.constant 0 : i32
    %c0_i32_0 = arith.constant 0 : i32
    return %c0_i32, %arg1 : i32, i32
  }
  func.func @transform_3(%arg0: i32, %arg1: i32) -> (i32, i32) {
    %c0_i32 = arith.constant 0 : i32
    return %arg0, %arg1 : i32, i32
  }
}

module attributes {stable_mosaic.version = 11 : i64} {
  func.func @_self_attn_causal_kernel(%arg0: i32, %arg1: memref<1x8x96xbf16, #tpu.memory_space<vmem>>, %arg2: memref<1x8x1xi32, #tpu.memory_space<vmem>>, %arg3: memref<1x8x8xi32, #tpu.memory_space<vmem>>, %arg4: memref<1x8x32xbf16, #tpu.memory_space<vmem>>) attributes {dimension_semantics = [#tpu.dimension_semantics<parallel>], iteration_bounds = array<i64: 2>, scalar_prefetch = 0 : i64, scratch_operands = 0 : i64, tpu.core_type = #tpu.core_type<tc>, window_params = [{transform_indices = @transform_0, window_bounds = array<i64: 1, 8, 96>}, {transform_indices = @transform_1, window_bounds = array<i64: 1, 8, 1>}, {pipeline_mode = #tpu.pipeline_mode<synchronous>, transform_indices = @transform_2, window_bounds = array<i64: 1, 8, 8>}, {transform_indices = @transform_3, window_bounds = array<i64: 1, 8, 32>}]} {
    %c0 = arith.constant 0 : index
    %c0_0 = arith.constant 0 : index
    %c0_1 = arith.constant 0 : index
    %0 = vector.load %arg2[%c0, %c0_0, %c0_1] : memref<1x8x1xi32, #tpu.memory_space<vmem>>, vector<1x8x1xi32>
    %1 = vector.shape_cast %0 : vector<1x8x1xi32> to vector<8x1xi32>
    %c0_i32 = arith.constant 0 : i32
    %2 = vector.broadcast %c0_i32 : i32 to vector<8x1xi32>
    %3 = arith.cmpi ne, %1, %2 : vector<8x1xi32>
    %c0_2 = arith.constant 0 : index
    %c0_3 = arith.constant 0 : index
    %c0_4 = arith.constant 0 : index
    %4 = vector.load %arg3[%c0_2, %c0_3, %c0_4] : memref<1x8x8xi32, #tpu.memory_space<vmem>>, vector<1x8x8xi32>
    %5 = vector.shape_cast %4 : vector<1x8x8xi32> to vector<8x8xi32>
    %c0_i32_5 = arith.constant 0 : i32
    %6 = vector.broadcast %c0_i32_5 : i32 to vector<8x8xi32>
    %7 = arith.cmpi eq, %5, %6 : vector<8x8xi32>
    %8 = vector.broadcast %3 : vector<8x1xi1> to vector<8x8xi1>
    %9 = arith.andi %8, %7 : vector<8x8xi1>
    %c0_6 = arith.constant 0 : index
    %c0_7 = arith.constant 0 : index
    %c0_8 = arith.constant 0 : index
    %10 = vector.load %arg1[%c0_6, %c0_7, %c0_8] : memref<1x8x96xbf16, #tpu.memory_space<vmem>>, vector<1x8x8xbf16>
    %11 = vector.shape_cast %10 : vector<1x8x8xbf16> to vector<8x8xbf16>
    %c0_9 = arith.constant 0 : index
    %c0_10 = arith.constant 0 : index
    %c32 = arith.constant 32 : index
    %12 = vector.load %arg1[%c0_9, %c0_10, %c32] : memref<1x8x96xbf16, #tpu.memory_space<vmem>>, vector<1x8x8xbf16>
    %13 = vector.shape_cast %12 : vector<1x8x8xbf16> to vector<8x8xbf16>
    %c0_11 = arith.constant 0 : index
    %c0_12 = arith.constant 0 : index
    %c64 = arith.constant 64 : index
    %14 = vector.load %arg1[%c0_11, %c0_12, %c64] : memref<1x8x96xbf16, #tpu.memory_space<vmem>>, vector<1x8x8xbf16>
    %15 = vector.shape_cast %14 : vector<1x8x8xbf16> to vector<8x8xbf16>
    %cst = arith.constant dense<0.000000e+00> : vector<8x8xf32>
    %16 = tpu.matmul %11, %13, %cst {dimension_numbers = #tpu.dot_dimension_numbers<[1], [1], [0], [0], [0, 0, 1, 0], [], []>} : vector<8x8xbf16>, vector<8x8xbf16>, vector<8x8xf32> -> vector<8x8xf32>
    %cst_13 = arith.constant -1.000000e+30 : f32
    %17 = vector.broadcast %cst_13 : f32 to vector<8x8xf32>
    %18 = arith.select %9, %16, %17 : vector<8x8xi1>, vector<8x8xf32>
    %cst_14 = arith.constant dense<0xFF800000> : vector<8xf32>
    %19 = vector.multi_reduction <maximumf>, %18, %cst_14 [1] : vector<8x8xf32> to vector<8xf32>
    %20 = vector.shape_cast %19 : vector<8xf32> to vector<8x1xf32>
    %21 = vector.broadcast %20 : vector<8x1xf32> to vector<8x8xf32>
    %22 = arith.subf %18, %21 : vector<8x8xf32>
    %23 = math.exp %22 : vector<8x8xf32>
    %cst_15 = arith.constant dense<0.000000e+00> : vector<8xf32>
    %24 = vector.multi_reduction <add>, %23, %cst_15 [1] : vector<8x8xf32> to vector<8xf32>
    %25 = vector.shape_cast %24 : vector<8xf32> to vector<8x1xf32>
    %26 = arith.truncf %23 : vector<8x8xf32> to vector<8x8xbf16>
    %cst_16 = arith.constant dense<0.000000e+00> : vector<8x8xf32>
    %27 = tpu.matmul %26, %15, %cst_16 {dimension_numbers = #tpu.dot_dimension_numbers<[1], [0], [0], [1], [0, 0, 1, 1], [], []>} : vector<8x8xbf16>, vector<8x8xbf16>, vector<8x8xf32> -> vector<8x8xf32>
    %28 = tpu.reciprocal %25 {approx = true} : vector<8x1xf32> -> vector<8x1xf32>
    %29 = vector.broadcast %28 : vector<8x1xf32> to vector<8x8xf32>
    %30 = arith.mulf %27, %29 : vector<8x8xf32>
    %31 = arith.truncf %30 : vector<8x8xf32> to vector<8x8xbf16>
    %c0_17 = arith.constant 0 : index
    %c0_18 = arith.constant 0 : index
    %c0_19 = arith.constant 0 : index
    %32 = vector.load %arg4[%c0_17, %c0_18, %c0_19] : memref<1x8x32xbf16, #tpu.memory_space<vmem>>, vector<1x8x8xbf16>
    %33 = vector.shape_cast %32 : vector<1x8x8xbf16> to vector<8x8xbf16>
    %34 = vector.shape_cast %31 : vector<8x8xbf16> to vector<1x8x8xbf16>
    tpu.vector_store %arg4[%c0_17, %c0_18, %c0_19], %34 {strides = array<i32>} : memref<1x8x32xbf16, #tpu.memory_space<vmem>>, vector<1x8x8xbf16>,
    %c0_20 = arith.constant 0 : index
    %c0_21 = arith.constant 0 : index
    %c8 = arith.constant 8 : index
    %35 = vector.load %arg1[%c0_20, %c0_21, %c8] : memref<1x8x96xbf16, #tpu.memory_space<vmem>>, vector<1x8x8xbf16>
    %36 = vector.shape_cast %35 : vector<1x8x8xbf16> to vector<8x8xbf16>
    %c0_22 = arith.constant 0 : index
    %c0_23 = arith.constant 0 : index
    %c40 = arith.constant 40 : index
    %37 = vector.load %arg1[%c0_22, %c0_23, %c40] : memref<1x8x96xbf16, #tpu.memory_space<vmem>>, vector<1x8x8xbf16>
    %38 = vector.shape_cast %37 : vector<1x8x8xbf16> to vector<8x8xbf16>
    %c0_24 = arith.constant 0 : index
    %c0_25 = arith.constant 0 : index
    %c72 = arith.constant 72 : index
    %39 = vector.load %arg1[%c0_24, %c0_25, %c72] : memref<1x8x96xbf16, #tpu.memory_space<vmem>>, vector<1x8x8xbf16>
    %40 = vector.shape_cast %39 : vector<1x8x8xbf16> to vector<8x8xbf16>
    %cst_26 = arith.constant dense<0.000000e+00> : vector<8x8xf32>
    %41 = tpu.matmul %36, %38, %cst_26 {dimension_numbers = #tpu.dot_dimension_numbers<[1], [1], [0], [0], [0, 0, 1, 0], [], []>} : vector<8x8xbf16>, vector<8x8xbf16>, vector<8x8xf32> -> vector<8x8xf32>
    %cst_27 = arith.constant -1.000000e+30 : f32
    %42 = vector.broadcast %cst_27 : f32 to vector<8x8xf32>
    %43 = arith.select %9, %41, %42 : vector<8x8xi1>, vector<8x8xf32>
    %cst_28 = arith.constant dense<0xFF800000> : vector<8xf32>
    %44 = vector.multi_reduction <maximumf>, %43, %cst_28 [1] : vector<8x8xf32> to vector<8xf32>
    %45 = vector.shape_cast %44 : vector<8xf32> to vector<8x1xf32>
    %46 = vector.broadcast %45 : vector<8x1xf32> to vector<8x8xf32>
    %47 = arith.subf %43, %46 : vector<8x8xf32>
    %48 = math.exp %47 : vector<8x8xf32>
    %cst_29 = arith.constant dense<0.000000e+00> : vector<8xf32>
    %49 = vector.multi_reduction <add>, %48, %cst_29 [1] : vector<8x8xf32> to vector<8xf32>
    %50 = vector.shape_cast %49 : vector<8xf32> to vector<8x1xf32>
    %51 = arith.truncf %48 : vector<8x8xf32> to vector<8x8xbf16>
    %cst_30 = arith.constant dense<0.000000e+00> : vector<8x8xf32>
    %52 = tpu.matmul %51, %40, %cst_30 {dimension_numbers = #tpu.dot_dimension_numbers<[1], [0], [0], [1], [0, 0, 1, 1], [], []>} : vector<8x8xbf16>, vector<8x8xbf16>, vector<8x8xf32> -> vector<8x8xf32>
    %53 = tpu.reciprocal %50 {approx = true} : vector<8x1xf32> -> vector<8x1xf32>
    %54 = vector.broadcast %53 : vector<8x1xf32> to vector<8x8xf32>
    %55 = arith.mulf %52, %54 : vector<8x8xf32>
    %56 = arith.truncf %55 : vector<8x8xf32> to vector<8x8xbf16>
    %c0_31 = arith.constant 0 : index
    %c0_32 = arith.constant 0 : index
    %c8_33 = arith.constant 8 : index
    %57 = vector.load %arg4[%c0_31, %c0_32, %c8_33] : memref<1x8x32xbf16, #tpu.memory_space<vmem>>, vector<1x8x8xbf16>
    %58 = vector.shape_cast %57 : vector<1x8x8xbf16> to vector<8x8xbf16>
    %59 = vector.shape_cast %56 : vector<8x8xbf16> to vector<1x8x8xbf16>
    tpu.vector_store %arg4[%c0_31, %c0_32, %c8_33], %59 {strides = array<i32>} : memref<1x8x32xbf16, #tpu.memory_space<vmem>>, vector<1x8x8xbf16>,
    %c0_34 = arith.constant 0 : index
    %c0_35 = arith.constant 0 : index
    %c16 = arith.constant 16 : index
    %60 = vector.load %arg1[%c0_34, %c0_35, %c16] : memref<1x8x96xbf16, #tpu.memory_space<vmem>>, vector<1x8x8xbf16>
    %61 = vector.shape_cast %60 : vector<1x8x8xbf16> to vector<8x8xbf16>
    %c0_36 = arith.constant 0 : index
    %c0_37 = arith.constant 0 : index
    %c48 = arith.constant 48 : index
    %62 = vector.load %arg1[%c0_36, %c0_37, %c48] : memref<1x8x96xbf16, #tpu.memory_space<vmem>>, vector<1x8x8xbf16>
    %63 = vector.shape_cast %62 : vector<1x8x8xbf16> to vector<8x8xbf16>
    %c0_38 = arith.constant 0 : index
    %c0_39 = arith.constant 0 : index
    %c80 = arith.constant 80 : index
    %64 = vector.load %arg1[%c0_38, %c0_39, %c80] : memref<1x8x96xbf16, #tpu.memory_space<vmem>>, vector<1x8x8xbf16>
    %65 = vector.shape_cast %64 : vector<1x8x8xbf16> to vector<8x8xbf16>
    %cst_40 = arith.constant dense<0.000000e+00> : vector<8x8xf32>
    %66 = tpu.matmul %61, %63, %cst_40 {dimension_numbers = #tpu.dot_dimension_numbers<[1], [1], [0], [0], [0, 0, 1, 0], [], []>} : vector<8x8xbf16>, vector<8x8xbf16>, vector<8x8xf32> -> vector<8x8xf32>
    %cst_41 = arith.constant -1.000000e+30 : f32
    %67 = vector.broadcast %cst_41 : f32 to vector<8x8xf32>
    %68 = arith.select %9, %66, %67 : vector<8x8xi1>, vector<8x8xf32>
    %cst_42 = arith.constant dense<0xFF800000> : vector<8xf32>
    %69 = vector.multi_reduction <maximumf>, %68, %cst_42 [1] : vector<8x8xf32> to vector<8xf32>
    %70 = vector.shape_cast %69 : vector<8xf32> to vector<8x1xf32>
    %71 = vector.broadcast %70 : vector<8x1xf32> to vector<8x8xf32>
    %72 = arith.subf %68, %71 : vector<8x8xf32>
    %73 = math.exp %72 : vector<8x8xf32>
    %cst_43 = arith.constant dense<0.000000e+00> : vector<8xf32>
    %74 = vector.multi_reduction <add>, %73, %cst_43 [1] : vector<8x8xf32> to vector<8xf32>
    %75 = vector.shape_cast %74 : vector<8xf32> to vector<8x1xf32>
    %76 = arith.truncf %73 : vector<8x8xf32> to vector<8x8xbf16>
    %cst_44 = arith.constant dense<0.000000e+00> : vector<8x8xf32>
    %77 = tpu.matmul %76, %65, %cst_44 {dimension_numbers = #tpu.dot_dimension_numbers<[1], [0], [0], [1], [0, 0, 1, 1], [], []>} : vector<8x8xbf16>, vector<8x8xbf16>, vector<8x8xf32> -> vector<8x8xf32>
    %78 = tpu.reciprocal %75 {approx = true} : vector<8x1xf32> -> vector<8x1xf32>
    %79 = vector.broadcast %78 : vector<8x1xf32> to vector<8x8xf32>
    %80 = arith.mulf %77, %79 : vector<8x8xf32>
    %81 = arith.truncf %80 : vector<8x8xf32> to vector<8x8xbf16>
    %c0_45 = arith.constant 0 : index
    %c0_46 = arith.constant 0 : index
    %c16_47 = arith.constant 16 : index
    %82 = vector.load %arg4[%c0_45, %c0_46, %c16_47] : memref<1x8x32xbf16, #tpu.memory_space<vmem>>, vector<1x8x8xbf16>
    %83 = vector.shape_cast %82 : vector<1x8x8xbf16> to vector<8x8xbf16>
    %84 = vector.shape_cast %81 : vector<8x8xbf16> to vector<1x8x8xbf16>
    tpu.vector_store %arg4[%c0_45, %c0_46, %c16_47], %84 {strides = array<i32>} : memref<1x8x32xbf16, #tpu.memory_space<vmem>>, vector<1x8x8xbf16>,
    %c0_48 = arith.constant 0 : index
    %c0_49 = arith.constant 0 : index
    %c24 = arith.constant 24 : index
    %85 = vector.load %arg1[%c0_48, %c0_49, %c24] : memref<1x8x96xbf16, #tpu.memory_space<vmem>>, vector<1x8x8xbf16>
    %86 = vector.shape_cast %85 : vector<1x8x8xbf16> to vector<8x8xbf16>
    %c0_50 = arith.constant 0 : index
    %c0_51 = arith.constant 0 : index
    %c56 = arith.constant 56 : index
    %87 = vector.load %arg1[%c0_50, %c0_51, %c56] : memref<1x8x96xbf16, #tpu.memory_space<vmem>>, vector<1x8x8xbf16>
    %88 = vector.shape_cast %87 : vector<1x8x8xbf16> to vector<8x8xbf16>
    %c0_52 = arith.constant 0 : index
    %c0_53 = arith.constant 0 : index
    %c88 = arith.constant 88 : index
    %89 = vector.load %arg1[%c0_52, %c0_53, %c88] : memref<1x8x96xbf16, #tpu.memory_space<vmem>>, vector<1x8x8xbf16>
    %90 = vector.shape_cast %89 : vector<1x8x8xbf16> to vector<8x8xbf16>
    %cst_54 = arith.constant dense<0.000000e+00> : vector<8x8xf32>
    %91 = tpu.matmul %86, %88, %cst_54 {dimension_numbers = #tpu.dot_dimension_numbers<[1], [1], [0], [0], [0, 0, 1, 0], [], []>} : vector<8x8xbf16>, vector<8x8xbf16>, vector<8x8xf32> -> vector<8x8xf32>
    %cst_55 = arith.constant -1.000000e+30 : f32
    %92 = vector.broadcast %cst_55 : f32 to vector<8x8xf32>
    %93 = arith.select %9, %91, %92 : vector<8x8xi1>, vector<8x8xf32>
    %cst_56 = arith.constant dense<0xFF800000> : vector<8xf32>
    %94 = vector.multi_reduction <maximumf>, %93, %cst_56 [1] : vector<8x8xf32> to vector<8xf32>
    %95 = vector.shape_cast %94 : vector<8xf32> to vector<8x1xf32>
    %96 = vector.broadcast %95 : vector<8x1xf32> to vector<8x8xf32>
    %97 = arith.subf %93, %96 : vector<8x8xf32>
    %98 = math.exp %97 : vector<8x8xf32>
    %cst_57 = arith.constant dense<0.000000e+00> : vector<8xf32>
    %99 = vector.multi_reduction <add>, %98, %cst_57 [1] : vector<8x8xf32> to vector<8xf32>
    %100 = vector.shape_cast %99 : vector<8xf32> to vector<8x1xf32>
    %101 = arith.truncf %98 : vector<8x8xf32> to vector<8x8xbf16>
    %cst_58 = arith.constant dense<0.000000e+00> : vector<8x8xf32>
    %102 = tpu.matmul %101, %90, %cst_58 {dimension_numbers = #tpu.dot_dimension_numbers<[1], [0], [0], [1], [0, 0, 1, 1], [], []>} : vector<8x8xbf16>, vector<8x8xbf16>, vector<8x8xf32> -> vector<8x8xf32>
    %103 = tpu.reciprocal %100 {approx = true} : vector<8x1xf32> -> vector<8x1xf32>
    %104 = vector.broadcast %103 : vector<8x1xf32> to vector<8x8xf32>
    %105 = arith.mulf %102, %104 : vector<8x8xf32>
    %106 = arith.truncf %105 : vector<8x8xf32> to vector<8x8xbf16>
    %c0_59 = arith.constant 0 : index
    %c0_60 = arith.constant 0 : index
    %c24_61 = arith.constant 24 : index
    %107 = vector.load %arg4[%c0_59, %c0_60, %c24_61] : memref<1x8x32xbf16, #tpu.memory_space<vmem>>, vector<1x8x8xbf16>
    %108 = vector.shape_cast %107 : vector<1x8x8xbf16> to vector<8x8xbf16>
    %109 = vector.shape_cast %106 : vector<8x8xbf16> to vector<1x8x8xbf16>
    tpu.vector_store %arg4[%c0_59, %c0_60, %c24_61], %109 {strides = array<i32>} : memref<1x8x32xbf16, #tpu.memory_space<vmem>>, vector<1x8x8xbf16>,
    return
  }
  func.func @transform_0(%arg0: i32) -> (i32, i32, i32) {
    %c0_i32 = arith.constant 0 : i32
    %c0_i32_0 = arith.constant 0 : i32
    %c0_i32_1 = arith.constant 0 : i32
    return %arg0, %c0_i32, %c0_i32_0 : i32, i32, i32
  }
  func.func @transform_1(%arg0: i32) -> (i32, i32, i32) {
    %c0_i32 = arith.constant 0 : i32
    %c0_i32_0 = arith.constant 0 : i32
    %c0_i32_1 = arith.constant 0 : i32
    return %arg0, %c0_i32, %c0_i32_0 : i32, i32, i32
  }
  func.func @transform_2(%arg0: i32) -> (i32, i32, i32) {
    %c0_i32 = arith.constant 0 : i32
    %c0_i32_0 = arith.constant 0 : i32
    %c0_i32_1 = arith.constant 0 : i32
    %c0_i32_2 = arith.constant 0 : i32
    return %c0_i32, %c0_i32_0, %c0_i32_1 : i32, i32, i32
  }
  func.func @transform_3(%arg0: i32) -> (i32, i32, i32) {
    %c0_i32 = arith.constant 0 : i32
    %c0_i32_0 = arith.constant 0 : i32
    %c0_i32_1 = arith.constant 0 : i32
    return %arg0, %c0_i32, %c0_i32_0 : i32, i32, i32
  }
}

module attributes {stable_mosaic.version = 11 : i64} {
  func.func @_cross_attn_kernel(%arg0: i32, %arg1: memref<1x8x32xbf16, #tpu.memory_space<vmem>>, %arg2: memref<1x8x64xbf16, #tpu.memory_space<vmem>>, %arg3: memref<1x1x8xi32, #tpu.memory_space<vmem>>, %arg4: memref<1x8x32xbf16, #tpu.memory_space<vmem>>) attributes {dimension_semantics = [#tpu.dimension_semantics<parallel>], iteration_bounds = array<i64: 2>, scalar_prefetch = 0 : i64, scratch_operands = 0 : i64, tpu.core_type = #tpu.core_type<tc>, window_params = [{transform_indices = @transform_0, window_bounds = array<i64: 1, 8, 32>}, {transform_indices = @transform_1, window_bounds = array<i64: 1, 8, 64>}, {transform_indices = @transform_2, window_bounds = array<i64: 1, 1, 8>}, {transform_indices = @transform_3, window_bounds = array<i64: 1, 8, 32>}]} {
    %c0 = arith.constant 0 : index
    %c0_0 = arith.constant 0 : index
    %c0_1 = arith.constant 0 : index
    %0 = vector.load %arg3[%c0, %c0_0, %c0_1] : memref<1x1x8xi32, #tpu.memory_space<vmem>>, vector<1x1x8xi32>
    %1 = vector.shape_cast %0 : vector<1x1x8xi32> to vector<1x8xi32>
    %c0_i32 = arith.constant 0 : i32
    %2 = vector.broadcast %c0_i32 : i32 to vector<1x8xi32>
    %3 = arith.cmpi ne, %1, %2 : vector<1x8xi32>
    %c0_2 = arith.constant 0 : index
    %c0_3 = arith.constant 0 : index
    %c0_4 = arith.constant 0 : index
    %4 = vector.load %arg1[%c0_2, %c0_3, %c0_4] : memref<1x8x32xbf16, #tpu.memory_space<vmem>>, vector<1x8x8xbf16>
    %5 = vector.shape_cast %4 : vector<1x8x8xbf16> to vector<8x8xbf16>
    %c0_5 = arith.constant 0 : index
    %c0_6 = arith.constant 0 : index
    %c0_7 = arith.constant 0 : index
    %6 = vector.load %arg2[%c0_5, %c0_6, %c0_7] : memref<1x8x64xbf16, #tpu.memory_space<vmem>>, vector<1x8x8xbf16>
    %7 = vector.shape_cast %6 : vector<1x8x8xbf16> to vector<8x8xbf16>
    %c0_8 = arith.constant 0 : index
    %c0_9 = arith.constant 0 : index
    %c32 = arith.constant 32 : index
    %8 = vector.load %arg2[%c0_8, %c0_9, %c32] : memref<1x8x64xbf16, #tpu.memory_space<vmem>>, vector<1x8x8xbf16>
    %9 = vector.shape_cast %8 : vector<1x8x8xbf16> to vector<8x8xbf16>
    %cst = arith.constant dense<0.000000e+00> : vector<8x8xf32>
    %10 = tpu.matmul %5, %7, %cst {dimension_numbers = #tpu.dot_dimension_numbers<[1], [1], [0], [0], [0, 0, 1, 0], [], []>} : vector<8x8xbf16>, vector<8x8xbf16>, vector<8x8xf32> -> vector<8x8xf32>
    %cst_10 = arith.constant -1.000000e+30 : f32
    %11 = vector.shape_cast %3 : vector<1x8xi1> to vector<1x8xi1>
    %12 = vector.broadcast %11 : vector<1x8xi1> to vector<8x8xi1>
    %13 = vector.broadcast %cst_10 : f32 to vector<8x8xf32>
    %14 = arith.select %12, %10, %13 : vector<8x8xi1>, vector<8x8xf32>
    %cst_11 = arith.constant dense<0xFF800000> : vector<8xf32>
    %15 = vector.multi_reduction <maximumf>, %14, %cst_11 [1] : vector<8x8xf32> to vector<8xf32>
    %16 = vector.shape_cast %15 : vector<8xf32> to vector<8x1xf32>
    %17 = vector.broadcast %16 : vector<8x1xf32> to vector<8x8xf32>
    %18 = arith.subf %14, %17 : vector<8x8xf32>
    %19 = math.exp %18 : vector<8x8xf32>
    %cst_12 = arith.constant dense<0.000000e+00> : vector<8xf32>
    %20 = vector.multi_reduction <add>, %19, %cst_12 [1] : vector<8x8xf32> to vector<8xf32>
    %21 = vector.shape_cast %20 : vector<8xf32> to vector<8x1xf32>
    %22 = arith.truncf %19 : vector<8x8xf32> to vector<8x8xbf16>
    %cst_13 = arith.constant dense<0.000000e+00> : vector<8x8xf32>
    %23 = tpu.matmul %22, %9, %cst_13 {dimension_numbers = #tpu.dot_dimension_numbers<[1], [0], [0], [1], [0, 0, 1, 1], [], []>} : vector<8x8xbf16>, vector<8x8xbf16>, vector<8x8xf32> -> vector<8x8xf32>
    %24 = tpu.reciprocal %21 {approx = true} : vector<8x1xf32> -> vector<8x1xf32>
    %25 = vector.broadcast %24 : vector<8x1xf32> to vector<8x8xf32>
    %26 = arith.mulf %23, %25 : vector<8x8xf32>
    %27 = arith.truncf %26 : vector<8x8xf32> to vector<8x8xbf16>
    %c0_14 = arith.constant 0 : index
    %c0_15 = arith.constant 0 : index
    %c0_16 = arith.constant 0 : index
    %28 = vector.load %arg4[%c0_14, %c0_15, %c0_16] : memref<1x8x32xbf16, #tpu.memory_space<vmem>>, vector<1x8x8xbf16>
    %29 = vector.shape_cast %28 : vector<1x8x8xbf16> to vector<8x8xbf16>
    %30 = vector.shape_cast %27 : vector<8x8xbf16> to vector<1x8x8xbf16>
    tpu.vector_store %arg4[%c0_14, %c0_15, %c0_16], %30 {strides = array<i32>} : memref<1x8x32xbf16, #tpu.memory_space<vmem>>, vector<1x8x8xbf16>,
    %c0_17 = arith.constant 0 : index
    %c0_18 = arith.constant 0 : index
    %c8 = arith.constant 8 : index
    %31 = vector.load %arg1[%c0_17, %c0_18, %c8] : memref<1x8x32xbf16, #tpu.memory_space<vmem>>, vector<1x8x8xbf16>
    %32 = vector.shape_cast %31 : vector<1x8x8xbf16> to vector<8x8xbf16>
    %c0_19 = arith.constant 0 : index
    %c0_20 = arith.constant 0 : index
    %c8_21 = arith.constant 8 : index
    %33 = vector.load %arg2[%c0_19, %c0_20, %c8_21] : memref<1x8x64xbf16, #tpu.memory_space<vmem>>, vector<1x8x8xbf16>
    %34 = vector.shape_cast %33 : vector<1x8x8xbf16> to vector<8x8xbf16>
    %c0_22 = arith.constant 0 : index
    %c0_23 = arith.constant 0 : index
    %c40 = arith.constant 40 : index
    %35 = vector.load %arg2[%c0_22, %c0_23, %c40] : memref<1x8x64xbf16, #tpu.memory_space<vmem>>, vector<1x8x8xbf16>
    %36 = vector.shape_cast %35 : vector<1x8x8xbf16> to vector<8x8xbf16>
    %cst_24 = arith.constant dense<0.000000e+00> : vector<8x8xf32>
    %37 = tpu.matmul %32, %34, %cst_24 {dimension_numbers = #tpu.dot_dimension_numbers<[1], [1], [0], [0], [0, 0, 1, 0], [], []>} : vector<8x8xbf16>, vector<8x8xbf16>, vector<8x8xf32> -> vector<8x8xf32>
    %cst_25 = arith.constant -1.000000e+30 : f32
    %38 = vector.shape_cast %3 : vector<1x8xi1> to vector<1x8xi1>
    %39 = vector.broadcast %38 : vector<1x8xi1> to vector<8x8xi1>
    %40 = vector.broadcast %cst_25 : f32 to vector<8x8xf32>
    %41 = arith.select %39, %37, %40 : vector<8x8xi1>, vector<8x8xf32>
    %cst_26 = arith.constant dense<0xFF800000> : vector<8xf32>
    %42 = vector.multi_reduction <maximumf>, %41, %cst_26 [1] : vector<8x8xf32> to vector<8xf32>
    %43 = vector.shape_cast %42 : vector<8xf32> to vector<8x1xf32>
    %44 = vector.broadcast %43 : vector<8x1xf32> to vector<8x8xf32>
    %45 = arith.subf %41, %44 : vector<8x8xf32>
    %46 = math.exp %45 : vector<8x8xf32>
    %cst_27 = arith.constant dense<0.000000e+00> : vector<8xf32>
    %47 = vector.multi_reduction <add>, %46, %cst_27 [1] : vector<8x8xf32> to vector<8xf32>
    %48 = vector.shape_cast %47 : vector<8xf32> to vector<8x1xf32>
    %49 = arith.truncf %46 : vector<8x8xf32> to vector<8x8xbf16>
    %cst_28 = arith.constant dense<0.000000e+00> : vector<8x8xf32>
    %50 = tpu.matmul %49, %36, %cst_28 {dimension_numbers = #tpu.dot_dimension_numbers<[1], [0], [0], [1], [0, 0, 1, 1], [], []>} : vector<8x8xbf16>, vector<8x8xbf16>, vector<8x8xf32> -> vector<8x8xf32>
    %51 = tpu.reciprocal %48 {approx = true} : vector<8x1xf32> -> vector<8x1xf32>
    %52 = vector.broadcast %51 : vector<8x1xf32> to vector<8x8xf32>
    %53 = arith.mulf %50, %52 : vector<8x8xf32>
    %54 = arith.truncf %53 : vector<8x8xf32> to vector<8x8xbf16>
    %c0_29 = arith.constant 0 : index
    %c0_30 = arith.constant 0 : index
    %c8_31 = arith.constant 8 : index
    %55 = vector.load %arg4[%c0_29, %c0_30, %c8_31] : memref<1x8x32xbf16, #tpu.memory_space<vmem>>, vector<1x8x8xbf16>
    %56 = vector.shape_cast %55 : vector<1x8x8xbf16> to vector<8x8xbf16>
    %57 = vector.shape_cast %54 : vector<8x8xbf16> to vector<1x8x8xbf16>
    tpu.vector_store %arg4[%c0_29, %c0_30, %c8_31], %57 {strides = array<i32>} : memref<1x8x32xbf16, #tpu.memory_space<vmem>>, vector<1x8x8xbf16>,
    %c0_32 = arith.constant 0 : index
    %c0_33 = arith.constant 0 : index
    %c16 = arith.constant 16 : index
    %58 = vector.load %arg1[%c0_32, %c0_33, %c16] : memref<1x8x32xbf16, #tpu.memory_space<vmem>>, vector<1x8x8xbf16>
    %59 = vector.shape_cast %58 : vector<1x8x8xbf16> to vector<8x8xbf16>
    %c0_34 = arith.constant 0 : index
    %c0_35 = arith.constant 0 : index
    %c16_36 = arith.constant 16 : index
    %60 = vector.load %arg2[%c0_34, %c0_35, %c16_36] : memref<1x8x64xbf16, #tpu.memory_space<vmem>>, vector<1x8x8xbf16>
    %61 = vector.shape_cast %60 : vector<1x8x8xbf16> to vector<8x8xbf16>
    %c0_37 = arith.constant 0 : index
    %c0_38 = arith.constant 0 : index
    %c48 = arith.constant 48 : index
    %62 = vector.load %arg2[%c0_37, %c0_38, %c48] : memref<1x8x64xbf16, #tpu.memory_space<vmem>>, vector<1x8x8xbf16>
    %63 = vector.shape_cast %62 : vector<1x8x8xbf16> to vector<8x8xbf16>
    %cst_39 = arith.constant dense<0.000000e+00> : vector<8x8xf32>
    %64 = tpu.matmul %59, %61, %cst_39 {dimension_numbers = #tpu.dot_dimension_numbers<[1], [1], [0], [0], [0, 0, 1, 0], [], []>} : vector<8x8xbf16>, vector<8x8xbf16>, vector<8x8xf32> -> vector<8x8xf32>
    %cst_40 = arith.constant -1.000000e+30 : f32
    %65 = vector.shape_cast %3 : vector<1x8xi1> to vector<1x8xi1>
    %66 = vector.broadcast %65 : vector<1x8xi1> to vector<8x8xi1>
    %67 = vector.broadcast %cst_40 : f32 to vector<8x8xf32>
    %68 = arith.select %66, %64, %67 : vector<8x8xi1>, vector<8x8xf32>
    %cst_41 = arith.constant dense<0xFF800000> : vector<8xf32>
    %69 = vector.multi_reduction <maximumf>, %68, %cst_41 [1] : vector<8x8xf32> to vector<8xf32>
    %70 = vector.shape_cast %69 : vector<8xf32> to vector<8x1xf32>
    %71 = vector.broadcast %70 : vector<8x1xf32> to vector<8x8xf32>
    %72 = arith.subf %68, %71 : vector<8x8xf32>
    %73 = math.exp %72 : vector<8x8xf32>
    %cst_42 = arith.constant dense<0.000000e+00> : vector<8xf32>
    %74 = vector.multi_reduction <add>, %73, %cst_42 [1] : vector<8x8xf32> to vector<8xf32>
    %75 = vector.shape_cast %74 : vector<8xf32> to vector<8x1xf32>
    %76 = arith.truncf %73 : vector<8x8xf32> to vector<8x8xbf16>
    %cst_43 = arith.constant dense<0.000000e+00> : vector<8x8xf32>
    %77 = tpu.matmul %76, %63, %cst_43 {dimension_numbers = #tpu.dot_dimension_numbers<[1], [0], [0], [1], [0, 0, 1, 1], [], []>} : vector<8x8xbf16>, vector<8x8xbf16>, vector<8x8xf32> -> vector<8x8xf32>
    %78 = tpu.reciprocal %75 {approx = true} : vector<8x1xf32> -> vector<8x1xf32>
    %79 = vector.broadcast %78 : vector<8x1xf32> to vector<8x8xf32>
    %80 = arith.mulf %77, %79 : vector<8x8xf32>
    %81 = arith.truncf %80 : vector<8x8xf32> to vector<8x8xbf16>
    %c0_44 = arith.constant 0 : index
    %c0_45 = arith.constant 0 : index
    %c16_46 = arith.constant 16 : index
    %82 = vector.load %arg4[%c0_44, %c0_45, %c16_46] : memref<1x8x32xbf16, #tpu.memory_space<vmem>>, vector<1x8x8xbf16>
    %83 = vector.shape_cast %82 : vector<1x8x8xbf16> to vector<8x8xbf16>
    %84 = vector.shape_cast %81 : vector<8x8xbf16> to vector<1x8x8xbf16>
    tpu.vector_store %arg4[%c0_44, %c0_45, %c16_46], %84 {strides = array<i32>} : memref<1x8x32xbf16, #tpu.memory_space<vmem>>, vector<1x8x8xbf16>,
    %c0_47 = arith.constant 0 : index
    %c0_48 = arith.constant 0 : index
    %c24 = arith.constant 24 : index
    %85 = vector.load %arg1[%c0_47, %c0_48, %c24] : memref<1x8x32xbf16, #tpu.memory_space<vmem>>, vector<1x8x8xbf16>
    %86 = vector.shape_cast %85 : vector<1x8x8xbf16> to vector<8x8xbf16>
    %c0_49 = arith.constant 0 : index
    %c0_50 = arith.constant 0 : index
    %c24_51 = arith.constant 24 : index
    %87 = vector.load %arg2[%c0_49, %c0_50, %c24_51] : memref<1x8x64xbf16, #tpu.memory_space<vmem>>, vector<1x8x8xbf16>
    %88 = vector.shape_cast %87 : vector<1x8x8xbf16> to vector<8x8xbf16>
    %c0_52 = arith.constant 0 : index
    %c0_53 = arith.constant 0 : index
    %c56 = arith.constant 56 : index
    %89 = vector.load %arg2[%c0_52, %c0_53, %c56] : memref<1x8x64xbf16, #tpu.memory_space<vmem>>, vector<1x8x8xbf16>
    %90 = vector.shape_cast %89 : vector<1x8x8xbf16> to vector<8x8xbf16>
    %cst_54 = arith.constant dense<0.000000e+00> : vector<8x8xf32>
    %91 = tpu.matmul %86, %88, %cst_54 {dimension_numbers = #tpu.dot_dimension_numbers<[1], [1], [0], [0], [0, 0, 1, 0], [], []>} : vector<8x8xbf16>, vector<8x8xbf16>, vector<8x8xf32> -> vector<8x8xf32>
    %cst_55 = arith.constant -1.000000e+30 : f32
    %92 = vector.shape_cast %3 : vector<1x8xi1> to vector<1x8xi1>
    %93 = vector.broadcast %92 : vector<1x8xi1> to vector<8x8xi1>
    %94 = vector.broadcast %cst_55 : f32 to vector<8x8xf32>
    %95 = arith.select %93, %91, %94 : vector<8x8xi1>, vector<8x8xf32>
    %cst_56 = arith.constant dense<0xFF800000> : vector<8xf32>
    %96 = vector.multi_reduction <maximumf>, %95, %cst_56 [1] : vector<8x8xf32> to vector<8xf32>
    %97 = vector.shape_cast %96 : vector<8xf32> to vector<8x1xf32>
    %98 = vector.broadcast %97 : vector<8x1xf32> to vector<8x8xf32>
    %99 = arith.subf %95, %98 : vector<8x8xf32>
    %100 = math.exp %99 : vector<8x8xf32>
    %cst_57 = arith.constant dense<0.000000e+00> : vector<8xf32>
    %101 = vector.multi_reduction <add>, %100, %cst_57 [1] : vector<8x8xf32> to vector<8xf32>
    %102 = vector.shape_cast %101 : vector<8xf32> to vector<8x1xf32>
    %103 = arith.truncf %100 : vector<8x8xf32> to vector<8x8xbf16>
    %cst_58 = arith.constant dense<0.000000e+00> : vector<8x8xf32>
    %104 = tpu.matmul %103, %90, %cst_58 {dimension_numbers = #tpu.dot_dimension_numbers<[1], [0], [0], [1], [0, 0, 1, 1], [], []>} : vector<8x8xbf16>, vector<8x8xbf16>, vector<8x8xf32> -> vector<8x8xf32>
    %105 = tpu.reciprocal %102 {approx = true} : vector<8x1xf32> -> vector<8x1xf32>
    %106 = vector.broadcast %105 : vector<8x1xf32> to vector<8x8xf32>
    %107 = arith.mulf %104, %106 : vector<8x8xf32>
    %108 = arith.truncf %107 : vector<8x8xf32> to vector<8x8xbf16>
    %c0_59 = arith.constant 0 : index
    %c0_60 = arith.constant 0 : index
    %c24_61 = arith.constant 24 : index
    %109 = vector.load %arg4[%c0_59, %c0_60, %c24_61] : memref<1x8x32xbf16, #tpu.memory_space<vmem>>, vector<1x8x8xbf16>
    %110 = vector.shape_cast %109 : vector<1x8x8xbf16> to vector<8x8xbf16>
    %111 = vector.shape_cast %108 : vector<8x8xbf16> to vector<1x8x8xbf16>
    tpu.vector_store %arg4[%c0_59, %c0_60, %c24_61], %111 {strides = array<i32>} : memref<1x8x32xbf16, #tpu.memory_space<vmem>>, vector<1x8x8xbf16>,
    return
  }
  func.func @transform_0(%arg0: i32) -> (i32, i32, i32) {
    %c0_i32 = arith.constant 0 : i32
    %c0_i32_0 = arith.constant 0 : i32
    %c0_i32_1 = arith.constant 0 : i32
    return %arg0, %c0_i32, %c0_i32_0 : i32, i32, i32
  }
  func.func @transform_1(%arg0: i32) -> (i32, i32, i32) {
    %c0_i32 = arith.constant 0 : i32
    %c0_i32_0 = arith.constant 0 : i32
    %c0_i32_1 = arith.constant 0 : i32
    return %arg0, %c0_i32, %c0_i32_0 : i32, i32, i32
  }
  func.func @transform_2(%arg0: i32) -> (i32, i32, i32) {
    %c0_i32 = arith.constant 0 : i32
    %c0_i32_0 = arith.constant 0 : i32
    %c0_i32_1 = arith.constant 0 : i32
    return %arg0, %c0_i32, %c0_i32_0 : i32, i32, i32
  }
  func.func @transform_3(%arg0: i32) -> (i32, i32, i32) {
    %c0_i32 = arith.constant 0 : i32
    %c0_i32_0 = arith.constant 0 : i32
    %c0_i32_1 = arith.constant 0 : i32
    return %arg0, %c0_i32, %c0_i32_0 : i32, i32, i32
  }
}

module attributes {stable_mosaic.version = 11 : i64} {
  func.func @_linear_kernel(%arg0: i32, %arg1: i32, %arg2: memref<8x32xbf16, #tpu.memory_space<vmem>>, %arg3: memref<32x64xbf16, #tpu.memory_space<vmem>>, %arg4: memref<1x64xf32, #tpu.memory_space<vmem>>, %arg5: memref<8x64xf32, #tpu.memory_space<vmem>>) attributes {dimension_semantics = [#tpu.dimension_semantics<parallel>, #tpu.dimension_semantics<parallel>], iteration_bounds = array<i64: 1, 2>, scalar_prefetch = 0 : i64, scratch_operands = 0 : i64, tpu.core_type = #tpu.core_type<tc>, window_params = [{transform_indices = @transform_0, window_bounds = array<i64: 8, 32>}, {transform_indices = @transform_1, window_bounds = array<i64: 32, 64>}, {transform_indices = @transform_2, window_bounds = array<i64: 1, 64>}, {transform_indices = @transform_3, window_bounds = array<i64: 8, 64>}]} {
    %c0 = arith.constant 0 : index
    %c0_0 = arith.constant 0 : index
    %0 = vector.load %arg2[%c0, %c0_0] : memref<8x32xbf16, #tpu.memory_space<vmem>>, vector<8x32xbf16>
    %c0_1 = arith.constant 0 : index
    %c0_2 = arith.constant 0 : index
    %1 = vector.load %arg3[%c0_1, %c0_2] : memref<32x64xbf16, #tpu.memory_space<vmem>>, vector<32x64xbf16>
    %cst = arith.constant dense<0.000000e+00> : vector<8x64xf32>
    %2 = tpu.matmul %0, %1, %cst {dimension_numbers = #tpu.dot_dimension_numbers<[1], [0], [0], [1], [0, 0, 1, 1], [], []>} : vector<8x32xbf16>, vector<32x64xbf16>, vector<8x64xf32> -> vector<8x64xf32>
    %c0_3 = arith.constant 0 : index
    %c0_4 = arith.constant 0 : index
    %3 = vector.load %arg4[%c0_3, %c0_4] : memref<1x64xf32, #tpu.memory_space<vmem>>, vector<1x64xf32>
    %4 = vector.broadcast %3 : vector<1x64xf32> to vector<8x64xf32>
    %5 = arith.addf %2, %4 : vector<8x64xf32>
    %c0_5 = arith.constant 0 : index
    %c0_6 = arith.constant 0 : index
    %6 = vector.load %arg5[%c0_5, %c0_6] : memref<8x64xf32, #tpu.memory_space<vmem>>, vector<8x64xf32>
    tpu.vector_store %arg5[%c0_5, %c0_6], %5 {strides = array<i32>} : memref<8x64xf32, #tpu.memory_space<vmem>>, vector<8x64xf32>,
    return
  }
  func.func @transform_0(%arg0: i32, %arg1: i32) -> (i32, i32) {
    %c0_i32 = arith.constant 0 : i32
    %c0_i32_0 = arith.constant 0 : i32
    return %arg1, %c0_i32 : i32, i32
  }
  func.func @transform_1(%arg0: i32, %arg1: i32) -> (i32, i32) {
    %c0_i32 = arith.constant 0 : i32
    %c0_i32_0 = arith.constant 0 : i32
    return %c0_i32, %arg0 : i32, i32
  }
  func.func @transform_2(%arg0: i32, %arg1: i32) -> (i32, i32) {
    %c0_i32 = arith.constant 0 : i32
    %c0_i32_0 = arith.constant 0 : i32
    return %c0_i32, %arg0 : i32, i32
  }
  func.func @transform_3(%arg0: i32, %arg1: i32) -> (i32, i32) {
    %c0_i32 = arith.constant 0 : i32
    return %arg1, %arg0 : i32, i32
  }
}

</mosaic_0001>

<bundles_post_ra>
// kernel: _lambda_.29
= control target key start
LH: loop header
LB: loop body
LE: loop exit
PB: predicated region body
PF: predicated region fallthrough
CT: control target
= control target key end

     0   :  { %s521_s21 = smov 0   ;;  %s564_s0 = inlined_call_operand.vmem [shape: bf16[16,32], index: 0, kind: input, shape index: {}]   ;;  %s565_s1 = inlined_call_operand.vmem [shape: bf16[16,32], index: 1, kind: input, shape index: {}]   ;;  %s566_s2 = inlined_call_operand.vmem [shape: bf16[32,32], index: 2, kind: input, shape index: {}]   ;;  %s567_s3 = inlined_call_operand.vmem [shape: f32[1,32], index: 3, kind: input, shape index: {}]   ;;  %s568_s4 = inlined_call_operand.vmem [shape: f32[1,32], index: 4, kind: input, shape index: {}]   ;;  %s569_s5 = inlined_call_operand.vmem [shape: f32[1,32], index: 5, kind: input, shape index: {}]   ;;  %s570_s6 = inlined_call_operand.vmem [shape: bf16[16,32], index: 6, kind: output, shape index: {}]  }
   0x1 LB: > { %s435_s22 = sadd.s32 4294967295, %s482_s21   ;;  %p439_p0 = scmp.ge.s32.totalorder %s482_s21, 1  ;;  %s482_s21 = sphi %s521_s21, %s16_s21  }
   0x2   : > { %p220_p1 = scmp.lt.s32.totalorder %s482_s21, 3 }
   0x4   : > { %p221_p2 = pnand %p439_p0, %p220_p1 }
   0x5   : > { %v472_v0 = vld [vmem:[%s566_s2] sm:$0xff] (!%p221_p2)   ;;  %v484_v1 = vmov (!%p221_p2), 0.0   ;;  %v473_v2 = vld [vmem:[%s566_s2 + $0x8] sm:$0xff] (!%p221_p2)   ;;  %vm485_vm0 = vmmov (!%p221_p2), 0   ;;  %p252_p3 = scmp.lt.s32.totalorder (!%p221_p2), %s435_s22, 1  ;;  %vm284_vm1 = vcmask (!%p221_p2), 261120  }
   0x6   : > { %224 = sbr.rel (%p221_p2) target bundleno = 549 (0x225), region = 44  ;;  %454 = vmatprep.subr.bf16.mxu0 (!%p221_p2), %v484_v1  ;;  %458 = vmatprep.mubr.msk.bf16.mxu0 (!%p221_p2), %vm485_vm0, %v484_v1  ;;  %v446_v7 = vld [vmem:[%s567_s3] ss:$0 sm:$0xff] (!%p221_p2)  ;;  %vm368_vm2 = vcmask (!%p221_p2), 257024  }
   0x7   : > { %455 = vmatpush3.bf16.msra.mxu0 (!%p221_p2), %v472_v0  ;;  %v447_v23 = vld [vmem:[%s568_s4] ss:$0 sm:$0xff] (!%p221_p2) }
   0x8   : > { %456 = vmatprep.subr.bf16.mxu0 (!%p221_p2), %v484_v1  ;;  %v448_v25 = vld [vmem:[%s569_s5] ss:$0 sm:$0xff] (!%p221_p2) }
   0xb   : > { %457 = vmatpush3.bf16.msra.mxu0 (!%p221_p2), %v473_v2 }
   0xd   : > { %s572_s22 = smov (!%p252_p3, %s435_s22), 1 }
   0xe   : > { %s535_s27 = sshll.u32 %s572_s22, 2 }
   0xf   : > { %s255_s30 = scalar_lea.vmem %s564_s0, %s535_s27  ;;  %s259_s9 = scalar_lea.vmem %s565_s1, %s535_s27 }
  0x10   : > { %v267_v3 = vld [vmem:[%s255_s30] sm:$0xf]  ;;  %s263_s18 = scalar_lea.vmem %s570_s6, %s535_s27 }
  0x11   : > { %459 = vmatmul.mubr.msk.bf16.vlgmr.msra.gmra.mrb[0].mxu0 %vm284_vm1, %v267_v3  ;;  %v265_v4 = vld [vmem:[%s259_s9] sm:$0xf] }
  0x12   : > { %v266_v5 = vunpack.c.l.bf16 %v265_v4 }
  0xe4   : > { %v322_v6 = vpop.f32.mrb[0].mxu0 }
  0xe5   : > { %v328_v8 = vadd.f32 %v322_v6, %v266_v5  ;;  %v460_v9 = vpop.f32.mrb[1].mxu0 }
  0xe6   : > { %v325_v10 = vpop.f32.mrb[2].mxu0 }
  0xe7   : > { %v461_v11 = vpop.f32.mrb[3].mxu0  ;;  %v336_v12 = vadd.f32 %v446_v7, %v328_v8 }
  0xe9   : > { %v337_v13 = vsel %vm284_vm1, %v336_v12, 0.0 }
  0xea   : > { %338 = vadd.xlane.f32.xlu0 %v337_v13 }
 0x177   : > { %v339_v14 = vpop.xlane.xlu0 %338 }
 0x178   : > { %v341_v15 = vmul.f32 0.03125, %v339_v14 }
 0x17a   : > { %v342_v16 = vsub.f32 %v336_v12, %v341_v15 }
 0x17c   : > { %v343_v17 = vmul.f32 %v342_v16, %v342_v16 }
 0x17e   : > { %v344_v18 = vsel %vm284_vm1, %v343_v17, 0.0 }
 0x17f   : > { %345 = vadd.xlane.f32.xlu0 %v344_v18 }
 0x20c   : > { %v346_v19 = vpop.xlane.xlu0 %345 }
 0x20d   : > { %v347_v20 = vmul.f32 0.03125, %v346_v19 }
 0x20f   : > { %v348_v21 = vadd.f32 1e-05, %v347_v20 }
 0x211   : > { %474 = vrsqrt.f32 %v348_v21 }
 0x21b   : > { %v475_v22 = vpop.eup %474 }
 0x21c   : > { %v350_v24 = vmul.f32 %v475_v22, %v342_v16 }
 0x21e   : > { %v358_v26 = vmul.f32 %v447_v23, %v350_v24 }
 0x220   : > { %v366_v27 = vadd.f32 %v448_v25, %v358_v26 }
 0x222   : > { %v367_v28 = vpack.c.bf16 %v366_v27, %v366_v27 }
 0x224   : > { %369 = vst.msk [vmem:[%s263_s18] sm:$0xf] %vm368_vm2, %v367_v28 }
 0x225 PF: > { %s16_s21 = sadd.s32 1, %s482_s21  }
 0x226   : > { %p13_p4 = scmp.ge.s32.totalorder %s16_s21, 4  }
 0x228   :  { %15 = sbr.rel (!%p13_p4) target bundleno = 1 (0x1), region = 77 }

// kernel: _lambda_.27
= control target key start
LH: loop header
LB: loop body
LE: loop exit
PB: predicated region body
PF: predicated region fallthrough
CT: control target
= control target key end

     0   :  { %s488_s12 = smov 0   ;;  %s490_s13 = smov 0   ;;  %s530_s0 = inlined_call_operand.vmem [shape: bf16[16,32], index: 0, kind: input, shape index: {}]   ;;  %s531_s1 = inlined_call_operand.vmem [shape: bf16[32,96], index: 1, kind: input, shape index: {}]   ;;  %s532_s2 = inlined_call_operand.vmem [shape: f32[1,96], index: 2, kind: input, shape index: {}]   ;;  %s533_s3 = inlined_call_operand.vmem [shape: bf16[16,96], index: 3, kind: output, shape index: {}]  }
   0x1   :  { %s492_s14 = smov 0  }
   0x2 LB: > { %s25_s15 = sadd.s32 1, %s460_s13  ;;  %p394_p0 = scmp.ge.s32.totalorder %s464_s14, 1  ;;  %s464_s14 = sphi %s492_s14, %s13_s14   ;;  %s460_s13 = sphi %s490_s13, %s535_s13   ;;  %s456_s12 = sphi %s488_s12, %s534_s12  }
   0x3   : > { %p27_p1 = scmp.ge.s32.totalorder %s25_s15, 2  ;;  %p167_p2 = scmp.lt.s32.totalorder %s464_s14, 3 }
   0x5   : > { %s537_s15 = smov (%p27_p1, %s25_s15), 0  ;;  %p168_p3 = pnand %p394_p0, %p167_p2 }
   0x6   : > { %v440_v0 = vld [vmem:[%s531_s1] sm:$0xff] (!%p168_p3)   ;;  %v466_v1 = vmov (!%p168_p3), 0.0   ;;  %v441_v2 = vld [vmem:[%s531_s1 + $0x8] sm:$0xff] (!%p168_p3)   ;;  %vm467_vm0 = vmmov (!%p168_p3), 0   ;;  %p199_p4 = scmp.lt.s32.totalorder (!%p168_p3), %s456_s12, 1  ;;  %vm242_vm1 = vcmask (!%p168_p3), 261120  }
   0x7   : > { %171 = sbr.rel (%p168_p3) target bundleno = 235 (0xeb), region = 32  ;;  %406 = vmatprep.subr.bf16.mxu0 (!%p168_p3), %v466_v1  ;;  %410 = vmatprep.mubr.msk.bf16.mxu0 (!%p168_p3), %vm467_vm0, %v466_v1  ;;  %v397_v4 = vld [vmem:[%s532_s2] ss:$0 sm:$0xff] (!%p168_p3)  ;;  %vm287_vm2 = vcmask (!%p168_p3), 781312  }
   0x8   : > { %407 = vmatpush3.bf16.msra.mxu0 (!%p168_p3), %v440_v0 }
   0x9   : > { %408 = vmatprep.subr.bf16.mxu0 (!%p168_p3), %v466_v1 }
   0xc   : > { %409 = vmatpush3.bf16.msra.mxu0 (!%p168_p3), %v441_v2 }
   0xe   : > { %s539_s12 = smov (!%p199_p4, %s456_s12), 1 }
   0xf   : > { %s395_s20 = sshll.u32 %s539_s12, 2 }
  0x10   : > { %s202_s23 = scalar_lea.vmem %s530_s0, %s395_s20  ;;  %s216_s28 = scalar_lea.vmem %s533_s3, %s395_s20 }
  0x11   : > { %v218_v3 = vld [vmem:[%s202_s23] sm:$0xf] }
  0x12   : > { %411 = vmatmul.mubr.msk.bf16.vlgmr.msra.gmra.mrb[0].mxu0 %vm242_vm1, %v218_v3 }
  0xe5   : > { %v280_v5 = vpop.f32.mrb[0].mxu0 }
  0xe6   : > { %v281_v6 = vadd.f32 %v397_v4, %v280_v5  ;;  %v412_v7 = vpop.f32.mrb[1].mxu0 }
  0xe7   : > { %v283_v8 = vpop.f32.mrb[2].mxu0 }
  0xe8   : > { %v286_v9 = vpack.c.bf16 %v281_v6, %v281_v6  ;;  %v413_v10 = vpop.f32.mrb[3].mxu0 }
  0xea   : > { %288 = vst.msk [vmem:[%s216_s28] sm:$0xf] %vm287_vm2, %v286_v9 }
  0xeb PF: > { %s13_s14 = sadd.s32 1, %s464_s14   ;;  %s534_s12 = smov %s460_s13 }
  0xec   : > { %p10_p5 = scmp.ge.s32.totalorder %s13_s14, 4   ;;  %s535_s13 = smov %s537_s15 }
  0xee   :  { %12 = sbr.rel (!%p10_p5) target bundleno = 2 (0x2), region = 68 }

// kernel: _lambda_.28
= control target key start
LH: loop header
LB: loop body
LE: loop exit
PB: predicated region body
PF: predicated region fallthrough
CT: control target
= control target key end

     0   :  { %s890_s9 = smov 0   ;;  %s1001_s0 = inlined_call_operand.vmem [shape: bf16[2,8,96], index: 0, kind: input, shape index: {}]   ;;  %s1002_s1 = inlined_call_operand.vmem [shape: s32[2,1,8], index: 1, kind: input, shape index: {}]   ;;  %s1003_s2 = inlined_call_operand.vmem [shape: bf16[2,8,32], index: 2, kind: output, shape index: {}]  }
   0x1 LB: > { %s714_s10 = sadd.s32 4294967295, %s856_s9   ;;  %p718_p0 = scmp.ge.s32.totalorder %s856_s9, 1  ;;  %s856_s9 = sphi %s890_s9, %s12_s9  }
   0x2   : > { %p119_p1 = scmp.lt.s32.totalorder %s856_s9, 3 }
   0x4   : > { %p120_p2 = pnand %p718_p0, %p119_p1 }
   0x5   : > { %p142_p3 = scmp.lt.s32.totalorder (!%p120_p2), %s714_s10, 1  ;;  %v858_v0 = vmov (!%p120_p2), 0.0   ;;  %vm859_vm0 = vmmov (!%p120_p2), 0   ;;  %s860_s15 = smov (!%p120_p2), 96   ;;  %vm162_vm1 = vcmask (!%p120_p2), 64512   ;;  %v210_v8 = vlaneseq (!%p120_p2) }
   0x6   : > { %123 = sbr.rel (%p120_p2) target bundleno = 1244 (0x4dc), region = 28  ;;  %757 = vmatprep.subr.bf16.mxu0 (!%p120_p2), %v858_v0  ;;  %759 = vmatprep.mubr.msk.bf16.mxu0 (!%p120_p2), %vm859_vm0, %v858_v0  ;;  %s861_s16 = smov (!%p120_p2), 64   ;;  %v868_v12 = vmov (!%p120_p2), 0   ;;  %vm231_vm4 = vcmask (!%p120_p2), 1043456   ;;  %vm278_vm5 = vcmask (!%p120_p2), 60416   ;;  %vm402_vm6 = vcmask (!%p120_p2), 126016  }
   0x7   : > { %763 = vmatprep.subr.bf16.mxu1 (!%p120_p2), %v858_v0  ;;  %765 = vmatprep.mubr.msk.bf16.mxu1 (!%p120_p2), %vm859_vm0, %v858_v0  ;;  %s862_s17 = smov (!%p120_p2), 88   ;;  %s863_s18 = smov (!%p120_p2), 120   ;;  %v211_v10 = vshrl.u32 (!%p120_p2), %v210_v8, 7  ;;  %vm526_vm7 = vcmask (!%p120_p2), 191616   ;;  %vm650_vm8 = vcmask (!%p120_p2), 257216  }
   0x8   : > { %s864_s19 = smov (!%p120_p2), 80   ;;  %s865_s20 = smov (!%p120_p2), 112  }
   0x9   : > { %s866_s21 = smov (!%p120_p2), 72   ;;  %s867_s22 = smov (!%p120_p2), 104   ;;  %v212_v11 = vsub.s32 (!%p120_p2), 0, %v211_v10 }
   0xa   : > { %s869_s26 = smov (!%p120_p2), 56   ;;  %s870_s27 = smov (!%p120_p2), 48  }
   0xb   : > { %s871_s28 = smov (!%p120_p2), 40   ;;  %s872_s4 = smov (!%p120_p2), 8  }
   0xc   : > { %s873_s5 = smov (!%p120_p2), 16   ;;  %s874_s6 = smov (!%p120_p2), 24  }
   0xd   : > { %s1005_s10 = smov (!%p142_p3, %s714_s10), 1 }
   0xe   : > { %s719_s11 = sshll.u32 %s1005_s10, 2  ;;  %s148_s25 = scalar_lea.vmem %s1002_s1, %s1005_s10 }
   0xf   : > { %s145_s14 = scalar_lea.vmem %s1001_s0, %s719_s11  ;;  %v154_v9 = vld [vmem:[%s148_s25] sm:$0x1]  ;;  %s992_s3 = scalar_lea.vmem %s1003_s2, %s719_s11 }
  0x10   : > { %v156_v1 = vld [vmem:[%s145_s14] sm:$0xf]  ;;  %vm155_vm2 = vcmp.ne.s32.totalorder %v154_v9, 0 }
  0x11   : > { %v721_v2 = vcombine.low %v156_v1, %v156_v1  ;;  %v831_v5 = vld [vmem:[%s145_s14] ss:$0 sps:$4 sm:$0xff]   ;;  %v209_v13 = vsel %vm155_vm2, 1, %v868_v12 }
  0x12   : > { %v917_v6 = vld [vmem:[%s145_s14] ss:$0 sps:$4 sm:$0xff]   ;;  %v929_v14 = vrot.slane %v209_v13, %v212_v11 }
  0x13   : > { %160 = vrot.lane.b32.xlu0 %v721_v2, %s860_s15  ;;  %226 = vrot.lane.b32.xlu1 %v721_v2, %s861_s16  ;;  %v921_v7 = vld [vmem:[%s145_s14] ss:$0 sps:$4 sm:$0xff]  }
  0x14   : > { %vm214_vm3 = vcmp.eq.s32.totalorder %v929_v14, 1 }
  0x17   : > { %286 = vrot.lane.b32.xlu1 %v831_v5, %s862_s17 }
  0x1b   : > { %284 = vrot.lane.b32.xlu1 %v831_v5, %s863_s18 }
  0x1f   : > { %410 = vrot.lane.b32.xlu1 %v917_v6, %s864_s19 }
  0x23   : > { %408 = vrot.lane.b32.xlu1 %v917_v6, %s865_s20 }
  0x27   : > { %534 = vrot.lane.b32.xlu1 %v921_v7, %s866_s21 }
  0x2b   : > { %532 = vrot.lane.b32.xlu1 %v921_v7, %s867_s22 }
  0x85   : > { %v161_v3 = vpop.permute.xlu0 %160  ;;  %v227_v21 = vpop.permute.xlu1 %226 }
  0x86   : > { %v167_v4 = vsel %vm162_vm1, %v161_v3, 0  ;;  %v233_v22 = vsel %vm231_vm4, %v227_v21, 0 }
  0x87   : > { %758 = vmatpush3.bf16.xpose.msra.mxu0 %v167_v4  ;;  %764 = vmatpush3.bf16.msra.mxu1 %v233_v22 }
  0x88   : > { %775 = vmatprep.subr.bf16.mxu0 %v858_v0  ;;  %769 = vmatprep.subr.bf16.mxu1 %v858_v0 }
  0x89   : > { %v287_v26 = vpop.permute.xlu1 %286 }
  0x8a   : > { %v292_v29 = vsel %vm162_vm1, %v287_v26, 0 }
  0x8d   : > { %v285_v27 = vpop.permute.xlu1 %284 }
  0x8e   : > { %760 = vmatmul.mubr.msk.bf16.vlgmr.msra.gmra.mrb[0].mxu0 %vm162_vm1, %v156_v1 }
  0x8f   : > { %777 = vmatprep.mubr.msk.bf16.mxu0 %vm859_vm0, %v858_v0 }
  0x91   : > { %v411_v31 = vpop.permute.xlu1 %410 }
  0x92   : > { %v416_v33 = vsel %vm162_vm1, %v411_v31, 0 }
  0x95   : > { %v409_v32 = vpop.permute.xlu1 %408 }
  0x99   : > { %v535_v34 = vpop.permute.xlu1 %534 }
  0x9a   : > { %v540_v35 = vsel %vm162_vm1, %v535_v34, 0 }
  0x9d   : > { %v533_v36 = vpop.permute.xlu1 %532 }
 0x161   : > { %v203_v15 = vpop.f32.mrb[0].mxu0 }
 0x162   : > { %v215_v16 = vsel %vm214_vm3, %v203_v15, -1e+30  ;;  %v761_v17 = vpop.f32.mrb[1].mxu0 }
 0x163   : > { %v206_v18 = vpop.f32.mrb[2].mxu0  ;;  %v216_v19 = vsel %vm162_vm1, %v215_v16, -inf }
 0x164   : > { %217 = vmax.xlane.f32.xlu0 %v216_v19  ;;  %v762_v20 = vpop.f32.mrb[3].mxu0 }
 0x17a   : > { %345 = vrot.lane.b32.xlu0 %v831_v5, %s869_s26 }
 0x1f1   : > { %v218_v23 = vpop.xlane.xlu0 %217 }
 0x1f2   : > { %v219_v24 = vsub.f32 %v215_v16, %v218_v23 }
 0x1f4   : > { %v220_v25 = vmul.f32 1.442695, %v219_v24 }
 0x1f5   : > { %v346_v37 = vpop.permute.xlu0 %345 }
 0x1f6   : > { %834 = vpow2.f32 %v220_v25  ;;  %v351_v38 = vsel %vm231_vm4, %v346_v37, 0 }
 0x1f7   : > { %776 = vmatpush3.bf16.msra.mxu0 %v351_v38 }
 0x1f8   : > { %787 = vmatprep.subr.bf16.mxu0 %v858_v0 }
 0x200   : > { %v937_v28 = vpop.eup %834 }
 0x201   : > { %v225_v30 = vpack.c.bf16 %v937_v28, %v937_v28  ;;  %v222_v20 = vsel %vm162_vm1, %v937_v28, 0.0 }
 0x203   : > { %766 = vmatmul.mubr.msk.bf16.vlgmr.msra.gmra.mrb[0].mxu1 %vm162_vm1, %v225_v30 }
 0x204   : > { %770 = vmatpush3.bf16.xpose.msra.mxu1 %v292_v29  ;;  %771 = vmatprep.mubr.msk.bf16.mxu1 %vm859_vm0, %v858_v0 }
 0x205   : > { %781 = vmatprep.subr.bf16.mxu1 %v858_v0 }
 0x20b   : > { %772 = vmatmul.mubr.msk.bf16.vlgmr.msra.gmra.mrb[4].mxu1 %vm162_vm1, %v285_v27 }
 0x20c   : > { %782 = vmatpush3.bf16.xpose.msra.mxu1 %v416_v33  ;;  %783 = vmatprep.mubr.msk.bf16.mxu1 %vm859_vm0, %v858_v0 }
 0x20d   : > { %793 = vmatprep.subr.bf16.mxu1 %v858_v0 }
 0x213   : > { %784 = vmatmul.mubr.msk.bf16.vlgmr.msra.gmra.mrb[8].mxu1 %vm162_vm1, %v409_v32 }
 0x214   : > { %794 = vmatpush3.bf16.xpose.msra.mxu1 %v540_v35  ;;  %795 = vmatprep.mubr.msk.bf16.mxu1 %vm859_vm0, %v858_v0 }
 0x21b   : > { %796 = vmatmul.mubr.msk.bf16.vlgmr.msra.gmra.mrb[12].mxu1 %vm162_vm1, %v533_v36 }
 0x2d6   : > { %v958_v39 = vpop.f32.mrb[0].mxu1 }
 0x2d7   : > { %v767_v40 = vpop.f32.mrb[1].mxu1 }
 0x2d8   : > { %v272_v41 = vpop.f32.mrb[2].mxu1 }
 0x2d9   : > { %v768_v42 = vpop.f32.mrb[3].mxu1 }
 0x2de   : > { %v328_v43 = vpop.f32.mrb[4].mxu1 }
 0x2df   : > { %v334_v44 = vsel %vm214_vm3, %v328_v43, -1e+30  ;;  %v773_v45 = vpop.f32.mrb[5].mxu1 }
 0x2e0   : > { %v331_v46 = vpop.f32.mrb[6].mxu1  ;;  %v335_v47 = vsel %vm162_vm1, %v334_v44, -inf }
 0x2e1   : > { %336 = vmax.xlane.f32.xlu1 %v335_v47  ;;  %v774_v48 = vpop.f32.mrb[7].mxu1 }
 0x2e6   : > { %v452_v49 = vpop.f32.mrb[8].mxu1 }
 0x2e7   : > { %v458_v50 = vsel %vm214_vm3, %v452_v49, -1e+30  ;;  %v785_v51 = vpop.f32.mrb[9].mxu1 }
 0x2e8   : > { %v455_v52 = vpop.f32.mrb[10].mxu1  ;;  %v459_v53 = vsel %vm162_vm1, %v458_v50, -inf }
 0x2e9   : > { %460 = vmax.xlane.f32.xlu0 %v459_v53  ;;  %v786_v54 = vpop.f32.mrb[11].mxu1 }
 0x2ee   : > { %v576_v55 = vpop.f32.mrb[12].mxu1 }
 0x2ef   : > { %v582_v56 = vsel %vm214_vm3, %v576_v55, -1e+30  ;;  %v797_v57 = vpop.f32.mrb[13].mxu1 }
 0x2f0   : > { %v579_v58 = vpop.f32.mrb[14].mxu1  ;;  %v583_v59 = vsel %vm162_vm1, %v582_v56, -inf }
 0x2f1   : > { %584 = vmax.xlane.f32.xlu0 %v583_v59  ;;  %v798_v60 = vpop.f32.mrb[15].mxu1 }
 0x2f2   : > { %469 = vrot.lane.b32.xlu1 %v917_v6, %s870_s27 }
 0x307   : > { %593 = vrot.lane.b32.xlu0 %v921_v7, %s871_s28 }
 0x36e   : > { %v337_v61 = vpop.xlane.xlu1 %336 }
 0x36f   : > { %v338_v62 = vsub.f32 %v334_v44, %v337_v61 }
 0x371   : > { %v339_v63 = vmul.f32 1.442695, %v338_v62 }
 0x372   : > { %v470_v4 = vpop.permute.xlu1 %469 }
 0x373   : > { %836 = vpow2.f32 %v339_v63  ;;  %v475_v8 = vsel %vm231_vm4, %v470_v4, 0 }
 0x376   : > { %v461_v1 = vpop.xlane.xlu0 %460 }
 0x377   : > { %v462_v2 = vsub.f32 %v458_v50, %v461_v1 }
 0x379   : > { %v463_v3 = vmul.f32 1.442695, %v462_v2 }
 0x37b   : > { %838 = vpow2.f32 %v463_v3 }
 0x37d   : > { %v837_v5 = vpop.eup %836 }
 0x37e   : > { %v585_v9 = vpop.xlane.xlu0 %584  ;;  %v341_v10 = vsel %vm162_vm1, %v837_v5, 0.0  ;;  %v344_v11 = vpack.c.bf16 %v837_v5, %v837_v5 }
 0x37f   : > { %v586_v6 = vsub.f32 %v582_v56, %v585_v9  ;;  %342 = vadd.xlane.f32.xlu0 %v341_v10 }
 0x380   : > { %778 = vmatmul.mubr.msk.bf16.vlgmr.msra.gmra.mrb[4].mxu0 %vm162_vm1, %v344_v11 }
 0x381   : > { %v587_v7 = vmul.f32 1.442695, %v586_v6  ;;  %788 = vmatpush3.bf16.msra.mxu0 %v475_v8  ;;  %789 = vmatprep.mubr.msk.bf16.mxu0 %vm859_vm0, %v858_v0 }
 0x382   : > { %799 = vmatprep.subr.bf16.mxu0 %v858_v0  ;;  %v594_v12 = vpop.permute.xlu0 %593 }
 0x383   : > { %840 = vpow2.f32 %v587_v7  ;;  %v599_v14 = vsel %vm231_vm4, %v594_v12, 0 }
 0x385   : > { %v839_v13 = vpop.eup %838 }
 0x386   : > { %v465_v15 = vsel %vm162_vm1, %v839_v13, 0.0  ;;  %v468_v16 = vpack.c.bf16 %v839_v13, %v839_v13 }
 0x387   : > { %466 = vadd.xlane.f32.xlu1 %v465_v15 }
 0x388   : > { %790 = vmatmul.mubr.msk.bf16.vlgmr.msra.gmra.mrb[8].mxu0 %vm162_vm1, %v468_v16 }
 0x389   : > { %800 = vmatpush3.bf16.msra.mxu0 %v599_v14  ;;  %801 = vmatprep.mubr.msk.bf16.mxu0 %vm859_vm0, %v858_v0 }
 0x38d   : > { %v841_v17 = vpop.eup %840 }
 0x38e   : > { %v589_v18 = vsel %vm162_vm1, %v841_v17, 0.0  ;;  %v592_v19 = vpack.c.bf16 %v841_v17, %v841_v17 }
 0x38f   : > { %590 = vadd.xlane.f32.xlu0 %v589_v18 }
 0x390   : > { %802 = vmatmul.mubr.msk.bf16.vlgmr.msra.gmra.mrb[12].mxu0 %vm162_vm1, %v592_v19 }
 0x393   : > { %223 = vadd.xlane.f32.xlu0 %v222_v20 }
 0x40c   : > { %v343_v21 = vpop.xlane.xlu0 %342 }
 0x414   : > { %v467_v26 = vpop.xlane.xlu1 %466 }
 0x41c   : > { %v591_v22 = vpop.xlane.xlu0 %590 }
 0x420   : > { %v224_v23 = vpop.xlane.xlu0 %223 }
 0x421   : > { %842 = vrcp.f32 %v224_v23 }
 0x422   : > { %844 = vrcp.f32 %v343_v21 }
 0x423   : > { %846 = vrcp.f32 %v467_v26 }
 0x424   : > { %848 = vrcp.f32 %v591_v22 }
 0x42b   : > { %v843_v24 = vpop.eup %842 }
 0x42c   : > { %v276_v25 = vmul.f32 %v843_v24, %v958_v39  ;;  %v845_v27 = vpop.eup %844 }
 0x42d   : > { %v847_v34 = vpop.eup %846 }
 0x42e   : > { %v277_v0 = vpack.c.bf16 %v276_v25, %v276_v25  ;;  %v849_v41 = vpop.eup %848 }
 0x430   : > { %279 = vst.msk [vmem:[%s992_s3] sm:$0xf] %vm278_vm5, %v277_v0 }
 0x453   : > { %v387_v28 = vpop.f32.mrb[4].mxu0 }
 0x454   : > { %v394_v29 = vmul.f32 %v845_v27, %v387_v28  ;;  %v779_v30 = vpop.f32.mrb[5].mxu0 }
 0x455   : > { %v390_v31 = vpop.f32.mrb[6].mxu0 }
 0x456   : > { %v738_v32 = vpack.c.bf16 %v394_v29, %v394_v29  ;;  %v780_v33 = vpop.f32.mrb[7].mxu0 }
 0x458   : > { %399 = vrot.lane.b32.xlu0 %v738_v32, %s872_s4 }
 0x45b   : > { %v511_v35 = vpop.f32.mrb[8].mxu0 }
 0x45c   : > { %v518_v36 = vmul.f32 %v847_v34, %v511_v35  ;;  %v791_v37 = vpop.f32.mrb[9].mxu0 }
 0x45d   : > { %v514_v38 = vpop.f32.mrb[10].mxu0 }
 0x45e   : > { %v739_v39 = vpack.c.bf16 %v518_v36, %v518_v36  ;;  %v792_v40 = vpop.f32.mrb[11].mxu0 }
 0x460   : > { %523 = vrot.lane.b32.xlu1 %v739_v39, %s873_s5 }
 0x463   : > { %v635_v42 = vpop.f32.mrb[12].mxu0 }
 0x464   : > { %v642_v43 = vmul.f32 %v849_v41, %v635_v42  ;;  %v803_v44 = vpop.f32.mrb[13].mxu0 }
 0x465   : > { %v638_v45 = vpop.f32.mrb[14].mxu0 }
 0x466   : > { %v740_v46 = vpack.c.bf16 %v642_v43, %v642_v43  ;;  %v804_v47 = vpop.f32.mrb[15].mxu0 }
 0x468   : > { %647 = vrot.lane.b32.xlu0 %v740_v46, %s874_s6 }
 0x4ca   : > { %v400_v48 = vpop.permute.xlu0 %399 }
 0x4cb   : > { %403 = vst.msk [vmem:[%s992_s3] sm:$0xf] %vm402_vm6, %v400_v48 }
 0x4d2   : > { %v524_v49 = vpop.permute.xlu1 %523 }
 0x4d3   : > { %527 = vst.msk [vmem:[%s992_s3] sm:$0xf] %vm526_vm7, %v524_v49 }
 0x4da   : > { %v648_v50 = vpop.permute.xlu0 %647 }
 0x4db   : > { %651 = vst.msk [vmem:[%s992_s3] sm:$0xf] %vm650_vm8, %v648_v50 }
 0x4dc PF: > { %s12_s9 = sadd.s32 1, %s856_s9  }
 0x4dd   : > { %p9_p4 = scmp.ge.s32.totalorder %s12_s9, 4  }
 0x4df   :  { %11 = sbr.rel (!%p9_p4) target bundleno = 1 (0x1), region = 61 }

// kernel: _lambda_.30
= control target key start
LH: loop header
LB: loop body
LE: loop exit
PB: predicated region body
PF: predicated region fallthrough
CT: control target
= control target key end

     0   :  { %s799_s24 = smov 0   ;;  %s801_s25 = smov 0   ;;  %s874_s0 = inlined_call_operand.vmem [shape: bf16[16,32], index: 0, kind: input, shape index: {}]   ;;  %s875_s1 = inlined_call_operand.vmem [shape: bf16[32,64], index: 1, kind: input, shape index: {}]   ;;  %s876_s2 = inlined_call_operand.vmem [shape: f32[1,64], index: 2, kind: input, shape index: {}]   ;;  %s877_s3 = inlined_call_operand.vmem [shape: bf16[64,32], index: 3, kind: input, shape index: {}]   ;;  %s878_s4 = inlined_call_operand.vmem [shape: f32[1,32], index: 4, kind: input, shape index: {}]   ;;  %s879_s5 = inlined_call_operand.vmem [shape: f32[1,32], index: 5, kind: input, shape index: {}]   ;;  %s880_s6 = inlined_call_operand.vmem [shape: f32[1,32], index: 6, kind: input, shape index: {}]   ;;  %s881_s7 = inlined_call_operand.vmem [shape: bf16[16,32], index: 7, kind: output, shape index: {}]  }
   0x1   :  { %s803_s26 = smov 0  }
   0x2 LB: > { %s29_s27 = sadd.s32 1, %s751_s25  ;;  %p654_p0 = scmp.ge.s32.totalorder %s755_s26, 1  ;;  %s755_s26 = sphi %s803_s26, %s17_s26   ;;  %s751_s25 = sphi %s801_s25, %s883_s25   ;;  %s747_s24 = sphi %s799_s24, %s882_s24  }
   0x3   : > { %p31_p1 = scmp.ge.s32.totalorder %s29_s27, 2  ;;  %p276_p2 = scmp.lt.s32.totalorder %s755_s26, 3 }
   0x5   : > { %s885_s27 = smov (%p31_p1, %s29_s27), 0  ;;  %p277_p3 = pnand %p654_p0, %p276_p2 }
   0x6   : > { %v725_v0 = vld [vmem:[%s875_s1] sm:$0xff] (!%p277_p3)   ;;  %v757_v1 = vmov (!%p277_p3), 0.0   ;;  %v726_v2 = vld [vmem:[%s875_s1 + $0x8] sm:$0xff] (!%p277_p3)   ;;  %vm758_vm0 = vmmov (!%p277_p3), 0   ;;  %p318_p4 = scmp.lt.s32.totalorder (!%p277_p3), %s747_s24, 1  ;;  %vm344_vm1 = vcmask (!%p277_p3), 261120  }
   0x7   : > { %280 = sbr.rel (%p277_p3) target bundleno = 778 (0x30a), region = 48  ;;  %679 = vmatprep.subr.bf16.mxu0 (!%p277_p3), %v757_v1  ;;  %687 = vmatprep.subr.bf16.mxu1 (!%p277_p3), %v757_v1  ;;  %345 = vst.msk [vmem:[#allocation2] sm:$0xff] (!%p277_p3), %vm344_vm1, %v757_v1  ;;  %v727_v3 = vld [vmem:[%s877_s3] sm:$0xff] (!%p277_p3)   ;;  %v728_v4 = vld [vmem:[%s877_s3 + $0x8] sm:$0xff] (!%p277_p3)   ;;  %v729_v6 = vld [vmem:[%s877_s3 + $0x10] sm:$0xff] (!%p277_p3)   ;;  %vm449_vm2 = vcmask (!%p277_p3), 523264  }
   0x8   : > { %680 = vmatpush3.bf16.msra.mxu0 (!%p277_p3), %v725_v0  ;;  %683 = vmatprep.mubr.msk.bf16.mxu0 (!%p277_p3), %vm758_vm0, %v757_v1  ;;  %v730_v7 = vld [vmem:[%s877_s3 + $0x18] sm:$0xff] (!%p277_p3)   ;;  %v657_v8 = vld [vmem:[%s876_s2] ss:$0 sm:$0xff] (!%p277_p3)  ;;  %vm541_vm3 = vcmask (!%p277_p3), 257024  }
   0x9   : > { %681 = vmatprep.subr.bf16.mxu0 (!%p277_p3), %v757_v1  ;;  %695 = vmatprep.mubr.msk.bf16.mxu1 (!%p277_p3), %vm758_vm0, %v757_v1  ;;  %v666_v25 = vld [vmem:[%s878_s4] ss:$0 sm:$0xff] (!%p277_p3) }
   0xa   : > { %688 = vmatpush3.bf16.msra.mxu1 (!%p277_p3), %v727_v3  ;;  %v667_v38 = vld [vmem:[%s879_s5] ss:$0 sm:$0xff] (!%p277_p3) }
   0xb   : > { %689 = vmatprep.subr.bf16.mxu1 (!%p277_p3), %v757_v1  ;;  %v668_v40 = vld [vmem:[%s880_s6] ss:$0 sm:$0xff] (!%p277_p3) }
   0xc   : > { %682 = vmatpush3.bf16.msra.mxu0 (!%p277_p3), %v726_v2 }
   0xe   : > { %s887_s24 = smov (!%p318_p4, %s747_s24), 1  ;;  %690 = vmatpush3.bf16.msra.mxu1 %v728_v4  ;;  %v415_v16 = vld [vmem:[#allocation2] sm:$0xff] }
   0xf   : > { %s655_s13 = sshll.u32 %s887_s24, 2  ;;  %691 = vmatprep.subr.bf16.mxu1 %v757_v1 }
  0x10   : > { %s321_s16 = scalar_lea.vmem %s874_s0, %s655_s13  ;;  %s338_s12 = scalar_lea.vmem %s881_s7, %s655_s13 }
  0x11   : > { %v346_v5 = vld [vmem:[%s321_s16] sm:$0xf] }
  0x12   : > { %684 = vmatmul.mubr.msk.bf16.vlgmr.msra.gmra.mrb[0].mxu0 %vm344_vm1, %v346_v5  ;;  %692 = vmatpush3.bf16.msra.mxu1 %v729_v6  ;;  %v498_v22 = vld [vmem:[%s321_s16] sm:$0xf] }
  0x13   : > { %693 = vmatprep.subr.bf16.mxu1 %v757_v1  ;;  %v499_v23 = vunpack.c.l.bf16 %v498_v22 }
  0x16   : > { %694 = vmatpush3.bf16.msra.mxu1 %v730_v7 }
  0xe5   : > { %v408_v9 = vpop.f32.mrb[0].mxu0 }
  0xe6   : > { %v409_v10 = vadd.f32 %v657_v8, %v408_v9  ;;  %v685_v11 = vpop.f32.mrb[1].mxu0 }
  0xe7   : > { %v411_v12 = vpop.f32.mrb[2].mxu0 }
  0xe8   : > { %v414_v13 = vmax.f32 %v409_v10, 0.0  ;;  %v686_v14 = vpop.f32.mrb[3].mxu0 }
  0xea   : > { %v416_v15 = vpack.c.bf16 %v414_v13, %v414_v13 }
  0xec   : > { %696 = vmatmul.mubr.msk.bf16.vlgmr.msra.gmra.mrb[0].mxu1 %vm449_vm2, %v416_v15 }
 0x1bf   : > { %v487_v17 = vpop.f32.mrb[0].mxu1 }
 0x1c0   : > { %v493_v18 = vadd.f32 %v487_v17, %v415_v16  ;;  %v697_v19 = vpop.f32.mrb[1].mxu1 }
 0x1c1   : > { %v490_v20 = vpop.f32.mrb[2].mxu1 }
 0x1c2   : > { %494 = vst.msk [vmem:[#allocation2] sm:$0xff] %vm344_vm1, %v493_v18  ;;  %v698_v21 = vpop.f32.mrb[3].mxu1 }
 0x1c9   : > { %v500_v24 = vld [vmem:[#allocation2] sm:$0xff] }
 0x1ca   : > { %v501_v26 = vadd.f32 %v500_v24, %v499_v23 }
 0x1cc   : > { %v509_v27 = vadd.f32 %v666_v25, %v501_v26 }
 0x1ce   : > { %v510_v28 = vsel %vm344_vm1, %v509_v27, 0.0 }
 0x1cf   : > { %511 = vadd.xlane.f32.xlu0 %v510_v28 }
 0x25c   : > { %v512_v29 = vpop.xlane.xlu0 %511 }
 0x25d   : > { %v514_v30 = vmul.f32 0.03125, %v512_v29 }
 0x25f   : > { %v515_v31 = vsub.f32 %v509_v27, %v514_v30 }
 0x261   : > { %v516_v32 = vmul.f32 %v515_v31, %v515_v31 }
 0x263   : > { %v517_v33 = vsel %vm344_vm1, %v516_v32, 0.0 }
 0x264   : > { %518 = vadd.xlane.f32.xlu0 %v517_v33 }
 0x2f1   : > { %v519_v34 = vpop.xlane.xlu0 %518 }
 0x2f2   : > { %v520_v35 = vmul.f32 0.03125, %v519_v34 }
 0x2f4   : > { %v521_v36 = vadd.f32 1e-05, %v520_v35 }
 0x2f6   : > { %731 = vrsqrt.f32 %v521_v36 }
 0x300   : > { %v732_v37 = vpop.eup %731 }
 0x301   : > { %v523_v39 = vmul.f32 %v732_v37, %v515_v31 }
 0x303   : > { %v531_v41 = vmul.f32 %v667_v38, %v523_v39 }
 0x305   : > { %v539_v42 = vadd.f32 %v668_v40, %v531_v41 }
 0x307   : > { %v540_v43 = vpack.c.bf16 %v539_v42, %v539_v42 }
 0x309   : > { %542 = vst.msk [vmem:[%s338_s12] sm:$0xf] %vm541_vm3, %v540_v43 }
 0x30a PF: > { %s17_s26 = sadd.s32 1, %s755_s26   ;;  %s882_s24 = smov %s751_s25 }
 0x30b   : > { %p14_p5 = scmp.ge.s32.totalorder %s17_s26, 4   ;;  %s883_s25 = smov %s885_s27 }
 0x30d   :  { %16 = sbr.rel (!%p14_p5) target bundleno = 2 (0x2), region = 95 }

// kernel: _lambda_.40
= control target key start
LH: loop header
LB: loop body
LE: loop exit
PB: predicated region body
PF: predicated region fallthrough
CT: control target
= control target key end

     0   :  { %s488_s12 = smov 0   ;;  %s490_s13 = smov 0   ;;  %s530_s0 = inlined_call_operand.vmem [shape: bf16[16,32], index: 0, kind: input, shape index: {}]   ;;  %s531_s1 = inlined_call_operand.vmem [shape: bf16[32,64], index: 1, kind: input, shape index: {}]   ;;  %s532_s2 = inlined_call_operand.vmem [shape: f32[1,64], index: 2, kind: input, shape index: {}]   ;;  %s533_s3 = inlined_call_operand.vmem [shape: bf16[16,64], index: 3, kind: output, shape index: {}]  }
   0x1   :  { %s492_s14 = smov 0  }
   0x2 LB: > { %s25_s15 = sadd.s32 1, %s460_s13  ;;  %p394_p0 = scmp.ge.s32.totalorder %s464_s14, 1  ;;  %s464_s14 = sphi %s492_s14, %s13_s14   ;;  %s460_s13 = sphi %s490_s13, %s535_s13   ;;  %s456_s12 = sphi %s488_s12, %s534_s12  }
   0x3   : > { %p27_p1 = scmp.ge.s32.totalorder %s25_s15, 2  ;;  %p167_p2 = scmp.lt.s32.totalorder %s464_s14, 3 }
   0x5   : > { %s537_s15 = smov (%p27_p1, %s25_s15), 0  ;;  %p168_p3 = pnand %p394_p0, %p167_p2 }
   0x6   : > { %v440_v0 = vld [vmem:[%s531_s1] sm:$0xff] (!%p168_p3)   ;;  %v466_v1 = vmov (!%p168_p3), 0.0   ;;  %v441_v2 = vld [vmem:[%s531_s1 + $0x8] sm:$0xff] (!%p168_p3)   ;;  %vm467_vm0 = vmmov (!%p168_p3), 0   ;;  %p199_p4 = scmp.lt.s32.totalorder (!%p168_p3), %s456_s12, 1  ;;  %vm242_vm1 = vcmask (!%p168_p3), 261120  }
   0x7   : > { %171 = sbr.rel (%p168_p3) target bundleno = 235 (0xeb), region = 32  ;;  %406 = vmatprep.subr.bf16.mxu0 (!%p168_p3), %v466_v1  ;;  %410 = vmatprep.mubr.msk.bf16.mxu0 (!%p168_p3), %vm467_vm0, %v466_v1  ;;  %v397_v4 = vld [vmem:[%s532_s2] ss:$0 sm:$0xff] (!%p168_p3)  ;;  %vm287_vm2 = vcmask (!%p168_p3), 519168  }
   0x8   : > { %407 = vmatpush3.bf16.msra.mxu0 (!%p168_p3), %v440_v0 }
   0x9   : > { %408 = vmatprep.subr.bf16.mxu0 (!%p168_p3), %v466_v1 }
   0xc   : > { %409 = vmatpush3.bf16.msra.mxu0 (!%p168_p3), %v441_v2 }
   0xe   : > { %s539_s12 = smov (!%p199_p4, %s456_s12), 1 }
   0xf   : > { %s395_s20 = sshll.u32 %s539_s12, 2 }
  0x10   : > { %s202_s23 = scalar_lea.vmem %s530_s0, %s395_s20  ;;  %s216_s28 = scalar_lea.vmem %s533_s3, %s395_s20 }
  0x11   : > { %v218_v3 = vld [vmem:[%s202_s23] sm:$0xf] }
  0x12   : > { %411 = vmatmul.mubr.msk.bf16.vlgmr.msra.gmra.mrb[0].mxu0 %vm242_vm1, %v218_v3 }
  0xe5   : > { %v280_v5 = vpop.f32.mrb[0].mxu0 }
  0xe6   : > { %v281_v6 = vadd.f32 %v397_v4, %v280_v5  ;;  %v412_v7 = vpop.f32.mrb[1].mxu0 }
  0xe7   : > { %v283_v8 = vpop.f32.mrb[2].mxu0 }
  0xe8   : > { %v286_v9 = vpack.c.bf16 %v281_v6, %v281_v6  ;;  %v413_v10 = vpop.f32.mrb[3].mxu0 }
  0xea   : > { %288 = vst.msk [vmem:[%s216_s28] sm:$0xf] %vm287_vm2, %v286_v9 }
  0xeb PF: > { %s13_s14 = sadd.s32 1, %s464_s14   ;;  %s534_s12 = smov %s460_s13 }
  0xec   : > { %p10_p5 = scmp.ge.s32.totalorder %s13_s14, 4   ;;  %s535_s13 = smov %s537_s15 }
  0xee   :  { %12 = sbr.rel (!%p10_p5) target bundleno = 2 (0x2), region = 68 }

// kernel: _lambda_.35
= control target key start
LH: loop header
LB: loop body
LE: loop exit
PB: predicated region body
PF: predicated region fallthrough
CT: control target
= control target key end

     0   :  { %s304_s12 = smov 0   ;;  %s327_s0 = inlined_call_operand.vmem [shape: bf16[16,32], index: 0, kind: input, shape index: {}]   ;;  %s328_s1 = inlined_call_operand.vmem [shape: f32[1,32], index: 1, kind: input, shape index: {}]   ;;  %s329_s2 = inlined_call_operand.vmem [shape: f32[1,32], index: 2, kind: input, shape index: {}]   ;;  %s330_s3 = inlined_call_operand.vmem [shape: bf16[16,32], index: 3, kind: output, shape index: {}]  }
   0x1 LB: > { %s255_s13 = sadd.s32 4294967295, %s282_s12   ;;  %p259_p0 = scmp.ge.s32.totalorder %s282_s12, 1  ;;  %s282_s12 = sphi %s304_s12, %s13_s12  }
   0x2   : > { %p136_p1 = scmp.lt.s32.totalorder %s282_s12, 3 }
   0x4   : > { %p137_p2 = pnand %p259_p0, %p136_p1 }
   0x5   : > { %p158_p3 = scmp.lt.s32.totalorder (!%p137_p2), %s255_s13, 1  ;;  %vm168_vm0 = vcmask (!%p137_p2), 261120   ;;  %v262_v12 = vld [vmem:[%s328_s1] ss:$0 sm:$0xff] (!%p137_p2)  ;;  %vm200_vm1 = vcmask (!%p137_p2), 257024  }
   0x6   : > { %140 = sbr.rel (%p137_p2) target bundleno = 335 (0x14f), region = 32  ;;  %v263_v14 = vld [vmem:[%s329_s2] ss:$0 sm:$0xff] (!%p137_p2) }
   0xd   : > { %s332_s13 = smov (!%p158_p3, %s255_s13), 1 }
   0xe   : > { %s260_s14 = sshll.u32 %s332_s13, 2 }
   0xf   : > { %s161_s17 = scalar_lea.vmem %s327_s0, %s260_s14  ;;  %s165_s24 = scalar_lea.vmem %s330_s3, %s260_s14 }
  0x10   : > { %v166_v0 = vld [vmem:[%s161_s17] sm:$0xf] }
  0x11   : > { %v167_v1 = vunpack.c.l.bf16 %v166_v0 }
  0x13   : > { %v169_v2 = vsel %vm168_vm0, %v167_v1, 0.0 }
  0x14   : > { %170 = vadd.xlane.f32.xlu0 %v169_v2 }
  0xa1   : > { %v171_v3 = vpop.xlane.xlu0 %170 }
  0xa2   : > { %v173_v4 = vmul.f32 0.03125, %v171_v3 }
  0xa4   : > { %v174_v5 = vsub.f32 %v167_v1, %v173_v4 }
  0xa6   : > { %v175_v6 = vmul.f32 %v174_v5, %v174_v5 }
  0xa8   : > { %v176_v7 = vsel %vm168_vm0, %v175_v6, 0.0 }
  0xa9   : > { %177 = vadd.xlane.f32.xlu0 %v176_v7 }
 0x136   : > { %v178_v8 = vpop.xlane.xlu0 %177 }
 0x137   : > { %v179_v9 = vmul.f32 0.03125, %v178_v8 }
 0x139   : > { %v180_v10 = vadd.f32 1e-05, %v179_v9 }
 0x13b   : > { %274 = vrsqrt.f32 %v180_v10 }
 0x145   : > { %v275_v11 = vpop.eup %274 }
 0x146   : > { %v182_v13 = vmul.f32 %v275_v11, %v174_v5 }
 0x148   : > { %v190_v15 = vmul.f32 %v262_v12, %v182_v13 }
 0x14a   : > { %v198_v16 = vadd.f32 %v263_v14, %v190_v15 }
 0x14c   : > { %v199_v17 = vpack.c.bf16 %v198_v16, %v198_v16 }
 0x14e   : > { %201 = vst.msk [vmem:[%s165_s24] sm:$0xf] %vm200_vm1, %v199_v17 }
 0x14f PF: > { %s13_s12 = sadd.s32 1, %s282_s12  }
 0x150   : > { %p10_p4 = scmp.ge.s32.totalorder %s13_s12, 4  }
 0x152   :  { %12 = sbr.rel (!%p10_p4) target bundleno = 1 (0x1), region = 62 }

// kernel: _lambda_.39
= control target key start
LH: loop header
LB: loop body
LE: loop exit
PB: predicated region body
PF: predicated region fallthrough
CT: control target
= control target key end

     0   :  { %s488_s12 = smov 0   ;;  %s490_s13 = smov 0   ;;  %s530_s0 = inlined_call_operand.vmem [shape: bf16[16,32], index: 0, kind: input, shape index: {}]   ;;  %s531_s1 = inlined_call_operand.vmem [shape: bf16[32,32], index: 1, kind: input, shape index: {}]   ;;  %s532_s2 = inlined_call_operand.vmem [shape: f32[1,32], index: 2, kind: input, shape index: {}]   ;;  %s533_s3 = inlined_call_operand.vmem [shape: bf16[16,32], index: 3, kind: output, shape index: {}]  }
   0x1   :  { %s492_s14 = smov 0  }
   0x2 LB: > { %s25_s15 = sadd.s32 1, %s460_s13  ;;  %p394_p0 = scmp.ge.s32.totalorder %s464_s14, 1  ;;  %s464_s14 = sphi %s492_s14, %s13_s14   ;;  %s460_s13 = sphi %s490_s13, %s535_s13   ;;  %s456_s12 = sphi %s488_s12, %s534_s12  }
   0x3   : > { %p27_p1 = scmp.ge.s32.totalorder %s25_s15, 2  ;;  %p167_p2 = scmp.lt.s32.totalorder %s464_s14, 3 }
   0x5   : > { %s537_s15 = smov (%p27_p1, %s25_s15), 0  ;;  %p168_p3 = pnand %p394_p0, %p167_p2 }
   0x6   : > { %v440_v0 = vld [vmem:[%s531_s1] sm:$0xff] (!%p168_p3)   ;;  %v466_v1 = vmov (!%p168_p3), 0.0   ;;  %v441_v2 = vld [vmem:[%s531_s1 + $0x8] sm:$0xff] (!%p168_p3)   ;;  %vm467_vm0 = vmmov (!%p168_p3), 0   ;;  %p199_p4 = scmp.lt.s32.totalorder (!%p168_p3), %s456_s12, 1  ;;  %vm242_vm1 = vcmask (!%p168_p3), 261120  }
   0x7   : > { %171 = sbr.rel (%p168_p3) target bundleno = 235 (0xeb), region = 32  ;;  %406 = vmatprep.subr.bf16.mxu0 (!%p168_p3), %v466_v1  ;;  %410 = vmatprep.mubr.msk.bf16.mxu0 (!%p168_p3), %vm467_vm0, %v466_v1  ;;  %v397_v4 = vld [vmem:[%s532_s2] ss:$0 sm:$0xff] (!%p168_p3)  ;;  %vm287_vm2 = vcmask (!%p168_p3), 257024  }
   0x8   : > { %407 = vmatpush3.bf16.msra.mxu0 (!%p168_p3), %v440_v0 }
   0x9   : > { %408 = vmatprep.subr.bf16.mxu0 (!%p168_p3), %v466_v1 }
   0xc   : > { %409 = vmatpush3.bf16.msra.mxu0 (!%p168_p3), %v441_v2 }
   0xe   : > { %s539_s12 = smov (!%p199_p4, %s456_s12), 1 }
   0xf   : > { %s395_s20 = sshll.u32 %s539_s12, 2 }
  0x10   : > { %s202_s23 = scalar_lea.vmem %s530_s0, %s395_s20  ;;  %s216_s28 = scalar_lea.vmem %s533_s3, %s395_s20 }
  0x11   : > { %v218_v3 = vld [vmem:[%s202_s23] sm:$0xf] }
  0x12   : > { %411 = vmatmul.mubr.msk.bf16.vlgmr.msra.gmra.mrb[0].mxu0 %vm242_vm1, %v218_v3 }
  0xe5   : > { %v280_v5 = vpop.f32.mrb[0].mxu0 }
  0xe6   : > { %v281_v6 = vadd.f32 %v397_v4, %v280_v5  ;;  %v412_v7 = vpop.f32.mrb[1].mxu0 }
  0xe7   : > { %v283_v8 = vpop.f32.mrb[2].mxu0 }
  0xe8   : > { %v286_v9 = vpack.c.bf16 %v281_v6, %v281_v6  ;;  %v413_v10 = vpop.f32.mrb[3].mxu0 }
  0xea   : > { %288 = vst.msk [vmem:[%s216_s28] sm:$0xf] %vm287_vm2, %v286_v9 }
  0xeb PF: > { %s13_s14 = sadd.s32 1, %s464_s14   ;;  %s534_s12 = smov %s460_s13 }
  0xec   : > { %p10_p5 = scmp.ge.s32.totalorder %s13_s14, 4   ;;  %s535_s13 = smov %s537_s15 }
  0xee   :  { %12 = sbr.rel (!%p10_p5) target bundleno = 2 (0x2), region = 68 }

// kernel: _lambda_.37
= control target key start
LH: loop header
LB: loop body
LE: loop exit
PB: predicated region body
PF: predicated region fallthrough
CT: control target
= control target key end

     0   :  { %s932_s12 = smov 0   ;;  %s1052_s0 = inlined_call_operand.vmem [shape: bf16[2,8,96], index: 0, kind: input, shape index: {}]   ;;  %s1053_s1 = inlined_call_operand.vmem [shape: s32[2,8,1], index: 1, kind: input, shape index: {}]   ;;  %s1054_s2 = inlined_call_operand.vmem [shape: s32[1,8,8], index: 2, kind: input, shape index: {}]   ;;  %s1055_s3 = inlined_call_operand.vmem [shape: bf16[2,8,32], index: 3, kind: output, shape index: {}]  }
   0x1 LB: > { %s749_s13 = sadd.s32 4294967295, %s893_s12   ;;  %p753_p0 = scmp.ge.s32.totalorder %s893_s12, 1  ;;  %s893_s12 = sphi %s932_s12, %s13_s12  }
   0x2   : > { %p145_p1 = scmp.lt.s32.totalorder %s893_s12, 3 }
   0x4   : > { %p146_p2 = pnand %p753_p0, %p145_p1 }
   0x5   : > { %p171_p3 = scmp.lt.s32.totalorder (!%p146_p2), %s749_s13, 1  ;;  %v895_v0 = vmov (!%p146_p2), 0.0   ;;  %vm896_vm0 = vmmov (!%p146_p2), 0   ;;  %v897_v1 = vmov (!%p146_p2), 0   ;;  %s898_s22 = smov (!%p146_p2), 96   ;;  %vm200_vm2 = vcmask (!%p146_p2), 64512  }
   0x6   : > { %149 = sbr.rel (%p146_p2) target bundleno = 1251 (0x4e3), region = 32  ;;  %793 = vmatprep.subr.bf16.mxu0 (!%p146_p2), %v895_v0  ;;  %795 = vmatprep.mubr.msk.bf16.mxu0 (!%p146_p2), %vm896_vm0, %v895_v0  ;;  %s899_s23 = smov (!%p146_p2), 88   ;;  %v186_v11 = vld [vmem:[%s1054_s2] sm:$0xff] (!%p146_p2)  ;;  %vm263_vm6 = vcmask (!%p146_p2), 1043456   ;;  %vm310_vm7 = vcmask (!%p146_p2), 60416   ;;  %vm434_vm8 = vcmask (!%p146_p2), 126016  }
   0x7   : > { %799 = vmatprep.subr.bf16.mxu1 (!%p146_p2), %v895_v0  ;;  %801 = vmatprep.mubr.msk.bf16.mxu1 (!%p146_p2), %vm896_vm0, %v895_v0  ;;  %s900_s24 = smov (!%p146_p2), 120   ;;  %s901_s25 = smov (!%p146_p2), 80   ;;  %vm187_vm3 = vcmp.eq.s32.totalorder (!%p146_p2), %v186_v11, 0  ;;  %vm558_vm9 = vcmask (!%p146_p2), 191616   ;;  %vm682_vm10 = vcmask (!%p146_p2), 257216  }
   0x8   : > { %866 = vset.pattern.permute.xlu0 (!%p146_p2), %v897_v1  ;;  %s902_s26 = smov (!%p146_p2), 72   ;;  %s903_s29 = smov (!%p146_p2), 64  }
   0x9   : > { %s904_s30 = smov (!%p146_p2), 112   ;;  %s905_s4 = smov (!%p146_p2), 104  }
   0xa   : > { %s906_s5 = smov (!%p146_p2), 48   ;;  %s907_s6 = smov (!%p146_p2), 40  }
   0xb   : > { %s908_s7 = smov (!%p146_p2), 56   ;;  %s909_s11 = smov (!%p146_p2), 8  }
   0xd   : > { %s1059_s13 = smov (!%p171_p3, %s749_s13), 1 }
   0xe   : > { %s754_s14 = sshll.u32 %s1059_s13, 2  ;;  %s755_s15 = sshll.u32 %s1059_s13, 3 }
   0xf   : > { %s174_s18 = scalar_lea.vmem %s1052_s0, %s754_s14  ;;  %s178_s21 = scalar_lea.vmem %s1053_s1, %s755_s15 }
  0x10   : > { %v194_v2 = vld [vmem:[%s174_s18] sm:$0xf]  ;;  %s1043_s10 = scalar_lea.vmem %s1055_s3, %s754_s14  ;;  %s910_s13 = smov 16  }
  0x11   : > { %v184_v3 = vld [vmem:[%s178_s21] sm:$0xff]  ;;  %v757_v4 = vcombine.low %v194_v2, %v194_v2  ;;  %s911_s14 = smov 24  }
  0x12   : > { %vm185_vm1 = vcmp.ne.s32.totalorder %v184_v3, 0  ;;  %v963_v8 = vld [vmem:[%s174_s18] ss:$0 sps:$4 sm:$0xff]  }
  0x13   : > { %198 = vrot.lane.b32.xlu0 %v757_v4, %s898_s22  ;;  %v188_v5 = vsel %vm185_vm1, 1, %v897_v1  ;;  %v967_v9 = vld [vmem:[%s174_s18] ss:$0 sps:$4 sm:$0xff]  }
  0x14   : > { %v970_v10 = vld [vmem:[%s174_s18] ss:$0 sps:$4 sm:$0xff]  }
  0x17   : > { %190 = vperm.xlu0 %866, %v188_v5  }
  0x1b   : > { %318 = vrot.lane.b32.xlu0 %v963_v8, %s899_s23 }
  0x1f   : > { %316 = vrot.lane.b32.xlu0 %v963_v8, %s900_s24 }
  0x23   : > { %442 = vrot.lane.b32.xlu0 %v967_v9, %s901_s25 }
  0x27   : > { %566 = vrot.lane.b32.xlu0 %v970_v10, %s902_s26 }
  0x85   : > { %v199_v6 = vpop.permute.xlu0 %198 }
  0x86   : > { %v205_v7 = vsel %vm200_vm2, %v199_v6, 0 }
  0x87   : > { %794 = vmatpush3.bf16.xpose.msra.mxu0 %v205_v7 }
  0x88   : > { %811 = vmatprep.subr.bf16.mxu0 %v895_v0 }
  0x8e   : > { %796 = vmatmul.mubr.msk.bf16.vlgmr.msra.gmra.mrb[0].mxu0 %vm200_vm2, %v194_v2 }
  0x8f   : > { %813 = vmatprep.mubr.msk.bf16.mxu0 %vm896_vm0, %v895_v0 }
  0x96   : > { %v191_v12 = vpop.permute.xlu0 %190 }
  0x97   : > { %vm192_vm4 = vcmp.eq.s32.totalorder %v191_v12, 1 }
  0x98   : > { %vm976_vm5 = vmand %vm192_vm4, %vm187_vm3 }
  0x9a   : > { %v319_v25 = vpop.permute.xlu0 %318 }
  0x9b   : > { %v324_v28 = vsel %vm200_vm2, %v319_v25, 0 }
  0x9e   : > { %v317_v27 = vpop.permute.xlu0 %316 }
  0xa2   : > { %v443_v30 = vpop.permute.xlu0 %442 }
  0xa3   : > { %v448_v31 = vsel %vm200_vm2, %v443_v30, 0 }
  0xa6   : > { %v567_v32 = vpop.permute.xlu0 %566 }
  0xa7   : > { %v572_v34 = vsel %vm200_vm2, %v567_v32, 0 }
 0x161   : > { %v241_v14 = vpop.f32.mrb[0].mxu0 }
 0x162   : > { %v247_v15 = vsel %vm976_vm5, %v241_v14, -1e+30  ;;  %v797_v16 = vpop.f32.mrb[1].mxu0 }
 0x163   : > { %v244_v17 = vpop.f32.mrb[2].mxu0  ;;  %v248_v18 = vsel %vm200_vm2, %v247_v15, -inf }
 0x164   : > { %v798_v19 = vpop.f32.mrb[3].mxu0  ;;  %249 = vmax.xlane.f32.xlu1 %v248_v18 }
 0x175   : > { %258 = vrot.lane.b32.xlu1 %v757_v4, %s903_s29 }
 0x179   : > { %440 = vrot.lane.b32.xlu1 %v967_v9, %s904_s30 }
 0x17d   : > { %564 = vrot.lane.b32.xlu1 %v970_v10, %s905_s4 }
 0x1f1   : > { %v250_v20 = vpop.xlane.xlu1 %249 }
 0x1f2   : > { %v251_v21 = vsub.f32 %v247_v15, %v250_v20 }
 0x1f4   : > { %v252_v22 = vmul.f32 1.442695, %v251_v21 }
 0x1f5   : > { %v259_v23 = vpop.permute.xlu1 %258 }
 0x1f6   : > { %871 = vpow2.f32 %v252_v22  ;;  %v265_v24 = vsel %vm263_vm6, %v259_v23, 0 }
 0x1f7   : > { %800 = vmatpush3.bf16.msra.mxu1 %v265_v24 }
 0x1f8   : > { %805 = vmatprep.subr.bf16.mxu1 %v895_v0 }
 0x1f9   : > { %v441_v33 = vpop.permute.xlu1 %440 }
 0x1fd   : > { %v565_v35 = vpop.permute.xlu1 %564 }
 0x200   : > { %v987_v26 = vpop.eup %871 }
 0x201   : > { %v257_v29 = vpack.c.bf16 %v987_v26, %v987_v26  ;;  %v254_v18 = vsel %vm200_vm2, %v987_v26, 0.0 }
 0x203   : > { %802 = vmatmul.mubr.msk.bf16.vlgmr.msra.gmra.mrb[0].mxu1 %vm200_vm2, %v257_v29 }
 0x204   : > { %806 = vmatpush3.bf16.xpose.msra.mxu1 %v324_v28  ;;  %807 = vmatprep.mubr.msk.bf16.mxu1 %vm896_vm0, %v895_v0 }
 0x205   : > { %817 = vmatprep.subr.bf16.mxu1 %v895_v0 }
 0x20b   : > { %808 = vmatmul.mubr.msk.bf16.vlgmr.msra.gmra.mrb[4].mxu1 %vm200_vm2, %v317_v27 }
 0x20c   : > { %818 = vmatpush3.bf16.xpose.msra.mxu1 %v448_v31  ;;  %819 = vmatprep.mubr.msk.bf16.mxu1 %vm896_vm0, %v895_v0 }
 0x20d   : > { %829 = vmatprep.subr.bf16.mxu1 %v895_v0 }
 0x213   : > { %820 = vmatmul.mubr.msk.bf16.vlgmr.msra.gmra.mrb[8].mxu1 %vm200_vm2, %v441_v33 }
 0x214   : > { %830 = vmatpush3.bf16.xpose.msra.mxu1 %v572_v34  ;;  %831 = vmatprep.mubr.msk.bf16.mxu1 %vm896_vm0, %v895_v0 }
 0x21b   : > { %832 = vmatmul.mubr.msk.bf16.vlgmr.msra.gmra.mrb[12].mxu1 %vm200_vm2, %v565_v35 }
 0x2d6   : > { %v1006_v36 = vpop.f32.mrb[0].mxu1 }
 0x2d7   : > { %v803_v37 = vpop.f32.mrb[1].mxu1 }
 0x2d8   : > { %v304_v38 = vpop.f32.mrb[2].mxu1 }
 0x2d9   : > { %v804_v39 = vpop.f32.mrb[3].mxu1 }
 0x2de   : > { %v360_v40 = vpop.f32.mrb[4].mxu1 }
 0x2df   : > { %v366_v41 = vsel %vm976_vm5, %v360_v40, -1e+30  ;;  %v809_v42 = vpop.f32.mrb[5].mxu1 }
 0x2e0   : > { %v363_v43 = vpop.f32.mrb[6].mxu1  ;;  %v367_v44 = vsel %vm200_vm2, %v366_v41, -inf }
 0x2e1   : > { %368 = vmax.xlane.f32.xlu0 %v367_v44  ;;  %v810_v45 = vpop.f32.mrb[7].mxu1 }
 0x2e6   : > { %v484_v46 = vpop.f32.mrb[8].mxu1 }
 0x2e7   : > { %v490_v47 = vsel %vm976_vm5, %v484_v46, -1e+30  ;;  %v821_v48 = vpop.f32.mrb[9].mxu1 }
 0x2e8   : > { %v487_v49 = vpop.f32.mrb[10].mxu1  ;;  %v491_v50 = vsel %vm200_vm2, %v490_v47, -inf }
 0x2e9   : > { %492 = vmax.xlane.f32.xlu1 %v491_v50  ;;  %v822_v51 = vpop.f32.mrb[11].mxu1 }
 0x2ee   : > { %v608_v52 = vpop.f32.mrb[12].mxu1 }
 0x2ef   : > { %v614_v53 = vsel %vm976_vm5, %v608_v52, -1e+30  ;;  %v833_v54 = vpop.f32.mrb[13].mxu1 }
 0x2f0   : > { %v611_v55 = vpop.f32.mrb[14].mxu1  ;;  %v615_v56 = vsel %vm200_vm2, %v614_v53, -inf }
 0x2f1   : > { %616 = vmax.xlane.f32.xlu0 %v615_v56  ;;  %v834_v57 = vpop.f32.mrb[15].mxu1 }
 0x2fa   : > { %501 = vrot.lane.b32.xlu1 %v967_v9, %s906_s5 }
 0x2fe   : > { %625 = vrot.lane.b32.xlu1 %v970_v10, %s907_s6 }
 0x307   : > { %377 = vrot.lane.b32.xlu0 %v963_v8, %s908_s7 }
 0x36e   : > { %v369_v58 = vpop.xlane.xlu0 %368 }
 0x36f   : > { %v370_v59 = vsub.f32 %v366_v41, %v369_v58 }
 0x371   : > { %v371_v60 = vmul.f32 1.442695, %v370_v59 }
 0x373   : > { %873 = vpow2.f32 %v371_v60 }
 0x376   : > { %v493_v61 = vpop.xlane.xlu1 %492 }
 0x377   : > { %v494_v62 = vsub.f32 %v490_v47, %v493_v61 }
 0x379   : > { %v495_v63 = vmul.f32 1.442695, %v494_v62 }
 0x37a   : > { %v502_v7 = vpop.permute.xlu1 %501 }
 0x37b   : > { %875 = vpow2.f32 %v495_v63  ;;  %v507_v11 = vsel %vm263_vm6, %v502_v7, 0 }
 0x37d   : > { %v874_v1 = vpop.eup %873 }
 0x37e   : > { %v617_v2 = vpop.xlane.xlu0 %616  ;;  %v373_v3 = vsel %vm200_vm2, %v874_v1, 0.0  ;;  %v376_v10 = vpack.c.bf16 %v874_v1, %v874_v1  ;;  %v626_v13 = vpop.permute.xlu1 %625 }
 0x37f   : > { %v618_v4 = vsub.f32 %v614_v53, %v617_v2  ;;  %374 = vadd.xlane.f32.xlu0 %v373_v3  ;;  %v631_v16 = vsel %vm263_vm6, %v626_v13, 0 }
 0x381   : > { %v619_v5 = vmul.f32 1.442695, %v618_v4 }
 0x382   : > { %v378_v6 = vpop.permute.xlu0 %377 }
 0x383   : > { %877 = vpow2.f32 %v619_v5  ;;  %v383_v8 = vsel %vm263_vm6, %v378_v6, 0 }
 0x384   : > { %812 = vmatpush3.bf16.msra.mxu0 %v383_v8 }
 0x385   : > { %v876_v9 = vpop.eup %875  ;;  %823 = vmatprep.subr.bf16.mxu0 %v895_v0 }
 0x386   : > { %v497_v12 = vsel %vm200_vm2, %v876_v9, 0.0  ;;  %v500_v15 = vpack.c.bf16 %v876_v9, %v876_v9 }
 0x387   : > { %498 = vadd.xlane.f32.xlu1 %v497_v12  ;;  %814 = vmatmul.mubr.msk.bf16.vlgmr.msra.gmra.mrb[4].mxu0 %vm200_vm2, %v376_v10 }
 0x388   : > { %824 = vmatpush3.bf16.msra.mxu0 %v507_v11  ;;  %825 = vmatprep.mubr.msk.bf16.mxu0 %vm896_vm0, %v895_v0 }
 0x389   : > { %835 = vmatprep.subr.bf16.mxu0 %v895_v0 }
 0x38d   : > { %v878_v14 = vpop.eup %877 }
 0x38e   : > { %v621_v17 = vsel %vm200_vm2, %v878_v14, 0.0  ;;  %v624_v19 = vpack.c.bf16 %v878_v14, %v878_v14 }
 0x38f   : > { %622 = vadd.xlane.f32.xlu0 %v621_v17  ;;  %826 = vmatmul.mubr.msk.bf16.vlgmr.msra.gmra.mrb[8].mxu0 %vm200_vm2, %v500_v15 }
 0x390   : > { %836 = vmatpush3.bf16.msra.mxu0 %v631_v16  ;;  %837 = vmatprep.mubr.msk.bf16.mxu0 %vm896_vm0, %v895_v0 }
 0x393   : > { %255 = vadd.xlane.f32.xlu0 %v254_v18 }
 0x397   : > { %838 = vmatmul.mubr.msk.bf16.vlgmr.msra.gmra.mrb[12].mxu0 %vm200_vm2, %v624_v19 }
 0x40c   : > { %v375_v20 = vpop.xlane.xlu0 %374 }
 0x414   : > { %v499_v25 = vpop.xlane.xlu1 %498 }
 0x41c   : > { %v623_v21 = vpop.xlane.xlu0 %622 }
 0x420   : > { %v256_v22 = vpop.xlane.xlu0 %255 }
 0x421   : > { %879 = vrcp.f32 %v256_v22 }
 0x422   : > { %881 = vrcp.f32 %v375_v20 }
 0x423   : > { %883 = vrcp.f32 %v499_v25 }
 0x424   : > { %885 = vrcp.f32 %v623_v21 }
 0x42b   : > { %v880_v23 = vpop.eup %879 }
 0x42c   : > { %v308_v24 = vmul.f32 %v880_v23, %v1006_v36  ;;  %v882_v26 = vpop.eup %881 }
 0x42d   : > { %v884_v33 = vpop.eup %883 }
 0x42e   : > { %v309_v0 = vpack.c.bf16 %v308_v24, %v308_v24  ;;  %v886_v40 = vpop.eup %885 }
 0x430   : > { %311 = vst.msk [vmem:[%s1043_s10] sm:$0xf] %vm310_vm7, %v309_v0 }
 0x45a   : > { %v419_v27 = vpop.f32.mrb[4].mxu0 }
 0x45b   : > { %v426_v28 = vmul.f32 %v882_v26, %v419_v27  ;;  %v815_v29 = vpop.f32.mrb[5].mxu0 }
 0x45c   : > { %v422_v30 = vpop.f32.mrb[6].mxu0 }
 0x45d   : > { %v774_v31 = vpack.c.bf16 %v426_v28, %v426_v28  ;;  %v816_v32 = vpop.f32.mrb[7].mxu0 }
 0x45f   : > { %431 = vrot.lane.b32.xlu1 %v774_v31, %s909_s11 }
 0x462   : > { %v543_v34 = vpop.f32.mrb[8].mxu0 }
 0x463   : > { %v550_v35 = vmul.f32 %v884_v33, %v543_v34  ;;  %v827_v36 = vpop.f32.mrb[9].mxu0 }
 0x464   : > { %v546_v37 = vpop.f32.mrb[10].mxu0 }
 0x465   : > { %v775_v38 = vpack.c.bf16 %v550_v35, %v550_v35  ;;  %v828_v39 = vpop.f32.mrb[11].mxu0 }
 0x467   : > { %555 = vrot.lane.b32.xlu0 %v775_v38, %s910_s13 }
 0x46a   : > { %v667_v41 = vpop.f32.mrb[12].mxu0 }
 0x46b   : > { %v674_v42 = vmul.f32 %v886_v40, %v667_v41  ;;  %v839_v43 = vpop.f32.mrb[13].mxu0 }
 0x46c   : > { %v670_v44 = vpop.f32.mrb[14].mxu0 }
 0x46d   : > { %v776_v45 = vpack.c.bf16 %v674_v42, %v674_v42  ;;  %v840_v46 = vpop.f32.mrb[15].mxu0 }
 0x46f   : > { %679 = vrot.lane.b32.xlu1 %v776_v45, %s911_s14 }
 0x4d1   : > { %v432_v47 = vpop.permute.xlu1 %431 }
 0x4d2   : > { %435 = vst.msk [vmem:[%s1043_s10] sm:$0xf] %vm434_vm8, %v432_v47 }
 0x4d9   : > { %v556_v48 = vpop.permute.xlu0 %555 }
 0x4da   : > { %559 = vst.msk [vmem:[%s1043_s10] sm:$0xf] %vm558_vm9, %v556_v48 }
 0x4e1   : > { %v680_v49 = vpop.permute.xlu1 %679 }
 0x4e2   : > { %683 = vst.msk [vmem:[%s1043_s10] sm:$0xf] %vm682_vm10, %v680_v49 }
 0x4e3 PF: > { %s13_s12 = sadd.s32 1, %s893_s12  }
 0x4e4   : > { %p10_p4 = scmp.ge.s32.totalorder %s13_s12, 4  }
 0x4e6   :  { %12 = sbr.rel (!%p10_p4) target bundleno = 1 (0x1), region = 65 }

// kernel: _lambda_.41
= control target key start
LH: loop header
LB: loop body
LE: loop exit
PB: predicated region body
PF: predicated region fallthrough
CT: control target
= control target key end

     0   :  { %s961_s12 = smov 0   ;;  %s1078_s0 = inlined_call_operand.vmem [shape: bf16[2,8,32], index: 0, kind: input, shape index: {}]   ;;  %s1079_s1 = inlined_call_operand.vmem [shape: bf16[2,8,64], index: 1, kind: input, shape index: {}]   ;;  %s1080_s2 = inlined_call_operand.vmem [shape: s32[2,1,8], index: 2, kind: input, shape index: {}]   ;;  %s1081_s3 = inlined_call_operand.vmem [shape: bf16[2,8,32], index: 3, kind: output, shape index: {}]  }
   0x1 LB: > { %s781_s13 = sadd.s32 4294967295, %s926_s12   ;;  %p785_p0 = scmp.ge.s32.totalorder %s926_s12, 1  ;;  %s926_s12 = sphi %s961_s12, %s13_s12  }
   0x2   : > { %p153_p1 = scmp.lt.s32.totalorder %s926_s12, 3 }
   0x4   : > { %p154_p2 = pnand %p785_p0, %p153_p1 }
   0x5   : > { %p182_p3 = scmp.lt.s32.totalorder (!%p154_p2), %s781_s13, 1  ;;  %v928_v0 = vmov (!%p154_p2), 0.0   ;;  %vm929_vm0 = vmmov (!%p154_p2), 0   ;;  %vm202_vm1 = vcmask (!%p154_p2), 64512   ;;  %s930_s21 = smov (!%p154_p2), 120   ;;  %v250_v10 = vlaneseq (!%p154_p2) }
   0x6   : > { %157 = sbr.rel (%p154_p2) target bundleno = 1127 (0x467), region = 32  ;;  %828 = vmatprep.subr.bf16.mxu0 (!%p154_p2), %v928_v0  ;;  %830 = vmatprep.mubr.msk.bf16.mxu0 (!%p154_p2), %vm929_vm0, %v928_v0  ;;  %s931_s22 = smov (!%p154_p2), 112   ;;  %v933_v14 = vmov (!%p154_p2), 0   ;;  %vm274_vm4 = vcmask (!%p154_p2), 1043456   ;;  %vm321_vm5 = vcmask (!%p154_p2), 60416   ;;  %vm449_vm6 = vcmask (!%p154_p2), 126016  }
   0x7   : > { %834 = vmatprep.subr.bf16.mxu1 (!%p154_p2), %v928_v0  ;;  %836 = vmatprep.mubr.msk.bf16.mxu1 (!%p154_p2), %vm929_vm0, %v928_v0  ;;  %s932_s23 = smov (!%p154_p2), 104   ;;  %v251_v12 = vshrl.u32 (!%p154_p2), %v250_v10, 7  ;;  %s934_s27 = smov (!%p154_p2), 96   ;;  %vm577_vm7 = vcmask (!%p154_p2), 191616   ;;  %vm705_vm8 = vcmask (!%p154_p2), 257216  }
   0x8   : > { %s935_s28 = smov (!%p154_p2), 88   ;;  %s936_s29 = smov (!%p154_p2), 72  }
   0x9   : > { %v252_v13 = vsub.s32 (!%p154_p2), 0, %v251_v12  ;;  %s937_s30 = smov (!%p154_p2), 80   ;;  %s938_s7 = smov (!%p154_p2), 8  }
   0xa   : > { %s939_s8 = smov (!%p154_p2), 16   ;;  %s940_s9 = smov (!%p154_p2), 24  }
   0xd   : > { %s1083_s13 = smov (!%p182_p3, %s781_s13), 1 }
   0xe   : > { %s978_s14 = sshll.u32 %s1083_s13, 2  ;;  %s192_s26 = scalar_lea.vmem %s1080_s2, %s1083_s13 }
   0xf   : > { %s189_s17 = scalar_lea.vmem %s1079_s1, %s978_s14  ;;  %s185_s20 = scalar_lea.vmem %s1078_s0, %s978_s14  ;;  %v198_v11 = vld [vmem:[%s192_s26] sm:$0x1] }
  0x10   : > { %v201_v1 = vld [vmem:[%s189_s17] sm:$0xf]  ;;  %vm199_vm2 = vcmp.ne.s32.totalorder %v198_v11, 0  ;;  %s1069_s6 = scalar_lea.vmem %s1081_s3, %s978_s14 }
  0x11   : > { %v207_v2 = vsel %vm202_vm1, %v201_v1, 0  ;;  %v200_v3 = vld [vmem:[%s185_s20] sm:$0xf]  ;;  %v249_v15 = vsel %vm199_vm2, 1, %v933_v14  ;;  %v790_v23 = vcombine.low %v201_v1, %v201_v1 }
  0x12   : > { %829 = vmatpush3.bf16.xpose.msra.mxu0 %v207_v2  ;;  %v993_v4 = vld [vmem:[%s189_s17] ss:$0 sps:$4 sm:$0xff]   ;;  %v1006_v16 = vrot.slane %v249_v15, %v252_v13 }
  0x13   : > { %846 = vmatprep.subr.bf16.mxu0 %v928_v0  ;;  %333 = vrot.lane.b32.xlu1 %v993_v4, %s930_s21  ;;  %v899_v5 = vld [vmem:[%s185_s20] ss:$0 sps:$4 sm:$0xff]  }
  0x14   : > { %v996_v6 = vld [vmem:[%s189_s17] ss:$0 sps:$4 sm:$0xff]   ;;  %vm254_vm3 = vcmp.eq.s32.totalorder %v1006_v16, 1 }
  0x15   : > { %v901_v7 = vld [vmem:[%s185_s20] ss:$0 sps:$4 sm:$0xff]  }
  0x16   : > { %v999_v8 = vld [vmem:[%s189_s17] ss:$0 sps:$4 sm:$0xff]  }
  0x17   : > { %328 = vrot.lane.b32.xlu1 %v899_v5, %s930_s21  ;;  %v903_v9 = vld [vmem:[%s185_s20] ss:$0 sps:$4 sm:$0xff]  }
  0x19   : > { %831 = vmatmul.mubr.msk.bf16.vlgmr.msra.gmra.mrb[0].mxu0 %vm202_vm1, %v200_v3 }
  0x1a   : > { %848 = vmatprep.mubr.msk.bf16.mxu0 %vm929_vm0, %v928_v0 }
  0x1b   : > { %461 = vrot.lane.b32.xlu1 %v996_v6, %s931_s22 }
  0x1f   : > { %456 = vrot.lane.b32.xlu1 %v901_v7, %s931_s22 }
  0x23   : > { %589 = vrot.lane.b32.xlu1 %v999_v8, %s932_s23 }
  0x27   : > { %584 = vrot.lane.b32.xlu1 %v903_v9, %s932_s23 }
  0x85   : > { %v334_v29 = vpop.permute.xlu1 %333 }
  0x86   : > { %v339_v32 = vsel %vm202_vm1, %v334_v29, 0 }
  0x89   : > { %v329_v30 = vpop.permute.xlu1 %328 }
  0x8d   : > { %v462_v34 = vpop.permute.xlu1 %461 }
  0x8e   : > { %v467_v36 = vsel %vm202_vm1, %v462_v34, 0 }
  0x91   : > { %v457_v35 = vpop.permute.xlu1 %456 }
  0x95   : > { %v590_v37 = vpop.permute.xlu1 %589 }
  0x96   : > { %v595_v38 = vsel %vm202_vm1, %v590_v37, 0 }
  0x99   : > { %v585_v39 = vpop.permute.xlu1 %584 }
  0xec   : > { %v243_v17 = vpop.f32.mrb[0].mxu0 }
  0xed   : > { %v255_v18 = vsel %vm254_vm3, %v243_v17, -1e+30  ;;  %v832_v19 = vpop.f32.mrb[1].mxu0 }
  0xee   : > { %v246_v20 = vpop.f32.mrb[2].mxu0  ;;  %v256_v21 = vsel %vm202_vm1, %v255_v18, -inf }
  0xef   : > { %257 = vmax.xlane.f32.xlu0 %v256_v21  ;;  %v833_v22 = vpop.f32.mrb[3].mxu0 }
 0x105   : > { %269 = vrot.lane.b32.xlu0 %v790_v23, %s934_s27 }
 0x17c   : > { %v258_v24 = vpop.xlane.xlu0 %257 }
 0x17d   : > { %v259_v25 = vsub.f32 %v255_v18, %v258_v24 }
 0x17f   : > { %v260_v26 = vmul.f32 1.442695, %v259_v25 }
 0x180   : > { %v270_v27 = vpop.permute.xlu0 %269 }
 0x181   : > { %904 = vpow2.f32 %v260_v26  ;;  %v276_v28 = vsel %vm274_vm4, %v270_v27, 0 }
 0x182   : > { %835 = vmatpush3.bf16.msra.mxu1 %v276_v28 }
 0x183   : > { %840 = vmatprep.subr.bf16.mxu1 %v928_v0 }
 0x18b   : > { %v1014_v31 = vpop.eup %904 }
 0x18c   : > { %v265_v33 = vpack.c.bf16 %v1014_v31, %v1014_v31  ;;  %v262_v14 = vsel %vm202_vm1, %v1014_v31, 0.0 }
 0x18e   : > { %837 = vmatmul.mubr.msk.bf16.vlgmr.msra.gmra.mrb[0].mxu1 %vm202_vm1, %v265_v33 }
 0x18f   : > { %841 = vmatpush3.bf16.xpose.msra.mxu1 %v339_v32  ;;  %842 = vmatprep.mubr.msk.bf16.mxu1 %vm929_vm0, %v928_v0 }
 0x190   : > { %852 = vmatprep.subr.bf16.mxu1 %v928_v0 }
 0x196   : > { %843 = vmatmul.mubr.msk.bf16.vlgmr.msra.gmra.mrb[4].mxu1 %vm202_vm1, %v329_v30 }
 0x197   : > { %853 = vmatpush3.bf16.xpose.msra.mxu1 %v467_v36  ;;  %854 = vmatprep.mubr.msk.bf16.mxu1 %vm929_vm0, %v928_v0 }
 0x198   : > { %864 = vmatprep.subr.bf16.mxu1 %v928_v0 }
 0x19e   : > { %855 = vmatmul.mubr.msk.bf16.vlgmr.msra.gmra.mrb[8].mxu1 %vm202_vm1, %v457_v35 }
 0x19f   : > { %865 = vmatpush3.bf16.xpose.msra.mxu1 %v595_v38  ;;  %866 = vmatprep.mubr.msk.bf16.mxu1 %vm929_vm0, %v928_v0 }
 0x1a6   : > { %867 = vmatmul.mubr.msk.bf16.vlgmr.msra.gmra.mrb[12].mxu1 %vm202_vm1, %v585_v39 }
 0x261   : > { %v1033_v40 = vpop.f32.mrb[0].mxu1 }
 0x262   : > { %v838_v41 = vpop.f32.mrb[1].mxu1 }
 0x263   : > { %v315_v42 = vpop.f32.mrb[2].mxu1 }
 0x264   : > { %v839_v43 = vpop.f32.mrb[3].mxu1 }
 0x269   : > { %v375_v44 = vpop.f32.mrb[4].mxu1 }
 0x26a   : > { %v381_v45 = vsel %vm254_vm3, %v375_v44, -1e+30  ;;  %v844_v46 = vpop.f32.mrb[5].mxu1 }
 0x26b   : > { %v378_v47 = vpop.f32.mrb[6].mxu1  ;;  %v382_v48 = vsel %vm202_vm1, %v381_v45, -inf }
 0x26c   : > { %383 = vmax.xlane.f32.xlu1 %v382_v48  ;;  %v845_v49 = vpop.f32.mrb[7].mxu1 }
 0x271   : > { %v503_v50 = vpop.f32.mrb[8].mxu1 }
 0x272   : > { %v509_v51 = vsel %vm254_vm3, %v503_v50, -1e+30  ;;  %v856_v52 = vpop.f32.mrb[9].mxu1 }
 0x273   : > { %v506_v53 = vpop.f32.mrb[10].mxu1  ;;  %v510_v54 = vsel %vm202_vm1, %v509_v51, -inf }
 0x274   : > { %511 = vmax.xlane.f32.xlu0 %v510_v54  ;;  %v857_v55 = vpop.f32.mrb[11].mxu1 }
 0x279   : > { %v631_v56 = vpop.f32.mrb[12].mxu1 }
 0x27a   : > { %v637_v57 = vsel %vm254_vm3, %v631_v56, -1e+30  ;;  %v868_v58 = vpop.f32.mrb[13].mxu1 }
 0x27b   : > { %v634_v59 = vpop.f32.mrb[14].mxu1  ;;  %v638_v60 = vsel %vm202_vm1, %v637_v57, -inf }
 0x27c   : > { %639 = vmax.xlane.f32.xlu0 %v638_v60  ;;  %v869_v61 = vpop.f32.mrb[15].mxu1 }
 0x27d   : > { %392 = vrot.lane.b32.xlu1 %v993_v4, %s935_s28 }
 0x281   : > { %648 = vrot.lane.b32.xlu1 %v999_v8, %s936_s29 }
 0x292   : > { %520 = vrot.lane.b32.xlu0 %v996_v6, %s937_s30 }
 0x2f9   : > { %v384_v62 = vpop.xlane.xlu1 %383 }
 0x2fa   : > { %v385_v63 = vsub.f32 %v381_v45, %v384_v62 }
 0x2fc   : > { %v386_v1 = vmul.f32 1.442695, %v385_v63 }
 0x2fd   : > { %v393_v2 = vpop.permute.xlu1 %392 }
 0x2fe   : > { %906 = vpow2.f32 %v386_v1  ;;  %v398_v3 = vsel %vm274_vm4, %v393_v2, 0 }
 0x2ff   : > { %847 = vmatpush3.bf16.msra.mxu0 %v398_v3 }
 0x300   : > { %858 = vmatprep.subr.bf16.mxu0 %v928_v0 }
 0x301   : > { %v512_v5 = vpop.xlane.xlu0 %511  ;;  %v649_v16 = vpop.permute.xlu1 %648 }
 0x302   : > { %v513_v7 = vsub.f32 %v509_v51, %v512_v5  ;;  %v654_v20 = vsel %vm274_vm4, %v649_v16, 0 }
 0x304   : > { %v514_v9 = vmul.f32 1.442695, %v513_v7 }
 0x306   : > { %908 = vpow2.f32 %v514_v9 }
 0x308   : > { %v907_v4 = vpop.eup %906 }
 0x309   : > { %v640_v10 = vpop.xlane.xlu0 %639  ;;  %v388_v8 = vsel %vm202_vm1, %v907_v4, 0.0  ;;  %v391_v11 = vpack.c.bf16 %v907_v4, %v907_v4 }
 0x30a   : > { %v641_v6 = vsub.f32 %v637_v57, %v640_v10  ;;  %389 = vadd.xlane.f32.xlu1 %v388_v8 }
 0x30b   : > { %849 = vmatmul.mubr.msk.bf16.vlgmr.msra.gmra.mrb[4].mxu0 %vm202_vm1, %v391_v11 }
 0x30c   : > { %v642_v12 = vmul.f32 1.442695, %v641_v6  ;;  %860 = vmatprep.mubr.msk.bf16.mxu0 %vm929_vm0, %v928_v0 }
 0x30d   : > { %v521_v13 = vpop.permute.xlu0 %520 }
 0x30e   : > { %910 = vpow2.f32 %v642_v12  ;;  %v526_v15 = vsel %vm274_vm4, %v521_v13, 0  ;;  %263 = vadd.xlane.f32.xlu1 %v262_v14 }
 0x30f   : > { %859 = vmatpush3.bf16.msra.mxu0 %v526_v15 }
 0x310   : > { %v909_v17 = vpop.eup %908  ;;  %870 = vmatprep.subr.bf16.mxu0 %v928_v0 }
 0x311   : > { %v516_v18 = vsel %vm202_vm1, %v909_v17, 0.0  ;;  %v519_v19 = vpack.c.bf16 %v909_v17, %v909_v17 }
 0x312   : > { %517 = vadd.xlane.f32.xlu0 %v516_v18 }
 0x313   : > { %861 = vmatmul.mubr.msk.bf16.vlgmr.msra.gmra.mrb[8].mxu0 %vm202_vm1, %v519_v19 }
 0x314   : > { %871 = vmatpush3.bf16.msra.mxu0 %v654_v20  ;;  %872 = vmatprep.mubr.msk.bf16.mxu0 %vm929_vm0, %v928_v0 }
 0x318   : > { %v911_v21 = vpop.eup %910 }
 0x319   : > { %v644_v22 = vsel %vm202_vm1, %v911_v21, 0.0  ;;  %v647_v23 = vpack.c.bf16 %v911_v21, %v911_v21 }
 0x31a   : > { %645 = vadd.xlane.f32.xlu0 %v644_v22 }
 0x31b   : > { %873 = vmatmul.mubr.msk.bf16.vlgmr.msra.gmra.mrb[12].mxu0 %vm202_vm1, %v647_v23 }
 0x397   : > { %v390_v24 = vpop.xlane.xlu1 %389 }
 0x39b   : > { %v264_v25 = vpop.xlane.xlu1 %263 }
 0x39c   : > { %912 = vrcp.f32 %v264_v25 }
 0x39d   : > { %914 = vrcp.f32 %v390_v24 }
 0x39f   : > { %v518_v28 = vpop.xlane.xlu0 %517 }
 0x3a0   : > { %916 = vrcp.f32 %v518_v28 }
 0x3a6   : > { %v913_v26 = vpop.eup %912 }
 0x3a7   : > { %v319_v27 = vmul.f32 %v913_v26, %v1033_v40  ;;  %v915_v29 = vpop.eup %914  ;;  %v646_v34 = vpop.xlane.xlu0 %645 }
 0x3a8   : > { %918 = vrcp.f32 %v646_v34 }
 0x3a9   : > { %v320_v0 = vpack.c.bf16 %v319_v27, %v319_v27 }
 0x3aa   : > { %v917_v37 = vpop.eup %916 }
 0x3ab   : > { %322 = vst.msk [vmem:[%s1069_s6] sm:$0xf] %vm321_vm5, %v320_v0 }
 0x3b2   : > { %v919_v44 = vpop.eup %918 }
 0x3de   : > { %v434_v30 = vpop.f32.mrb[4].mxu0 }
 0x3df   : > { %v441_v31 = vmul.f32 %v915_v29, %v434_v30  ;;  %v850_v32 = vpop.f32.mrb[5].mxu0 }
 0x3e0   : > { %v437_v33 = vpop.f32.mrb[6].mxu0 }
 0x3e1   : > { %v809_v35 = vpack.c.bf16 %v441_v31, %v441_v31  ;;  %v851_v36 = vpop.f32.mrb[7].mxu0 }
 0x3e3   : > { %446 = vrot.lane.b32.xlu0 %v809_v35, %s938_s7 }
 0x3e6   : > { %v562_v38 = vpop.f32.mrb[8].mxu0 }
 0x3e7   : > { %v569_v39 = vmul.f32 %v917_v37, %v562_v38  ;;  %v862_v40 = vpop.f32.mrb[9].mxu0 }
 0x3e8   : > { %v565_v41 = vpop.f32.mrb[10].mxu0 }
 0x3e9   : > { %v810_v42 = vpack.c.bf16 %v569_v39, %v569_v39  ;;  %v863_v43 = vpop.f32.mrb[11].mxu0 }
 0x3eb   : > { %574 = vrot.lane.b32.xlu1 %v810_v42, %s939_s8 }
 0x3ee   : > { %v690_v45 = vpop.f32.mrb[12].mxu0 }
 0x3ef   : > { %v697_v46 = vmul.f32 %v919_v44, %v690_v45  ;;  %v874_v47 = vpop.f32.mrb[13].mxu0 }
 0x3f0   : > { %v693_v48 = vpop.f32.mrb[14].mxu0 }
 0x3f1   : > { %v811_v49 = vpack.c.bf16 %v697_v46, %v697_v46  ;;  %v875_v50 = vpop.f32.mrb[15].mxu0 }
 0x3f3   : > { %702 = vrot.lane.b32.xlu1 %v811_v49, %s940_s9 }
 0x455   : > { %v447_v51 = vpop.permute.xlu0 %446 }
 0x456   : > { %450 = vst.msk [vmem:[%s1069_s6] sm:$0xf] %vm449_vm6, %v447_v51 }
 0x45d   : > { %v575_v52 = vpop.permute.xlu1 %574 }
 0x45e   : > { %578 = vst.msk [vmem:[%s1069_s6] sm:$0xf] %vm577_vm7, %v575_v52 }
 0x465   : > { %v703_v53 = vpop.permute.xlu1 %702 }
 0x466   : > { %706 = vst.msk [vmem:[%s1069_s6] sm:$0xf] %vm705_vm8, %v703_v53 }
 0x467 PF: > { %s13_s12 = sadd.s32 1, %s926_s12  }
 0x468   : > { %p10_p4 = scmp.ge.s32.totalorder %s13_s12, 4  }
 0x46a   :  { %12 = sbr.rel (!%p10_p4) target bundleno = 1 (0x1), region = 68 }

// kernel: _lambda_.53
= control target key start
LH: loop header
LB: loop body
LE: loop exit
PB: predicated region body
PF: predicated region fallthrough
CT: control target
= control target key end

     0   :  { %8 = vsyncpa [#allocation3], 0  ;;  %s703_s0 = inlined_call_operand.vmem [shape: bf16[16,32], index: 0, kind: input, shape index: {}]   ;;  %s704_s1 = inlined_call_operand.vmem [shape: bf16[32,64], index: 1, kind: input, shape index: {}]   ;;  %s705_s2 = inlined_call_operand.vmem [shape: f32[1,64], index: 2, kind: input, shape index: {}]   ;;  %s706_s3 = inlined_call_operand.hbm [shape: f32[16,64], index: 3, kind: output, shape index: {}]  }
   0x1   :  { %10 = vsyncpa [#allocation3 + $0x1], 0  ;;  %s582_s12 = smov 0   ;;  %s584_s13 = smov 0  }
   0x2   :  { %s586_s14 = smov 0   ;;  %s588_s15 = smov 0  }
   0x3   :  { %s590_s16 = smov 0   ;;  %s592_s17 = smov 0  }
   0x4 LB: > { %s392_s18 = sadd.s32 4294967295, %s557_s17   ;;  %s393_s19 = sadd.s32 4294967294, %s557_s17   ;;  %s557_s17 = sphi %s592_s17, %s16_s17   ;;  %s553_s16 = sphi %s590_s16, %s713_s16   ;;  %s549_s15 = sphi %s588_s15, %s712_s15   ;;  %s545_s14 = sphi %s586_s14, %s711_s14   ;;  %s541_s13 = sphi %s584_s13, %s710_s13   ;;  %s537_s12 = sphi %s582_s12, %s709_s12  }
   0x5   : > { %s25_s20 = sadd.s32 1, %s553_s16  ;;  %s115_s21 = sadd.s32 1, %s545_s14 }
   0x6   : > { %p26_p0 = scmp.ge.s32.totalorder %s25_s20, 2  ;;  %p125_p1 = scmp.ne.s32.totalorder %s545_s14, %s541_s13 }
   0x7   : > { %p126_p2 = scmp.eq.s32.totalorder %s392_s18, 1  ;;  %p131_p3 = scmp.ne.s32.totalorder %s541_s13, %s537_s12 }
   0x8   : > { %s715_s20 = smov (%p26_p0, %s25_s20), 0  ;;  %p132_p5 = scmp.eq.s32.totalorder %s393_s19, 1 }
   0x9   : > { %p622_p4 = por %p126_p2, %p125_p1  ;;  %s110_s23 = ssub.s32 %s553_s16, %s715_s20 }
   0xa   : > { %p398_p6 = scmp.ge.s32.totalorder %s557_s17, 1  ;;  %p113_p7 = scmp.eq.s32.totalorder %s110_s23, 0 }
   0xb   : > { %p629_p8 = por %p132_p5, %p131_p3  ;;  %p170_p9 = scmp.lt.s32.totalorder %s557_s17, 3 }
   0xc   : > { %s635_s25 = scalar_select %p113_p7, %s545_s14, %s115_s21  }
   0xd   : > { %p171_p10 = pnand %p398_p6, %p170_p9 }
   0xe   : > { %v477_v0 = vld [vmem:[%s704_s1] sm:$0xff] (!%p171_p10)   ;;  %v559_v1 = vmov (!%p171_p10), 0.0   ;;  %v478_v2 = vld [vmem:[%s704_s1 + $0x8] sm:$0xff] (!%p171_p10)   ;;  %vm560_vm0 = vmmov (!%p171_p10), 0   ;;  %p200_p11 = scmp.lt.s32.totalorder (!%p171_p10), %s549_s15, 1  ;;  %vm236_vm1 = vcmask (!%p171_p10), 261120  }
   0xf   : > { %174 = sbr.rel (%p171_p10) target bundleno = 255 (0xff), region = 32  ;;  %412 = vmatprep.subr.bf16.mxu0 (!%p171_p10), %v559_v1  ;;  %416 = vmatprep.mubr.msk.bf16.mxu0 (!%p171_p10), %vm560_vm0, %v559_v1  ;;  %s197_s8 = sand.u32 (!%p171_p10), 1, %s541_s13   ;;  %v401_v4 = vld [vmem:[%s705_s2] ss:$0 sm:$0xff] (!%p171_p10)  ;;  %vm280_vm2 = vcmask (!%p171_p10), 523264  }
  0x10   : > { %413 = vmatpush3.bf16.msra.mxu0 (!%p171_p10), %v477_v0  ;;  %s399_s9 = sshll.u32 (!%p171_p10), %s197_s8, 3  ;;  %s406_s18 = sshll.u32 (!%p171_p10), %s549_s15, 7 }
  0x11   : > { %414 = vmatprep.subr.bf16.mxu0 (!%p171_p10), %v559_v1  ;;  %s199_s19 = scalar_lea.vmem (!%p171_p10), [#allocation2], %s399_s9  ;;  %s656_s27 = scalar_lea.hbm (!%p171_p10), %s706_s3, %s406_s18 }
  0x12   : > { %s297_s21 = sshll.u32 (!%p171_p10), %s199_s19, 4  ;;  %s561_s29 = smov (!%p171_p10), [#allocation2]   ;;  %s658_s21 = int_to_ptr.vmem [resolvable:$true] %s297_s21 }
  0x13   : > { %s479_s28 = scalar_lea.vmem (!%p171_p10), %s658_s21, 128 }
  0x14   : > { %415 = vmatpush3.bf16.msra.mxu0 (!%p171_p10), %v478_v2  ;;  %p480_p12 = scmp.ne.s32.totalorder (!%p171_p10), %s658_s21, %s479_s28 }
  0x16   : > { %s201_s30 = scalar_select %p200_p11, %s549_s15, 1 }
  0x17   : > { %s283_s15 = scalar_lea.sflag [#allocation3], %s197_s8  ;;  %p481_p13 = pnand %p480_p12, %p622_p4 }
  0x18   : > { %s400_s4 = sshll.u32 %s201_s30, 2  ;;  %s483_s30 = sshll.u32 %s561_s29, 4  ;;  %s484_s30 = int_to_ptr.vmem [resolvable:$false] %s483_s30 }
  0x19   : > { %s203_s7 = scalar_lea.vmem %s703_s0, %s400_s4  ;;  %p482_p0 = pneg %p481_p13 }
  0x1a   : > { %v212_v3 = vld [vmem:[%s203_s7] sm:$0xf]  ;;  %s485_s4 = scalar_lea.vmem %s484_s30, 256  ;;  %p486_p1 = scmp.lt.s32.totalorder %s658_s21, %s484_s30 }
  0x1b   : > { %417 = vmatmul.mubr.msk.bf16.vlgmr.msra.gmra.mrb[0].mxu0 %vm236_vm1, %v212_v3  ;;  %p487_p2 = scmp.lt.s32.totalorder %s485_s4, %s479_s28 }
  0x1d   : > { %p488_p3 = por %p487_p2, %p486_p1 }
  0x1f   : > { %p489_p5 = pnand %p488_p3, %p482_p0 }
  0xee   : > { %v274_v5 = vpop.f32.mrb[0].mxu0 }
  0xef   : > { %v275_v6 = vadd.f32 %v401_v4, %v274_v5  ;;  %v418_v7 = vpop.f32.mrb[1].mxu0 }
  0xf0   : > { %v277_v8 = vpop.f32.mrb[2].mxu0 }
  0xf1   : > { %v419_v9 = vpop.f32.mrb[3].mxu0  ;;  %281 = vst.msk [vmem:[%s199_s19] sm:$0xff] %vm280_vm2, %v275_v6 }
  0xf2   : > { %492 = shalt.err (!%p489_p5)
}
  0xf3   : > { %s493_s5 = scalar_lea.hbm %s656_s27, 128  ;;  %s497_s8 = scalar_lea.hbm %s706_s3, 256 }
  0xf4   : > { %p494_p6 = scmp.ne.s32.totalorder %s656_s27, %s493_s5  ;;  %p498_p10 = scmp.lt.u32.totalorder %s656_s27, %s706_s3 }
  0xf5   : > { %p499_p11 = scmp.lt.u32.totalorder %s497_s8, %s493_s5  ;;  %p501_p13 = scmp.lt.u32.totalorder %s493_s5, %s656_s27 }
  0xf6   : > { %p495_p7 = pnand %p494_p6, %p622_p4 }
  0xf7   : > { %p500_p12 = por %p499_p11, %p498_p10 }
  0xf8   : > { %p496_p9 = pneg %p495_p7 }
  0xf9   : > { %p502_p0 = por %p501_p13, %p500_p12 }
  0xfb   : > { %p503_p1 = pnand %p502_p0, %p496_p9 }
  0xfd   : > { %506 = shalt.err (!%p503_p1)
}
  0xfe   : > { %420 = dma.vmem_to_hbm [thread:$0]  (%p622_p4), %s658_s21, 128, %s656_s27, %s283_s15  }
  0xff PF: > { %p426_p2 = scmp.ge.s32.totalorder %s557_s17, 2  ;;  %s309_s11 = sand.u32 1, %s537_s12  }
 0x100   : > { %s310_s18 = scalar_lea.sflag [#allocation3], %s309_s11 }
 0x101   : > { %p423_p3 = pnand %p426_p2, %p629_p8 }
 0x103   : > { %532 = dma.done.wait (!%p423_p3), %s310_s18, 128  }
 0x104   : > { %534 = vsyncadd (!%p423_p3), %s310_s18, 4294967168  ;;  %s16_s17 = sadd.s32 1, %s557_s17   ;;  %s709_s12 = smov %s541_s13 }
 0x105   : > { %p13_p5 = scmp.ge.s32.totalorder %s16_s17, 4   ;;  %s710_s13 = smov %s545_s14 }
 0x106   : > { %s711_s14 = smov %s635_s25  ;;  %s712_s15 = smov %s553_s16 }
 0x107   : > { %s713_s16 = smov %s715_s20  ;;  %15 = sbr.rel (!%p13_p5) target bundleno = 4 (0x4), region = 73 }
 0x10e   :  { %315 = vsyncpa [#allocation3], 1 }
 0x10f   :  { %317 = vsyncpa [#allocation3 + $0x1], 1 }

</bundles_post_ra>
